<compile_context>
chip_gen: v6e
topology: v6e:2x2x1
jax: 0.10.0
libtpu: 0.0.40
codegen_flags: <defaults>
</compile_context>

<pallas_src>
import functools
import math

import jax
import jax.numpy as jnp
from jax.experimental import pallas as pl
from jax.experimental.pallas import tpu as pltpu

LN_EPS = 1e-5
NEG_INF = -1e30


def _cparams():
    return pltpu.CompilerParams(
        dimension_semantics=("parallel",),
        vmem_limit_bytes=48 * 1024 * 1024,
    )


# ----------------------------- in-kernel helpers ------------------------------
def _layer_norm(x, g, b):
    # x: (rows, D) f32 ; g/b: (1, D) f32
    mean = jnp.mean(x, axis=-1, keepdims=True)
    var = jnp.mean(jnp.square(x - mean), axis=-1, keepdims=True)
    return (x - mean) * jax.lax.rsqrt(var + LN_EPS) * g + b


def _mha_core(q, k, v, bias, nhead):
    # q: (Sq, E), k/v: (Sk, E) bf16 ; bias: (1, Sk) f32 additive or None.
    # Heads are split in-kernel (avoids cross-kernel transposes); per-head
    # matmuls use bf16 MXU operands with fp32 accumulation, softmax stays fp32.
    sq, e = q.shape
    dh = e // nhead
    outs = []
    for h in range(nhead):
        sl = slice(h * dh, (h + 1) * dh)
        qh = q[:, sl].astype(jnp.bfloat16)
        kh = k[:, sl].astype(jnp.bfloat16)
        vh = v[:, sl].astype(jnp.bfloat16)
        # q @ k^T without materializing a transpose (contract the last dims).
        s = jax.lax.dot_general(qh, kh, (((1,), (1,)), ((), ())),
                                preferred_element_type=jnp.float32)
        if bias is not None:
            s = s + bias
        m = jnp.max(s, axis=-1, keepdims=True)
        p = jnp.exp(s - m)
        denom = jnp.sum(p, axis=-1, keepdims=True)
        p = p * pl.reciprocal(denom, approx=True)
        outs.append(jnp.dot(p.astype(jnp.bfloat16), vh,
                            preferred_element_type=jnp.float32))
    return jnp.concatenate(outs, axis=-1)  # (Sq, E) f32, lane-dense store


# --------------------------------- kernels ------------------------------------
def _ln_qkv_kernel(x_ref, pos_ref, g_ref, b_ref, wqk_ref, bqk_ref, wv_ref, bv_ref,
                   o_ref):
    # Fused: LN1(x); [q|k] = (LN+pos) @ Wqk + bqk ; v = LN @ Wv + bv.
    ln = _layer_norm(x_ref[...].astype(jnp.float32), g_ref[...], b_ref[...])
    xqk = (ln + pos_ref[...]).astype(jnp.bfloat16)
    qk = jnp.dot(xqk, wqk_ref[...], preferred_element_type=jnp.float32) + bqk_ref[...]
    v = jnp.dot(ln.astype(jnp.bfloat16), wv_ref[...],
                preferred_element_type=jnp.float32) + bv_ref[...]
    d2 = qk.shape[-1]
    o_ref[:, :d2] = qk.astype(o_ref.dtype)
    o_ref[:, d2:] = v.astype(o_ref.dtype)


def _ln_pos_linear_kernel(x_ref, pos_ref, g_ref, b_ref, w_ref, bias_ref, o_ref):
    # Fused: q = (LN2(x) + pos) @ Wq + bq   (cross-attn query path)
    ln = _layer_norm(x_ref[...].astype(jnp.float32), g_ref[...], b_ref[...])
    xq = (ln + pos_ref[...]).astype(jnp.bfloat16)
    y = jnp.dot(xq, w_ref[...], preferred_element_type=jnp.float32) + bias_ref[...]
    o_ref[...] = y.astype(o_ref.dtype)


def _pos_kv_kernel(x_ref, pos_ref, wk_ref, bk_ref, wv_ref, bv_ref, o_ref):
    # Fused: k = (txt + pos) @ Wk + bk ; v = txt @ Wv + bv.  Output [k|v].
    x = x_ref[...].astype(jnp.float32)
    k = jnp.dot((x + pos_ref[...]).astype(jnp.bfloat16), wk_ref[...],
                preferred_element_type=jnp.float32) + bk_ref[...]
    v = jnp.dot(x.astype(jnp.bfloat16), wv_ref[...],
                preferred_element_type=jnp.float32) + bv_ref[...]
    d = k.shape[-1]
    o_ref[:, :d] = k.astype(o_ref.dtype)
    o_ref[:, d:] = v.astype(o_ref.dtype)


def _self_attn_kernel(q_ref, k_ref, v_ref, o_ref, *, nhead):
    o = _mha_core(q_ref[...], k_ref[...], v_ref[...], None, nhead)
    o_ref[...] = o.astype(o_ref.dtype)


def _cross_attn_kernel(bias_ref, q_ref, k_ref, v_ref, o_ref, *, nhead):
    # bias_ref holds the full (B, Sk) additive pad bias; pick this batch's row.
    bias = bias_ref[pl.ds(pl.program_id(0), 1), :]          # (1, Sk) f32
    o = _mha_core(q_ref[...], k_ref[...], v_ref[...], bias, nhead)
    o_ref[...] = o.astype(o_ref.dtype)


def _attn_epilogue_kernel(a_ref, res_ref, w_ref, b_ref, g_ref, bb_ref, o_ref):
    # Fused: out-proj -> post-attention LayerNorm -> residual add.
    y = jnp.dot(a_ref[...], w_ref[...], preferred_element_type=jnp.float32) + b_ref[...]
    y = _layer_norm(y, g_ref[...], bb_ref[...])
    o_ref[...] = (res_ref[...].astype(jnp.float32) + y).astype(o_ref.dtype)


def _ffn_kernel(x_ref, g3_ref, b3_ref, w1_ref, b1_ref, gf_ref, bf_ref, w2_ref,
                b2_ref, o_ref):
    # Fused: LN3 -> Linear(D,DFF)+ReLU -> LayerNorm(DFF) -> Linear(DFF,D) -> +res.
    x = x_ref[...].astype(jnp.float32)
    h = _layer_norm(x, g3_ref[...], b3_ref[...])
    h = jnp.dot(h.astype(jnp.bfloat16), w1_ref[...],
                preferred_element_type=jnp.float32) + b1_ref[...]
    h = jnp.maximum(h, 0.0)
    h = _layer_norm(h, gf_ref[...], bf_ref[...])
    y = jnp.dot(h.astype(jnp.bfloat16), w2_ref[...],
                preferred_element_type=jnp.float32) + b2_ref[...]
    o_ref[...] = (x + y).astype(o_ref.dtype)


# --------------------------------- wrappers ------------------------------------
def ln_qkv_proj(x, pos, g, b, wqk, bqk, wv, bv, batch):
    n, d = x.shape
    s = n // batch
    d2, dv = wqk.shape[1], wv.shape[1]
    dout = d2 + dv
    return pl.pallas_call(
        _ln_qkv_kernel,
        out_shape=jax.ShapeDtypeStruct((n, dout), jnp.bfloat16),
        grid=(batch,),
        in_specs=[
            pl.BlockSpec((s, d), lambda i: (i, 0)),
            pl.BlockSpec((s, d), lambda i: (0, 0)),
            pl.BlockSpec((1, d), lambda i: (0, 0)),
            pl.BlockSpec((1, d), lambda i: (0, 0)),
            pl.BlockSpec((d, d2), lambda i: (0, 0)),
            pl.BlockSpec((1, d2), lambda i: (0, 0)),
            pl.BlockSpec((d, dv), lambda i: (0, 0)),
            pl.BlockSpec((1, dv), lambda i: (0, 0)),
        ],
        out_specs=pl.BlockSpec((s, dout), lambda i: (i, 0)),
        compiler_params=_cparams(),
        cost_estimate=pl.CostEstimate(
            flops=2 * n * d * dout, transcendentals=n,
            bytes_accessed=4 * n * d + 2 * d * dout + 2 * n * dout),
    )(x, pos, g, b, wqk, bqk, wv, bv)


def ln_pos_linear(x, pos, g, b, w, bias, batch):
    n, d = x.shape
    s = n // batch
    dout = w.shape[1]
    return pl.pallas_call(
        _ln_pos_linear_kernel,
        out_shape=jax.ShapeDtypeStruct((n, dout), jnp.bfloat16),
        grid=(batch,),
        in_specs=[
            pl.BlockSpec((s, d), lambda i: (i, 0)),
            pl.BlockSpec((s, d), lambda i: (0, 0)),
            pl.BlockSpec((1, d), lambda i: (0, 0)),
            pl.BlockSpec((1, d), lambda i: (0, 0)),
            pl.BlockSpec((d, dout), lambda i: (0, 0)),
            pl.BlockSpec((1, dout), lambda i: (0, 0)),
        ],
        out_specs=pl.BlockSpec((s, dout), lambda i: (i, 0)),
        compiler_params=_cparams(),
    )(x, pos, g, b, w, bias)


def pos_kv_proj(x, pos, wk, bk, wv, bv, batch):
    n, d = x.shape
    s = n // batch
    dout = wk.shape[1]
    return pl.pallas_call(
        _pos_kv_kernel,
        out_shape=jax.ShapeDtypeStruct((n, 2 * dout), jnp.bfloat16),
        grid=(batch,),
        in_specs=[
            pl.BlockSpec((s, d), lambda i: (i, 0)),
            pl.BlockSpec((s, d), lambda i: (0, 0)),
            pl.BlockSpec((d, dout), lambda i: (0, 0)),
            pl.BlockSpec((1, dout), lambda i: (0, 0)),
            pl.BlockSpec((d, dout), lambda i: (0, 0)),
            pl.BlockSpec((1, dout), lambda i: (0, 0)),
        ],
        out_specs=pl.BlockSpec((s, 2 * dout), lambda i: (i, 0)),
        compiler_params=_cparams(),
    )(x, pos, wk, bk, wv, bv)


def self_attention(qkv, batch, seqlen, d_model, nhead):
    return pl.pallas_call(
        functools.partial(_self_attn_kernel, nhead=nhead),
        out_shape=jax.ShapeDtypeStruct((batch * seqlen, d_model), jnp.bfloat16),
        grid=(batch,),
        in_specs=[
            pl.BlockSpec((seqlen, d_model), lambda i: (i, 0)),   # q cols [0, D)
            pl.BlockSpec((seqlen, d_model), lambda i: (i, 1)),   # k cols [D, 2D)
            pl.BlockSpec((seqlen, d_model), lambda i: (i, 2)),   # v cols [2D, 3D)
        ],
        out_specs=pl.BlockSpec((seqlen, d_model), lambda i: (i, 0)),
        compiler_params=_cparams(),
    )(qkv, qkv, qkv)


def cross_attention(q, kv, pad_bias, batch, sq, sk, d_model, nhead):
    return pl.pallas_call(
        functools.partial(_cross_attn_kernel, nhead=nhead),
        out_shape=jax.ShapeDtypeStruct((batch * sq, d_model), jnp.bfloat16),
        grid=(batch,),
        in_specs=[
            pl.BlockSpec((batch, sk), lambda i: (0, 0)),         # tiny pad bias
            pl.BlockSpec((sq, d_model), lambda i: (i, 0)),       # q
            pl.BlockSpec((sk, d_model), lambda i: (i, 0)),       # k cols [0, D)
            pl.BlockSpec((sk, d_model), lambda i: (i, 1)),       # v cols [D, 2D)
        ],
        out_specs=pl.BlockSpec((sq, d_model), lambda i: (i, 0)),
        compiler_params=_cparams(),
    )(pad_bias, q, kv, kv)


def attn_epilogue(a, res, w, b, g, bb, batch):
    n, d = a.shape
    s = n // batch
    return pl.pallas_call(
        _attn_epilogue_kernel,
        out_shape=jax.ShapeDtypeStruct((n, d), jnp.float32),
        grid=(batch,),
        in_specs=[
            pl.BlockSpec((s, d), lambda i: (i, 0)),
            pl.BlockSpec((s, d), lambda i: (i, 0)),
            pl.BlockSpec((d, d), lambda i: (0, 0)),
            pl.BlockSpec((1, d), lambda i: (0, 0)),
            pl.BlockSpec((1, d), lambda i: (0, 0)),
            pl.BlockSpec((1, d), lambda i: (0, 0)),
        ],
        out_specs=pl.BlockSpec((s, d), lambda i: (i, 0)),
        compiler_params=_cparams(),
    )(a, res, w, b, g, bb)


def ffn_block(x, g3, b3, w1, b1, gf, bf_, w2, b2, batch):
    n, d = x.shape
    s = n // batch
    dff = w1.shape[1]
    return pl.pallas_call(
        _ffn_kernel,
        out_shape=jax.ShapeDtypeStruct((n, d), jnp.float32),
        grid=(batch,),
        in_specs=[
            pl.BlockSpec((s, d), lambda i: (i, 0)),
            pl.BlockSpec((1, d), lambda i: (0, 0)),
            pl.BlockSpec((1, d), lambda i: (0, 0)),
            pl.BlockSpec((d, dff), lambda i: (0, 0)),
            pl.BlockSpec((1, dff), lambda i: (0, 0)),
            pl.BlockSpec((1, dff), lambda i: (0, 0)),
            pl.BlockSpec((1, dff), lambda i: (0, 0)),
            pl.BlockSpec((dff, d), lambda i: (0, 0)),
            pl.BlockSpec((1, d), lambda i: (0, 0)),
        ],
        out_specs=pl.BlockSpec((s, d), lambda i: (i, 0)),
        compiler_params=_cparams(),
        cost_estimate=pl.CostEstimate(
            flops=4 * n * d * dff, transcendentals=2 * n,
            bytes_accessed=8 * n * d + 4 * d * dff + 4 * n * dff),
    )(x, g3, b3, w1, b1, gf, bf_, w2, b2)


# ------------------------------- DecoderLayer ----------------------------------
def decoder_layer(pp, vis, txt, vis_pos, txt_pos, pad_mask, nhead):
    s, b, d = vis.shape
    l = txt.shape[0]

    # One transpose to batch-major token order at the boundary (and one back).
    x = vis.transpose(1, 0, 2).reshape(b * s, d)          # (B*S, D) f32
    t = txt.transpose(1, 0, 2).reshape(b * l, d)          # (B*L, D) f32
    vpos = vis_pos[:, 0, :]                                # (S, D)
    tpos = txt_pos[:, 0, :]                                # (L, D)
    pad_bias = jnp.where(pad_mask, NEG_INF, 0.0).astype(jnp.float32)  # (B, L)

    # --- self-attention block (dropout1 = identity in eval) ---
    qkv = ln_qkv_proj(x, vpos, pp["norm1_g"], pp["norm1_b"],
                      pp["sa_wqk"], pp["sa_bqk"], pp["sa_wv"], pp["sa_bv"], b)
    a = self_attention(qkv, b, s, d, nhead)
    x = attn_epilogue(a, x, pp["sa_wo"], pp["sa_bo"], pp["san_g"], pp["san_b"], b)

    # --- cross-attention block (dropout2 = identity in eval) ---
    qx = ln_pos_linear(x, vpos, pp["norm2_g"], pp["norm2_b"],
                       pp["ca_wq"], pp["ca_bq"], b)
    kv = pos_kv_proj(t, tpos, pp["ca_wk"], pp["ca_bk"], pp["ca_wv"], pp["ca_bv"], b)
    a = cross_attention(qx, kv, pad_bias, b, s, l, d, nhead)
    x = attn_epilogue(a, x, pp["ca_wo"], pp["ca_bo"], pp["can_g"], pp["can_b"], b)

    # --- FFN block (dropout3 = identity in eval) ---
    x = ffn_block(x, pp["norm3_g"], pp["norm3_b"], pp["ffn_w1"], pp["ffn_b1"],
                  pp["ffn_ln_g"], pp["ffn_ln_b"], pp["ffn_w2"], pp["ffn_b2"], b)

    return x.reshape(b, s, d).transpose(1, 0, 2)


# ------------------------- parameter init & preparation -------------------------
def init_params(key, d_model, dim_feedforward):
    ks = iter(jax.random.split(key, 8))

    def dense(shape):
        return jax.random.normal(next(ks), shape, jnp.float32) * 0.02

    d, dff = d_model, dim_feedforward
    return {
        "norm1_g": jnp.ones((d,), jnp.float32), "norm1_b": jnp.zeros((d,), jnp.float32),
        "norm2_g": jnp.ones((d,), jnp.float32), "norm2_b": jnp.zeros((d,), jnp.float32),
        "norm3_g": jnp.ones((d,), jnp.float32), "norm3_b": jnp.zeros((d,), jnp.float32),
        "san_g": jnp.ones((d,), jnp.float32), "san_b": jnp.zeros((d,), jnp.float32),
        "can_g": jnp.ones((d,), jnp.float32), "can_b": jnp.zeros((d,), jnp.float32),
        # PyTorch layout: in_proj_weight (3D, D), out_proj.weight (D, D)
        "sa_in_w": dense((3 * d, d)), "sa_in_b": jnp.zeros((3 * d,), jnp.float32),
        "sa_out_w": dense((d, d)), "sa_out_b": jnp.zeros((d,), jnp.float32),
        "ca_in_w": dense((3 * d, d)), "ca_in_b": jnp.zeros((3 * d,), jnp.float32),
        "ca_out_w": dense((d, d)), "ca_out_b": jnp.zeros((d,), jnp.float32),
        "ffn_w1": dense((dff, d)), "ffn_b1": jnp.zeros((dff,), jnp.float32),
        "ffn_ln_g": jnp.ones((dff,), jnp.float32), "ffn_ln_b": jnp.zeros((dff,), jnp.float32),
        "ffn_w2": dense((d, dff)), "ffn_b2": jnp.zeros((d,), jnp.float32),
    }


def prepare_params(params, d_model, nhead):
    # Transpose weights once, cast matmul weights to bf16, fold 1/sqrt(dh) into Wq/bq.
    d = d_model
    scale = 1.0 / math.sqrt(d // nhead)

    def split3(w, bias):
        return (w[:d], w[d:2 * d], w[2 * d:], bias[:d], bias[d:2 * d], bias[2 * d:])

    wq, wk, wv, bq, bk, bv = split3(params["sa_in_w"], params["sa_in_b"])
    cwq, cwk, cwv, cbq, cbk, cbv = split3(params["ca_in_w"], params["ca_in_b"])

    def row(v):
        return v.reshape(1, -1).astype(jnp.float32)

    pp = {
        # LayerNorm params (fp32)
        "norm1_g": row(params["norm1_g"]), "norm1_b": row(params["norm1_b"]),
        "norm2_g": row(params["norm2_g"]), "norm2_b": row(params["norm2_b"]),
        "norm3_g": row(params["norm3_g"]), "norm3_b": row(params["norm3_b"]),
        "san_g": row(params["san_g"]), "san_b": row(params["san_b"]),
        "can_g": row(params["can_g"]), "can_b": row(params["can_b"]),
        "ffn_ln_g": row(params["ffn_ln_g"]), "ffn_ln_b": row(params["ffn_ln_b"]),
        # self-attention: [Wq*scale | Wk] combined, Wv, Wo (all transposed, bf16)
        "sa_wqk": jnp.concatenate([wq.T * scale, wk.T], axis=1).astype(jnp.bfloat16),
        "sa_bqk": jnp.concatenate([bq * scale, bk]).reshape(1, 2 * d).astype(jnp.float32),
        "sa_wv": wv.T.astype(jnp.bfloat16), "sa_bv": row(bv),
        "sa_wo": params["sa_out_w"].T.astype(jnp.bfloat16), "sa_bo": row(params["sa_out_b"]),
        # cross-attention
        "ca_wq": (cwq.T * scale).astype(jnp.bfloat16), "ca_bq": row(cbq * scale),
        "ca_wk": cwk.T.astype(jnp.bfloat16), "ca_bk": row(cbk),
        "ca_wv": cwv.T.astype(jnp.bfloat16), "ca_bv": row(cbv),
        "ca_wo": params["ca_out_w"].T.astype(jnp.bfloat16), "ca_bo": row(params["ca_out_b"]),
        # FFN
        "ffn_w1": params["ffn_w1"].T.astype(jnp.bfloat16), "ffn_b1": row(params["ffn_b1"]),
        "ffn_w2": params["ffn_w2"].T.astype(jnp.bfloat16), "ffn_b2": row(params["ffn_b2"]),
    }
    return pp


# ------------------------------------ main --------------------------------------
if __name__ == "__main__":
    # Small, TPU-tile-friendly config (the reference default d_model=512/nhead=9
    # is not divisible; pick a valid small config with the same forward semantics).
    D_MODEL, NHEAD, DFF = 128, 4, 256
    S_VIS, L_TXT, BATCH = 64, 16, 2

    key = jax.random.PRNGKey(0)
    kp, kv_, kt, kvp, ktp = jax.random.split(key, 5)

    params = init_params(kp, D_MODEL, DFF)
    pp = prepare_params(params, D_MODEL, NHEAD)

    vis = jax.random.normal(kv_, (S_VIS, BATCH, D_MODEL), jnp.float32)
    txt = jax.random.normal(kt, (L_TXT, BATCH, D_MODEL), jnp.float32)
    vis_pos = jax.random.normal(kvp, (S_VIS, 1, D_MODEL), jnp.float32)
    txt_pos = jax.random.normal(ktp, (L_TXT, 1, D_MODEL), jnp.float32)
    # pad last 5 text tokens of batch 1 (keep >=1 valid key per row)
    pad_mask = jnp.zeros((BATCH, L_TXT), jnp.bool_).at[1, -5:].set(True)

    fwd = jax.jit(functools.partial(decoder_layer, nhead=NHEAD))
    out = fwd(pp, vis, txt, vis_pos, txt_pos, pad_mask)
    out = jax.block_until_ready(out)

    assert out.shape == (S_VIS, BATCH, D_MODEL)
    assert bool(jnp.all(jnp.isfinite(out)))
    print("KERNEL_OK")
</pallas_src>

<mosaic_0001>
module attributes {stable_mosaic.version = 11 : i64} {
  func.func @_attn_epilogue_kernel(%arg0: i32, %arg1: memref<64x128xbf16, #tpu.memory_space<vmem>>, %arg2: memref<64x128xf32, #tpu.memory_space<vmem>>, %arg3: memref<128x128xbf16, #tpu.memory_space<vmem>>, %arg4: memref<1x128xf32, #tpu.memory_space<vmem>>, %arg5: memref<1x128xf32, #tpu.memory_space<vmem>>, %arg6: memref<1x128xf32, #tpu.memory_space<vmem>>, %arg7: memref<64x128xf32, #tpu.memory_space<vmem>>) attributes {dimension_semantics = [#tpu.dimension_semantics<parallel>], iteration_bounds = array<i64: 2>, scalar_prefetch = 0 : i64, scratch_operands = 0 : i64, tpu.core_type = #tpu.core_type<tc>, window_params = [{transform_indices = @transform_0, window_bounds = array<i64: 64, 128>}, {transform_indices = @transform_1, window_bounds = array<i64: 64, 128>}, {pipeline_mode = #tpu.pipeline_mode<synchronous>, transform_indices = @transform_2, window_bounds = array<i64: 128, 128>}, {pipeline_mode = #tpu.pipeline_mode<synchronous>, transform_indices = @transform_3, window_bounds = array<i64: 1, 128>}, {pipeline_mode = #tpu.pipeline_mode<synchronous>, transform_indices = @transform_4, window_bounds = array<i64: 1, 128>}, {pipeline_mode = #tpu.pipeline_mode<synchronous>, transform_indices = @transform_5, window_bounds = array<i64: 1, 128>}, {transform_indices = @transform_6, window_bounds = array<i64: 64, 128>}]} {
    %c0 = arith.constant 0 : index
    %c0_0 = arith.constant 0 : index
    %0 = vector.load %arg1[%c0, %c0_0] : memref<64x128xbf16, #tpu.memory_space<vmem>>, vector<64x128xbf16>
    %c0_1 = arith.constant 0 : index
    %c0_2 = arith.constant 0 : index
    %1 = vector.load %arg3[%c0_1, %c0_2] : memref<128x128xbf16, #tpu.memory_space<vmem>>, vector<128x128xbf16>
    %cst = arith.constant dense<0.000000e+00> : vector<64x128xf32>
    %2 = tpu.matmul %0, %1, %cst {dimension_numbers = #tpu.dot_dimension_numbers<[1], [0], [0], [1], [0, 0, 1, 1], [], []>} : vector<64x128xbf16>, vector<128x128xbf16>, vector<64x128xf32> -> vector<64x128xf32>
    %c0_3 = arith.constant 0 : index
    %c0_4 = arith.constant 0 : index
    %3 = vector.load %arg4[%c0_3, %c0_4] : memref<1x128xf32, #tpu.memory_space<vmem>>, vector<1x128xf32>
    %4 = vector.broadcast %3 : vector<1x128xf32> to vector<64x128xf32>
    %5 = arith.addf %2, %4 : vector<64x128xf32>
    %c0_5 = arith.constant 0 : index
    %c0_6 = arith.constant 0 : index
    %6 = vector.load %arg5[%c0_5, %c0_6] : memref<1x128xf32, #tpu.memory_space<vmem>>, vector<1x128xf32>
    %c0_7 = arith.constant 0 : index
    %c0_8 = arith.constant 0 : index
    %7 = vector.load %arg6[%c0_7, %c0_8] : memref<1x128xf32, #tpu.memory_space<vmem>>, vector<1x128xf32>
    %cst_9 = arith.constant dense<0.000000e+00> : vector<64xf32>
    %8 = vector.multi_reduction <add>, %5, %cst_9 [1] : vector<64x128xf32> to vector<64xf32>
    %9 = vector.shape_cast %8 : vector<64xf32> to vector<64x1xf32>
    %cst_10 = arith.constant 1.280000e+02 : f32
    %10 = vector.broadcast %cst_10 : f32 to vector<64x1xf32>
    %11 = arith.divf %9, %10 : vector<64x1xf32>
    %12 = vector.broadcast %11 : vector<64x1xf32> to vector<64x128xf32>
    %13 = arith.subf %5, %12 : vector<64x128xf32>
    %14 = arith.mulf %13, %13 : vector<64x128xf32>
    %cst_11 = arith.constant dense<0.000000e+00> : vector<64xf32>
    %15 = vector.multi_reduction <add>, %14, %cst_11 [1] : vector<64x128xf32> to vector<64xf32>
    %16 = vector.shape_cast %15 : vector<64xf32> to vector<64x1xf32>
    %cst_12 = arith.constant 1.280000e+02 : f32
    %17 = vector.broadcast %cst_12 : f32 to vector<64x1xf32>
    %18 = arith.divf %16, %17 : vector<64x1xf32>
    %19 = vector.broadcast %11 : vector<64x1xf32> to vector<64x128xf32>
    %20 = arith.subf %5, %19 : vector<64x128xf32>
    %cst_13 = arith.constant 9.99999974E-6 : f32
    %21 = vector.broadcast %cst_13 : f32 to vector<64x1xf32>
    %22 = arith.addf %18, %21 : vector<64x1xf32>
    %23 = math.rsqrt %22 : vector<64x1xf32>
    %24 = vector.broadcast %23 : vector<64x1xf32> to vector<64x128xf32>
    %25 = arith.mulf %20, %24 : vector<64x128xf32>
    %26 = vector.broadcast %6 : vector<1x128xf32> to vector<64x128xf32>
    %27 = arith.mulf %25, %26 : vector<64x128xf32>
    %28 = vector.broadcast %7 : vector<1x128xf32> to vector<64x128xf32>
    %29 = arith.addf %27, %28 : vector<64x128xf32>
    %c0_14 = arith.constant 0 : index
    %c0_15 = arith.constant 0 : index
    %30 = vector.load %arg2[%c0_14, %c0_15] : memref<64x128xf32, #tpu.memory_space<vmem>>, vector<64x128xf32>
    %31 = arith.addf %30, %29 : vector<64x128xf32>
    %c0_16 = arith.constant 0 : index
    %c0_17 = arith.constant 0 : index
    %32 = vector.load %arg7[%c0_16, %c0_17] : memref<64x128xf32, #tpu.memory_space<vmem>>, vector<64x128xf32>
    tpu.vector_store %arg7[%c0_16, %c0_17], %31 {strides = array<i32>} : memref<64x128xf32, #tpu.memory_space<vmem>>, vector<64x128xf32>,
    return
  }
  func.func @transform_0(%arg0: i32) -> (i32, i32) {
    %c0_i32 = arith.constant 0 : i32
    %c0_i32_0 = arith.constant 0 : i32
    return %arg0, %c0_i32 : i32, i32
  }
  func.func @transform_1(%arg0: i32) -> (i32, i32) {
    %c0_i32 = arith.constant 0 : i32
    %c0_i32_0 = arith.constant 0 : i32
    return %arg0, %c0_i32 : i32, i32
  }
  func.func @transform_2(%arg0: i32) -> (i32, i32) {
    %c0_i32 = arith.constant 0 : i32
    %c0_i32_0 = arith.constant 0 : i32
    %c0_i32_1 = arith.constant 0 : i32
    return %c0_i32, %c0_i32_0 : i32, i32
  }
  func.func @transform_3(%arg0: i32) -> (i32, i32) {
    %c0_i32 = arith.constant 0 : i32
    %c0_i32_0 = arith.constant 0 : i32
    %c0_i32_1 = arith.constant 0 : i32
    return %c0_i32, %c0_i32_0 : i32, i32
  }
  func.func @transform_4(%arg0: i32) -> (i32, i32) {
    %c0_i32 = arith.constant 0 : i32
    %c0_i32_0 = arith.constant 0 : i32
    %c0_i32_1 = arith.constant 0 : i32
    return %c0_i32, %c0_i32_0 : i32, i32
  }
  func.func @transform_5(%arg0: i32) -> (i32, i32) {
    %c0_i32 = arith.constant 0 : i32
    %c0_i32_0 = arith.constant 0 : i32
    %c0_i32_1 = arith.constant 0 : i32
    return %c0_i32, %c0_i32_0 : i32, i32
  }
  func.func @transform_6(%arg0: i32) -> (i32, i32) {
    %c0_i32 = arith.constant 0 : i32
    %c0_i32_0 = arith.constant 0 : i32
    return %arg0, %c0_i32 : i32, i32
  }
}

module attributes {stable_mosaic.version = 11 : i64} {
  func.func @_self_attn_kernel(%arg0: i32, %arg1: memref<64x128xbf16, #tpu.memory_space<vmem>>, %arg2: memref<64x128xbf16, #tpu.memory_space<vmem>>, %arg3: memref<64x128xbf16, #tpu.memory_space<vmem>>, %arg4: memref<64x128xbf16, #tpu.memory_space<vmem>>) attributes {dimension_semantics = [#tpu.dimension_semantics<parallel>], iteration_bounds = array<i64: 2>, scalar_prefetch = 0 : i64, scratch_operands = 0 : i64, tpu.core_type = #tpu.core_type<tc>, window_params = [{transform_indices = @transform_0, window_bounds = array<i64: 64, 128>}, {transform_indices = @transform_1, window_bounds = array<i64: 64, 128>}, {transform_indices = @transform_2, window_bounds = array<i64: 64, 128>}, {transform_indices = @transform_3, window_bounds = array<i64: 64, 128>}]} {
    %c0 = arith.constant 0 : index
    %c0_0 = arith.constant 0 : index
    %0 = vector.load %arg1[%c0, %c0_0] : memref<64x128xbf16, #tpu.memory_space<vmem>>, vector<64x128xbf16>
    %c0_1 = arith.constant 0 : index
    %c0_2 = arith.constant 0 : index
    %1 = vector.load %arg2[%c0_1, %c0_2] : memref<64x128xbf16, #tpu.memory_space<vmem>>, vector<64x128xbf16>
    %c0_3 = arith.constant 0 : index
    %c0_4 = arith.constant 0 : index
    %2 = vector.load %arg3[%c0_3, %c0_4] : memref<64x128xbf16, #tpu.memory_space<vmem>>, vector<64x128xbf16>
    %3 = vector.extract_strided_slice %0 {offsets = [0, 0], sizes = [64, 32], strides = [1, 1]} : vector<64x128xbf16> to vector<64x32xbf16>
    %4 = vector.extract_strided_slice %1 {offsets = [0, 0], sizes = [64, 32], strides = [1, 1]} : vector<64x128xbf16> to vector<64x32xbf16>
    %5 = vector.extract_strided_slice %2 {offsets = [0, 0], sizes = [64, 32], strides = [1, 1]} : vector<64x128xbf16> to vector<64x32xbf16>
    %cst = arith.constant dense<0.000000e+00> : vector<64x64xf32>
    %6 = tpu.matmul %3, %4, %cst {dimension_numbers = #tpu.dot_dimension_numbers<[1], [1], [0], [0], [0, 0, 1, 0], [], []>} : vector<64x32xbf16>, vector<64x32xbf16>, vector<64x64xf32> -> vector<64x64xf32>
    %cst_5 = arith.constant dense<0xFF800000> : vector<64xf32>
    %7 = vector.multi_reduction <maximumf>, %6, %cst_5 [1] : vector<64x64xf32> to vector<64xf32>
    %8 = vector.shape_cast %7 : vector<64xf32> to vector<64x1xf32>
    %9 = vector.broadcast %8 : vector<64x1xf32> to vector<64x64xf32>
    %10 = arith.subf %6, %9 : vector<64x64xf32>
    %11 = math.exp %10 : vector<64x64xf32>
    %cst_6 = arith.constant dense<0.000000e+00> : vector<64xf32>
    %12 = vector.multi_reduction <add>, %11, %cst_6 [1] : vector<64x64xf32> to vector<64xf32>
    %13 = vector.shape_cast %12 : vector<64xf32> to vector<64x1xf32>
    %14 = tpu.reciprocal %13 {approx = true} : vector<64x1xf32> -> vector<64x1xf32>
    %15 = vector.broadcast %14 : vector<64x1xf32> to vector<64x64xf32>
    %16 = arith.mulf %11, %15 : vector<64x64xf32>
    %17 = arith.truncf %16 : vector<64x64xf32> to vector<64x64xbf16>
    %cst_7 = arith.constant dense<0.000000e+00> : vector<64x32xf32>
    %18 = tpu.matmul %17, %5, %cst_7 {dimension_numbers = #tpu.dot_dimension_numbers<[1], [0], [0], [1], [0, 0, 1, 1], [], []>} : vector<64x64xbf16>, vector<64x32xbf16>, vector<64x32xf32> -> vector<64x32xf32>
    %19 = vector.extract_strided_slice %0 {offsets = [0, 32], sizes = [64, 32], strides = [1, 1]} : vector<64x128xbf16> to vector<64x32xbf16>
    %20 = vector.extract_strided_slice %1 {offsets = [0, 32], sizes = [64, 32], strides = [1, 1]} : vector<64x128xbf16> to vector<64x32xbf16>
    %21 = vector.extract_strided_slice %2 {offsets = [0, 32], sizes = [64, 32], strides = [1, 1]} : vector<64x128xbf16> to vector<64x32xbf16>
    %cst_8 = arith.constant dense<0.000000e+00> : vector<64x64xf32>
    %22 = tpu.matmul %19, %20, %cst_8 {dimension_numbers = #tpu.dot_dimension_numbers<[1], [1], [0], [0], [0, 0, 1, 0], [], []>} : vector<64x32xbf16>, vector<64x32xbf16>, vector<64x64xf32> -> vector<64x64xf32>
    %cst_9 = arith.constant dense<0xFF800000> : vector<64xf32>
    %23 = vector.multi_reduction <maximumf>, %22, %cst_9 [1] : vector<64x64xf32> to vector<64xf32>
    %24 = vector.shape_cast %23 : vector<64xf32> to vector<64x1xf32>
    %25 = vector.broadcast %24 : vector<64x1xf32> to vector<64x64xf32>
    %26 = arith.subf %22, %25 : vector<64x64xf32>
    %27 = math.exp %26 : vector<64x64xf32>
    %cst_10 = arith.constant dense<0.000000e+00> : vector<64xf32>
    %28 = vector.multi_reduction <add>, %27, %cst_10 [1] : vector<64x64xf32> to vector<64xf32>
    %29 = vector.shape_cast %28 : vector<64xf32> to vector<64x1xf32>
    %30 = tpu.reciprocal %29 {approx = true} : vector<64x1xf32> -> vector<64x1xf32>
    %31 = vector.broadcast %30 : vector<64x1xf32> to vector<64x64xf32>
    %32 = arith.mulf %27, %31 : vector<64x64xf32>
    %33 = arith.truncf %32 : vector<64x64xf32> to vector<64x64xbf16>
    %cst_11 = arith.constant dense<0.000000e+00> : vector<64x32xf32>
    %34 = tpu.matmul %33, %21, %cst_11 {dimension_numbers = #tpu.dot_dimension_numbers<[1], [0], [0], [1], [0, 0, 1, 1], [], []>} : vector<64x64xbf16>, vector<64x32xbf16>, vector<64x32xf32> -> vector<64x32xf32>
    %35 = vector.extract_strided_slice %0 {offsets = [0, 64], sizes = [64, 32], strides = [1, 1]} : vector<64x128xbf16> to vector<64x32xbf16>
    %36 = vector.extract_strided_slice %1 {offsets = [0, 64], sizes = [64, 32], strides = [1, 1]} : vector<64x128xbf16> to vector<64x32xbf16>
    %37 = vector.extract_strided_slice %2 {offsets = [0, 64], sizes = [64, 32], strides = [1, 1]} : vector<64x128xbf16> to vector<64x32xbf16>
    %cst_12 = arith.constant dense<0.000000e+00> : vector<64x64xf32>
    %38 = tpu.matmul %35, %36, %cst_12 {dimension_numbers = #tpu.dot_dimension_numbers<[1], [1], [0], [0], [0, 0, 1, 0], [], []>} : vector<64x32xbf16>, vector<64x32xbf16>, vector<64x64xf32> -> vector<64x64xf32>
    %cst_13 = arith.constant dense<0xFF800000> : vector<64xf32>
    %39 = vector.multi_reduction <maximumf>, %38, %cst_13 [1] : vector<64x64xf32> to vector<64xf32>
    %40 = vector.shape_cast %39 : vector<64xf32> to vector<64x1xf32>
    %41 = vector.broadcast %40 : vector<64x1xf32> to vector<64x64xf32>
    %42 = arith.subf %38, %41 : vector<64x64xf32>
    %43 = math.exp %42 : vector<64x64xf32>
    %cst_14 = arith.constant dense<0.000000e+00> : vector<64xf32>
    %44 = vector.multi_reduction <add>, %43, %cst_14 [1] : vector<64x64xf32> to vector<64xf32>
    %45 = vector.shape_cast %44 : vector<64xf32> to vector<64x1xf32>
    %46 = tpu.reciprocal %45 {approx = true} : vector<64x1xf32> -> vector<64x1xf32>
    %47 = vector.broadcast %46 : vector<64x1xf32> to vector<64x64xf32>
    %48 = arith.mulf %43, %47 : vector<64x64xf32>
    %49 = arith.truncf %48 : vector<64x64xf32> to vector<64x64xbf16>
    %cst_15 = arith.constant dense<0.000000e+00> : vector<64x32xf32>
    %50 = tpu.matmul %49, %37, %cst_15 {dimension_numbers = #tpu.dot_dimension_numbers<[1], [0], [0], [1], [0, 0, 1, 1], [], []>} : vector<64x64xbf16>, vector<64x32xbf16>, vector<64x32xf32> -> vector<64x32xf32>
    %51 = vector.extract_strided_slice %0 {offsets = [0, 96], sizes = [64, 32], strides = [1, 1]} : vector<64x128xbf16> to vector<64x32xbf16>
    %52 = vector.extract_strided_slice %1 {offsets = [0, 96], sizes = [64, 32], strides = [1, 1]} : vector<64x128xbf16> to vector<64x32xbf16>
    %53 = vector.extract_strided_slice %2 {offsets = [0, 96], sizes = [64, 32], strides = [1, 1]} : vector<64x128xbf16> to vector<64x32xbf16>
    %cst_16 = arith.constant dense<0.000000e+00> : vector<64x64xf32>
    %54 = tpu.matmul %51, %52, %cst_16 {dimension_numbers = #tpu.dot_dimension_numbers<[1], [1], [0], [0], [0, 0, 1, 0], [], []>} : vector<64x32xbf16>, vector<64x32xbf16>, vector<64x64xf32> -> vector<64x64xf32>
    %cst_17 = arith.constant dense<0xFF800000> : vector<64xf32>
    %55 = vector.multi_reduction <maximumf>, %54, %cst_17 [1] : vector<64x64xf32> to vector<64xf32>
    %56 = vector.shape_cast %55 : vector<64xf32> to vector<64x1xf32>
    %57 = vector.broadcast %56 : vector<64x1xf32> to vector<64x64xf32>
    %58 = arith.subf %54, %57 : vector<64x64xf32>
    %59 = math.exp %58 : vector<64x64xf32>
    %cst_18 = arith.constant dense<0.000000e+00> : vector<64xf32>
    %60 = vector.multi_reduction <add>, %59, %cst_18 [1] : vector<64x64xf32> to vector<64xf32>
    %61 = vector.shape_cast %60 : vector<64xf32> to vector<64x1xf32>
    %62 = tpu.reciprocal %61 {approx = true} : vector<64x1xf32> -> vector<64x1xf32>
    %63 = vector.broadcast %62 : vector<64x1xf32> to vector<64x64xf32>
    %64 = arith.mulf %59, %63 : vector<64x64xf32>
    %65 = arith.truncf %64 : vector<64x64xf32> to vector<64x64xbf16>
    %cst_19 = arith.constant dense<0.000000e+00> : vector<64x32xf32>
    %66 = tpu.matmul %65, %53, %cst_19 {dimension_numbers = #tpu.dot_dimension_numbers<[1], [0], [0], [1], [0, 0, 1, 1], [], []>} : vector<64x64xbf16>, vector<64x32xbf16>, vector<64x32xf32> -> vector<64x32xf32>
    %67 = tpu.concatenate %18, %34, %50, %66 in 1 : vector<64x32xf32>, vector<64x32xf32>, vector<64x32xf32>, vector<64x32xf32> -> vector<64x128xf32>
    %68 = arith.truncf %67 : vector<64x128xf32> to vector<64x128xbf16>
    %c0_20 = arith.constant 0 : index
    %c0_21 = arith.constant 0 : index
    %69 = vector.load %arg4[%c0_20, %c0_21] : memref<64x128xbf16, #tpu.memory_space<vmem>>, vector<64x128xbf16>
    tpu.vector_store %arg4[%c0_20, %c0_21], %68 {strides = array<i32>} : memref<64x128xbf16, #tpu.memory_space<vmem>>, vector<64x128xbf16>,
    return
  }
  func.func @transform_0(%arg0: i32) -> (i32, i32) {
    %c0_i32 = arith.constant 0 : i32
    %c0_i32_0 = arith.constant 0 : i32
    return %arg0, %c0_i32 : i32, i32
  }
  func.func @transform_1(%arg0: i32) -> (i32, i32) {
    %c1_i32 = arith.constant 1 : i32
    %c0_i32 = arith.constant 0 : i32
    return %arg0, %c1_i32 : i32, i32
  }
  func.func @transform_2(%arg0: i32) -> (i32, i32) {
    %c2_i32 = arith.constant 2 : i32
    %c0_i32 = arith.constant 0 : i32
    return %arg0, %c2_i32 : i32, i32
  }
  func.func @transform_3(%arg0: i32) -> (i32, i32) {
    %c0_i32 = arith.constant 0 : i32
    %c0_i32_0 = arith.constant 0 : i32
    return %arg0, %c0_i32 : i32, i32
  }
}

module attributes {stable_mosaic.version = 11 : i64} {
  func.func @_ln_qkv_kernel(%arg0: i32, %arg1: memref<64x128xf32, #tpu.memory_space<vmem>>, %arg2: memref<64x128xf32, #tpu.memory_space<vmem>>, %arg3: memref<1x128xf32, #tpu.memory_space<vmem>>, %arg4: memref<1x128xf32, #tpu.memory_space<vmem>>, %arg5: memref<128x256xbf16, #tpu.memory_space<vmem>>, %arg6: memref<1x256xf32, #tpu.memory_space<vmem>>, %arg7: memref<128x128xbf16, #tpu.memory_space<vmem>>, %arg8: memref<1x128xf32, #tpu.memory_space<vmem>>, %arg9: memref<64x384xbf16, #tpu.memory_space<vmem>>) attributes {dimension_semantics = [#tpu.dimension_semantics<parallel>], iteration_bounds = array<i64: 2>, scalar_prefetch = 0 : i64, scratch_operands = 0 : i64, tpu.core_type = #tpu.core_type<tc>, window_params = [{transform_indices = @transform_0, window_bounds = array<i64: 64, 128>}, {pipeline_mode = #tpu.pipeline_mode<synchronous>, transform_indices = @transform_1, window_bounds = array<i64: 64, 128>}, {pipeline_mode = #tpu.pipeline_mode<synchronous>, transform_indices = @transform_2, window_bounds = array<i64: 1, 128>}, {pipeline_mode = #tpu.pipeline_mode<synchronous>, transform_indices = @transform_3, window_bounds = array<i64: 1, 128>}, {pipeline_mode = #tpu.pipeline_mode<synchronous>, transform_indices = @transform_4, window_bounds = array<i64: 128, 256>}, {pipeline_mode = #tpu.pipeline_mode<synchronous>, transform_indices = @transform_5, window_bounds = array<i64: 1, 256>}, {pipeline_mode = #tpu.pipeline_mode<synchronous>, transform_indices = @transform_6, window_bounds = array<i64: 128, 128>}, {pipeline_mode = #tpu.pipeline_mode<synchronous>, transform_indices = @transform_7, window_bounds = array<i64: 1, 128>}, {transform_indices = @transform_8, window_bounds = array<i64: 64, 384>}]} {
    %c0 = arith.constant 0 : index
    %c0_0 = arith.constant 0 : index
    %0 = vector.load %arg1[%c0, %c0_0] : memref<64x128xf32, #tpu.memory_space<vmem>>, vector<64x128xf32>
    %c0_1 = arith.constant 0 : index
    %c0_2 = arith.constant 0 : index
    %1 = vector.load %arg3[%c0_1, %c0_2] : memref<1x128xf32, #tpu.memory_space<vmem>>, vector<1x128xf32>
    %c0_3 = arith.constant 0 : index
    %c0_4 = arith.constant 0 : index
    %2 = vector.load %arg4[%c0_3, %c0_4] : memref<1x128xf32, #tpu.memory_space<vmem>>, vector<1x128xf32>
    %cst = arith.constant dense<0.000000e+00> : vector<64xf32>
    %3 = vector.multi_reduction <add>, %0, %cst [1] : vector<64x128xf32> to vector<64xf32>
    %4 = vector.shape_cast %3 : vector<64xf32> to vector<64x1xf32>
    %cst_5 = arith.constant 1.280000e+02 : f32
    %5 = vector.broadcast %cst_5 : f32 to vector<64x1xf32>
    %6 = arith.divf %4, %5 : vector<64x1xf32>
    %7 = vector.broadcast %6 : vector<64x1xf32> to vector<64x128xf32>
    %8 = arith.subf %0, %7 : vector<64x128xf32>
    %9 = arith.mulf %8, %8 : vector<64x128xf32>
    %cst_6 = arith.constant dense<0.000000e+00> : vector<64xf32>
    %10 = vector.multi_reduction <add>, %9, %cst_6 [1] : vector<64x128xf32> to vector<64xf32>
    %11 = vector.shape_cast %10 : vector<64xf32> to vector<64x1xf32>
    %cst_7 = arith.constant 1.280000e+02 : f32
    %12 = vector.broadcast %cst_7 : f32 to vector<64x1xf32>
    %13 = arith.divf %11, %12 : vector<64x1xf32>
    %14 = vector.broadcast %6 : vector<64x1xf32> to vector<64x128xf32>
    %15 = arith.subf %0, %14 : vector<64x128xf32>
    %cst_8 = arith.constant 9.99999974E-6 : f32
    %16 = vector.broadcast %cst_8 : f32 to vector<64x1xf32>
    %17 = arith.addf %13, %16 : vector<64x1xf32>
    %18 = math.rsqrt %17 : vector<64x1xf32>
    %19 = vector.broadcast %18 : vector<64x1xf32> to vector<64x128xf32>
    %20 = arith.mulf %15, %19 : vector<64x128xf32>
    %21 = vector.broadcast %1 : vector<1x128xf32> to vector<64x128xf32>
    %22 = arith.mulf %20, %21 : vector<64x128xf32>
    %23 = vector.broadcast %2 : vector<1x128xf32> to vector<64x128xf32>
    %24 = arith.addf %22, %23 : vector<64x128xf32>
    %c0_9 = arith.constant 0 : index
    %c0_10 = arith.constant 0 : index
    %25 = vector.load %arg2[%c0_9, %c0_10] : memref<64x128xf32, #tpu.memory_space<vmem>>, vector<64x128xf32>
    %26 = arith.addf %24, %25 : vector<64x128xf32>
    %27 = arith.truncf %26 : vector<64x128xf32> to vector<64x128xbf16>
    %c0_11 = arith.constant 0 : index
    %c0_12 = arith.constant 0 : index
    %28 = vector.load %arg5[%c0_11, %c0_12] : memref<128x256xbf16, #tpu.memory_space<vmem>>, vector<128x256xbf16>
    %cst_13 = arith.constant dense<0.000000e+00> : vector<64x256xf32>
    %29 = tpu.matmul %27, %28, %cst_13 {dimension_numbers = #tpu.dot_dimension_numbers<[1], [0], [0], [1], [0, 0, 1, 1], [], []>} : vector<64x128xbf16>, vector<128x256xbf16>, vector<64x256xf32> -> vector<64x256xf32>
    %c0_14 = arith.constant 0 : index
    %c0_15 = arith.constant 0 : index
    %30 = vector.load %arg6[%c0_14, %c0_15] : memref<1x256xf32, #tpu.memory_space<vmem>>, vector<1x256xf32>
    %31 = vector.broadcast %30 : vector<1x256xf32> to vector<64x256xf32>
    %32 = arith.addf %29, %31 : vector<64x256xf32>
    %33 = arith.truncf %24 : vector<64x128xf32> to vector<64x128xbf16>
    %c0_16 = arith.constant 0 : index
    %c0_17 = arith.constant 0 : index
    %34 = vector.load %arg7[%c0_16, %c0_17] : memref<128x128xbf16, #tpu.memory_space<vmem>>, vector<128x128xbf16>
    %cst_18 = arith.constant dense<0.000000e+00> : vector<64x128xf32>
    %35 = tpu.matmul %33, %34, %cst_18 {dimension_numbers = #tpu.dot_dimension_numbers<[1], [0], [0], [1], [0, 0, 1, 1], [], []>} : vector<64x128xbf16>, vector<128x128xbf16>, vector<64x128xf32> -> vector<64x128xf32>
    %c0_19 = arith.constant 0 : index
    %c0_20 = arith.constant 0 : index
    %36 = vector.load %arg8[%c0_19, %c0_20] : memref<1x128xf32, #tpu.memory_space<vmem>>, vector<1x128xf32>
    %37 = vector.broadcast %36 : vector<1x128xf32> to vector<64x128xf32>
    %38 = arith.addf %35, %37 : vector<64x128xf32>
    %39 = arith.truncf %32 : vector<64x256xf32> to vector<64x256xbf16>
    %c0_21 = arith.constant 0 : index
    %c0_22 = arith.constant 0 : index
    %40 = vector.load %arg9[%c0_21, %c0_22] : memref<64x384xbf16, #tpu.memory_space<vmem>>, vector<64x256xbf16>
    tpu.vector_store %arg9[%c0_21, %c0_22], %39 {strides = array<i32>} : memref<64x384xbf16, #tpu.memory_space<vmem>>, vector<64x256xbf16>,
    %41 = arith.truncf %38 : vector<64x128xf32> to vector<64x128xbf16>
    %c0_23 = arith.constant 0 : index
    %c256 = arith.constant 256 : index
    %42 = vector.load %arg9[%c0_23, %c256] : memref<64x384xbf16, #tpu.memory_space<vmem>>, vector<64x128xbf16>
    tpu.vector_store %arg9[%c0_23, %c256], %41 {strides = array<i32>} : memref<64x384xbf16, #tpu.memory_space<vmem>>, vector<64x128xbf16>,
    return
  }
  func.func @transform_0(%arg0: i32) -> (i32, i32) {
    %c0_i32 = arith.constant 0 : i32
    %c0_i32_0 = arith.constant 0 : i32
    return %arg0, %c0_i32 : i32, i32
  }
  func.func @transform_1(%arg0: i32) -> (i32, i32) {
    %c0_i32 = arith.constant 0 : i32
    %c0_i32_0 = arith.constant 0 : i32
    %c0_i32_1 = arith.constant 0 : i32
    return %c0_i32, %c0_i32_0 : i32, i32
  }
  func.func @transform_2(%arg0: i32) -> (i32, i32) {
    %c0_i32 = arith.constant 0 : i32
    %c0_i32_0 = arith.constant 0 : i32
    %c0_i32_1 = arith.constant 0 : i32
    return %c0_i32, %c0_i32_0 : i32, i32
  }
  func.func @transform_3(%arg0: i32) -> (i32, i32) {
    %c0_i32 = arith.constant 0 : i32
    %c0_i32_0 = arith.constant 0 : i32
    %c0_i32_1 = arith.constant 0 : i32
    return %c0_i32, %c0_i32_0 : i32, i32
  }
  func.func @transform_4(%arg0: i32) -> (i32, i32) {
    %c0_i32 = arith.constant 0 : i32
    %c0_i32_0 = arith.constant 0 : i32
    %c0_i32_1 = arith.constant 0 : i32
    return %c0_i32, %c0_i32_0 : i32, i32
  }
  func.func @transform_5(%arg0: i32) -> (i32, i32) {
    %c0_i32 = arith.constant 0 : i32
    %c0_i32_0 = arith.constant 0 : i32
    %c0_i32_1 = arith.constant 0 : i32
    return %c0_i32, %c0_i32_0 : i32, i32
  }
  func.func @transform_6(%arg0: i32) -> (i32, i32) {
    %c0_i32 = arith.constant 0 : i32
    %c0_i32_0 = arith.constant 0 : i32
    %c0_i32_1 = arith.constant 0 : i32
    return %c0_i32, %c0_i32_0 : i32, i32
  }
  func.func @transform_7(%arg0: i32) -> (i32, i32) {
    %c0_i32 = arith.constant 0 : i32
    %c0_i32_0 = arith.constant 0 : i32
    %c0_i32_1 = arith.constant 0 : i32
    return %c0_i32, %c0_i32_0 : i32, i32
  }
  func.func @transform_8(%arg0: i32) -> (i32, i32) {
    %c0_i32 = arith.constant 0 : i32
    %c0_i32_0 = arith.constant 0 : i32
    return %arg0, %c0_i32 : i32, i32
  }
}

module attributes {stable_mosaic.version = 11 : i64} {
  func.func @_ln_pos_linear_kernel(%arg0: i32, %arg1: memref<64x128xf32, #tpu.memory_space<vmem>>, %arg2: memref<64x128xf32, #tpu.memory_space<vmem>>, %arg3: memref<1x128xf32, #tpu.memory_space<vmem>>, %arg4: memref<1x128xf32, #tpu.memory_space<vmem>>, %arg5: memref<128x128xbf16, #tpu.memory_space<vmem>>, %arg6: memref<1x128xf32, #tpu.memory_space<vmem>>, %arg7: memref<64x128xbf16, #tpu.memory_space<vmem>>) attributes {dimension_semantics = [#tpu.dimension_semantics<parallel>], iteration_bounds = array<i64: 2>, scalar_prefetch = 0 : i64, scratch_operands = 0 : i64, tpu.core_type = #tpu.core_type<tc>, window_params = [{transform_indices = @transform_0, window_bounds = array<i64: 64, 128>}, {pipeline_mode = #tpu.pipeline_mode<synchronous>, transform_indices = @transform_1, window_bounds = array<i64: 64, 128>}, {pipeline_mode = #tpu.pipeline_mode<synchronous>, transform_indices = @transform_2, window_bounds = array<i64: 1, 128>}, {pipeline_mode = #tpu.pipeline_mode<synchronous>, transform_indices = @transform_3, window_bounds = array<i64: 1, 128>}, {pipeline_mode = #tpu.pipeline_mode<synchronous>, transform_indices = @transform_4, window_bounds = array<i64: 128, 128>}, {pipeline_mode = #tpu.pipeline_mode<synchronous>, transform_indices = @transform_5, window_bounds = array<i64: 1, 128>}, {transform_indices = @transform_6, window_bounds = array<i64: 64, 128>}]} {
    %c0 = arith.constant 0 : index
    %c0_0 = arith.constant 0 : index
    %0 = vector.load %arg1[%c0, %c0_0] : memref<64x128xf32, #tpu.memory_space<vmem>>, vector<64x128xf32>
    %c0_1 = arith.constant 0 : index
    %c0_2 = arith.constant 0 : index
    %1 = vector.load %arg3[%c0_1, %c0_2] : memref<1x128xf32, #tpu.memory_space<vmem>>, vector<1x128xf32>
    %c0_3 = arith.constant 0 : index
    %c0_4 = arith.constant 0 : index
    %2 = vector.load %arg4[%c0_3, %c0_4] : memref<1x128xf32, #tpu.memory_space<vmem>>, vector<1x128xf32>
    %cst = arith.constant dense<0.000000e+00> : vector<64xf32>
    %3 = vector.multi_reduction <add>, %0, %cst [1] : vector<64x128xf32> to vector<64xf32>
    %4 = vector.shape_cast %3 : vector<64xf32> to vector<64x1xf32>
    %cst_5 = arith.constant 1.280000e+02 : f32
    %5 = vector.broadcast %cst_5 : f32 to vector<64x1xf32>
    %6 = arith.divf %4, %5 : vector<64x1xf32>
    %7 = vector.broadcast %6 : vector<64x1xf32> to vector<64x128xf32>
    %8 = arith.subf %0, %7 : vector<64x128xf32>
    %9 = arith.mulf %8, %8 : vector<64x128xf32>
    %cst_6 = arith.constant dense<0.000000e+00> : vector<64xf32>
    %10 = vector.multi_reduction <add>, %9, %cst_6 [1] : vector<64x128xf32> to vector<64xf32>
    %11 = vector.shape_cast %10 : vector<64xf32> to vector<64x1xf32>
    %cst_7 = arith.constant 1.280000e+02 : f32
    %12 = vector.broadcast %cst_7 : f32 to vector<64x1xf32>
    %13 = arith.divf %11, %12 : vector<64x1xf32>
    %14 = vector.broadcast %6 : vector<64x1xf32> to vector<64x128xf32>
    %15 = arith.subf %0, %14 : vector<64x128xf32>
    %cst_8 = arith.constant 9.99999974E-6 : f32
    %16 = vector.broadcast %cst_8 : f32 to vector<64x1xf32>
    %17 = arith.addf %13, %16 : vector<64x1xf32>
    %18 = math.rsqrt %17 : vector<64x1xf32>
    %19 = vector.broadcast %18 : vector<64x1xf32> to vector<64x128xf32>
    %20 = arith.mulf %15, %19 : vector<64x128xf32>
    %21 = vector.broadcast %1 : vector<1x128xf32> to vector<64x128xf32>
    %22 = arith.mulf %20, %21 : vector<64x128xf32>
    %23 = vector.broadcast %2 : vector<1x128xf32> to vector<64x128xf32>
    %24 = arith.addf %22, %23 : vector<64x128xf32>
    %c0_9 = arith.constant 0 : index
    %c0_10 = arith.constant 0 : index
    %25 = vector.load %arg2[%c0_9, %c0_10] : memref<64x128xf32, #tpu.memory_space<vmem>>, vector<64x128xf32>
    %26 = arith.addf %24, %25 : vector<64x128xf32>
    %27 = arith.truncf %26 : vector<64x128xf32> to vector<64x128xbf16>
    %c0_11 = arith.constant 0 : index
    %c0_12 = arith.constant 0 : index
    %28 = vector.load %arg5[%c0_11, %c0_12] : memref<128x128xbf16, #tpu.memory_space<vmem>>, vector<128x128xbf16>
    %cst_13 = arith.constant dense<0.000000e+00> : vector<64x128xf32>
    %29 = tpu.matmul %27, %28, %cst_13 {dimension_numbers = #tpu.dot_dimension_numbers<[1], [0], [0], [1], [0, 0, 1, 1], [], []>} : vector<64x128xbf16>, vector<128x128xbf16>, vector<64x128xf32> -> vector<64x128xf32>
    %c0_14 = arith.constant 0 : index
    %c0_15 = arith.constant 0 : index
    %30 = vector.load %arg6[%c0_14, %c0_15] : memref<1x128xf32, #tpu.memory_space<vmem>>, vector<1x128xf32>
    %31 = vector.broadcast %30 : vector<1x128xf32> to vector<64x128xf32>
    %32 = arith.addf %29, %31 : vector<64x128xf32>
    %33 = arith.truncf %32 : vector<64x128xf32> to vector<64x128xbf16>
    %c0_16 = arith.constant 0 : index
    %c0_17 = arith.constant 0 : index
    %34 = vector.load %arg7[%c0_16, %c0_17] : memref<64x128xbf16, #tpu.memory_space<vmem>>, vector<64x128xbf16>
    tpu.vector_store %arg7[%c0_16, %c0_17], %33 {strides = array<i32>} : memref<64x128xbf16, #tpu.memory_space<vmem>>, vector<64x128xbf16>,
    return
  }
  func.func @transform_0(%arg0: i32) -> (i32, i32) {
    %c0_i32 = arith.constant 0 : i32
    %c0_i32_0 = arith.constant 0 : i32
    return %arg0, %c0_i32 : i32, i32
  }
  func.func @transform_1(%arg0: i32) -> (i32, i32) {
    %c0_i32 = arith.constant 0 : i32
    %c0_i32_0 = arith.constant 0 : i32
    %c0_i32_1 = arith.constant 0 : i32
    return %c0_i32, %c0_i32_0 : i32, i32
  }
  func.func @transform_2(%arg0: i32) -> (i32, i32) {
    %c0_i32 = arith.constant 0 : i32
    %c0_i32_0 = arith.constant 0 : i32
    %c0_i32_1 = arith.constant 0 : i32
    return %c0_i32, %c0_i32_0 : i32, i32
  }
  func.func @transform_3(%arg0: i32) -> (i32, i32) {
    %c0_i32 = arith.constant 0 : i32
    %c0_i32_0 = arith.constant 0 : i32
    %c0_i32_1 = arith.constant 0 : i32
    return %c0_i32, %c0_i32_0 : i32, i32
  }
  func.func @transform_4(%arg0: i32) -> (i32, i32) {
    %c0_i32 = arith.constant 0 : i32
    %c0_i32_0 = arith.constant 0 : i32
    %c0_i32_1 = arith.constant 0 : i32
    return %c0_i32, %c0_i32_0 : i32, i32
  }
  func.func @transform_5(%arg0: i32) -> (i32, i32) {
    %c0_i32 = arith.constant 0 : i32
    %c0_i32_0 = arith.constant 0 : i32
    %c0_i32_1 = arith.constant 0 : i32
    return %c0_i32, %c0_i32_0 : i32, i32
  }
  func.func @transform_6(%arg0: i32) -> (i32, i32) {
    %c0_i32 = arith.constant 0 : i32
    %c0_i32_0 = arith.constant 0 : i32
    return %arg0, %c0_i32 : i32, i32
  }
}

module attributes {stable_mosaic.version = 11 : i64} {
  func.func @_pos_kv_kernel(%arg0: i32, %arg1: memref<16x128xf32, #tpu.memory_space<vmem>>, %arg2: memref<16x128xf32, #tpu.memory_space<vmem>>, %arg3: memref<128x128xbf16, #tpu.memory_space<vmem>>, %arg4: memref<1x128xf32, #tpu.memory_space<vmem>>, %arg5: memref<128x128xbf16, #tpu.memory_space<vmem>>, %arg6: memref<1x128xf32, #tpu.memory_space<vmem>>, %arg7: memref<16x256xbf16, #tpu.memory_space<vmem>>) attributes {dimension_semantics = [#tpu.dimension_semantics<parallel>], iteration_bounds = array<i64: 2>, scalar_prefetch = 0 : i64, scratch_operands = 0 : i64, tpu.core_type = #tpu.core_type<tc>, window_params = [{transform_indices = @transform_0, window_bounds = array<i64: 16, 128>}, {pipeline_mode = #tpu.pipeline_mode<synchronous>, transform_indices = @transform_1, window_bounds = array<i64: 16, 128>}, {pipeline_mode = #tpu.pipeline_mode<synchronous>, transform_indices = @transform_2, window_bounds = array<i64: 128, 128>}, {pipeline_mode = #tpu.pipeline_mode<synchronous>, transform_indices = @transform_3, window_bounds = array<i64: 1, 128>}, {pipeline_mode = #tpu.pipeline_mode<synchronous>, transform_indices = @transform_4, window_bounds = array<i64: 128, 128>}, {pipeline_mode = #tpu.pipeline_mode<synchronous>, transform_indices = @transform_5, window_bounds = array<i64: 1, 128>}, {transform_indices = @transform_6, window_bounds = array<i64: 16, 256>}]} {
    %c0 = arith.constant 0 : index
    %c0_0 = arith.constant 0 : index
    %0 = vector.load %arg1[%c0, %c0_0] : memref<16x128xf32, #tpu.memory_space<vmem>>, vector<16x128xf32>
    %c0_1 = arith.constant 0 : index
    %c0_2 = arith.constant 0 : index
    %1 = vector.load %arg2[%c0_1, %c0_2] : memref<16x128xf32, #tpu.memory_space<vmem>>, vector<16x128xf32>
    %2 = arith.addf %0, %1 : vector<16x128xf32>
    %3 = arith.truncf %2 : vector<16x128xf32> to vector<16x128xbf16>
    %c0_3 = arith.constant 0 : index
    %c0_4 = arith.constant 0 : index
    %4 = vector.load %arg3[%c0_3, %c0_4] : memref<128x128xbf16, #tpu.memory_space<vmem>>, vector<128x128xbf16>
    %cst = arith.constant dense<0.000000e+00> : vector<16x128xf32>
    %5 = tpu.matmul %3, %4, %cst {dimension_numbers = #tpu.dot_dimension_numbers<[1], [0], [0], [1], [0, 0, 1, 1], [], []>} : vector<16x128xbf16>, vector<128x128xbf16>, vector<16x128xf32> -> vector<16x128xf32>
    %c0_5 = arith.constant 0 : index
    %c0_6 = arith.constant 0 : index
    %6 = vector.load %arg4[%c0_5, %c0_6] : memref<1x128xf32, #tpu.memory_space<vmem>>, vector<1x128xf32>
    %7 = vector.broadcast %6 : vector<1x128xf32> to vector<16x128xf32>
    %8 = arith.addf %5, %7 : vector<16x128xf32>
    %9 = arith.truncf %0 : vector<16x128xf32> to vector<16x128xbf16>
    %c0_7 = arith.constant 0 : index
    %c0_8 = arith.constant 0 : index
    %10 = vector.load %arg5[%c0_7, %c0_8] : memref<128x128xbf16, #tpu.memory_space<vmem>>, vector<128x128xbf16>
    %cst_9 = arith.constant dense<0.000000e+00> : vector<16x128xf32>
    %11 = tpu.matmul %9, %10, %cst_9 {dimension_numbers = #tpu.dot_dimension_numbers<[1], [0], [0], [1], [0, 0, 1, 1], [], []>} : vector<16x128xbf16>, vector<128x128xbf16>, vector<16x128xf32> -> vector<16x128xf32>
    %c0_10 = arith.constant 0 : index
    %c0_11 = arith.constant 0 : index
    %12 = vector.load %arg6[%c0_10, %c0_11] : memref<1x128xf32, #tpu.memory_space<vmem>>, vector<1x128xf32>
    %13 = vector.broadcast %12 : vector<1x128xf32> to vector<16x128xf32>
    %14 = arith.addf %11, %13 : vector<16x128xf32>
    %15 = arith.truncf %8 : vector<16x128xf32> to vector<16x128xbf16>
    %c0_12 = arith.constant 0 : index
    %c0_13 = arith.constant 0 : index
    %16 = vector.load %arg7[%c0_12, %c0_13] : memref<16x256xbf16, #tpu.memory_space<vmem>>, vector<16x128xbf16>
    tpu.vector_store %arg7[%c0_12, %c0_13], %15 {strides = array<i32>} : memref<16x256xbf16, #tpu.memory_space<vmem>>, vector<16x128xbf16>,
    %17 = arith.truncf %14 : vector<16x128xf32> to vector<16x128xbf16>
    %c0_14 = arith.constant 0 : index
    %c128 = arith.constant 128 : index
    %18 = vector.load %arg7[%c0_14, %c128] : memref<16x256xbf16, #tpu.memory_space<vmem>>, vector<16x128xbf16>
    tpu.vector_store %arg7[%c0_14, %c128], %17 {strides = array<i32>} : memref<16x256xbf16, #tpu.memory_space<vmem>>, vector<16x128xbf16>,
    return
  }
  func.func @transform_0(%arg0: i32) -> (i32, i32) {
    %c0_i32 = arith.constant 0 : i32
    %c0_i32_0 = arith.constant 0 : i32
    return %arg0, %c0_i32 : i32, i32
  }
  func.func @transform_1(%arg0: i32) -> (i32, i32) {
    %c0_i32 = arith.constant 0 : i32
    %c0_i32_0 = arith.constant 0 : i32
    %c0_i32_1 = arith.constant 0 : i32
    return %c0_i32, %c0_i32_0 : i32, i32
  }
  func.func @transform_2(%arg0: i32) -> (i32, i32) {
    %c0_i32 = arith.constant 0 : i32
    %c0_i32_0 = arith.constant 0 : i32
    %c0_i32_1 = arith.constant 0 : i32
    return %c0_i32, %c0_i32_0 : i32, i32
  }
  func.func @transform_3(%arg0: i32) -> (i32, i32) {
    %c0_i32 = arith.constant 0 : i32
    %c0_i32_0 = arith.constant 0 : i32
    %c0_i32_1 = arith.constant 0 : i32
    return %c0_i32, %c0_i32_0 : i32, i32
  }
  func.func @transform_4(%arg0: i32) -> (i32, i32) {
    %c0_i32 = arith.constant 0 : i32
    %c0_i32_0 = arith.constant 0 : i32
    %c0_i32_1 = arith.constant 0 : i32
    return %c0_i32, %c0_i32_0 : i32, i32
  }
  func.func @transform_5(%arg0: i32) -> (i32, i32) {
    %c0_i32 = arith.constant 0 : i32
    %c0_i32_0 = arith.constant 0 : i32
    %c0_i32_1 = arith.constant 0 : i32
    return %c0_i32, %c0_i32_0 : i32, i32
  }
  func.func @transform_6(%arg0: i32) -> (i32, i32) {
    %c0_i32 = arith.constant 0 : i32
    %c0_i32_0 = arith.constant 0 : i32
    return %arg0, %c0_i32 : i32, i32
  }
}

module attributes {stable_mosaic.version = 11 : i64} {
  func.func @_cross_attn_kernel(%arg0: i32, %arg1: memref<2x16xf32, #tpu.memory_space<vmem>>, %arg2: memref<64x128xbf16, #tpu.memory_space<vmem>>, %arg3: memref<16x128xbf16, #tpu.memory_space<vmem>>, %arg4: memref<16x128xbf16, #tpu.memory_space<vmem>>, %arg5: memref<64x128xbf16, #tpu.memory_space<vmem>>) attributes {dimension_semantics = [#tpu.dimension_semantics<parallel>], iteration_bounds = array<i64: 2>, scalar_prefetch = 0 : i64, scratch_operands = 0 : i64, tpu.core_type = #tpu.core_type<tc>, window_params = [{pipeline_mode = #tpu.pipeline_mode<synchronous>, transform_indices = @transform_0, window_bounds = array<i64: 2, 16>}, {transform_indices = @transform_1, window_bounds = array<i64: 64, 128>}, {transform_indices = @transform_2, window_bounds = array<i64: 16, 128>}, {transform_indices = @transform_3, window_bounds = array<i64: 16, 128>}, {transform_indices = @transform_4, window_bounds = array<i64: 64, 128>}]} {
    %0 = arith.index_cast %arg0 : i32 to index
    %c0 = arith.constant 0 : index
    %1 = vector.load %arg1[%0, %c0] : memref<2x16xf32, #tpu.memory_space<vmem>>, vector<1x16xf32>
    %c0_0 = arith.constant 0 : index
    %c0_1 = arith.constant 0 : index
    %2 = vector.load %arg2[%c0_0, %c0_1] : memref<64x128xbf16, #tpu.memory_space<vmem>>, vector<64x128xbf16>
    %c0_2 = arith.constant 0 : index
    %c0_3 = arith.constant 0 : index
    %3 = vector.load %arg3[%c0_2, %c0_3] : memref<16x128xbf16, #tpu.memory_space<vmem>>, vector<16x128xbf16>
    %c0_4 = arith.constant 0 : index
    %c0_5 = arith.constant 0 : index
    %4 = vector.load %arg4[%c0_4, %c0_5] : memref<16x128xbf16, #tpu.memory_space<vmem>>, vector<16x128xbf16>
    %5 = vector.extract_strided_slice %2 {offsets = [0, 0], sizes = [64, 32], strides = [1, 1]} : vector<64x128xbf16> to vector<64x32xbf16>
    %6 = vector.extract_strided_slice %3 {offsets = [0, 0], sizes = [16, 32], strides = [1, 1]} : vector<16x128xbf16> to vector<16x32xbf16>
    %7 = vector.extract_strided_slice %4 {offsets = [0, 0], sizes = [16, 32], strides = [1, 1]} : vector<16x128xbf16> to vector<16x32xbf16>
    %cst = arith.constant dense<0.000000e+00> : vector<64x16xf32>
    %8 = tpu.matmul %5, %6, %cst {dimension_numbers = #tpu.dot_dimension_numbers<[1], [1], [0], [0], [0, 0, 1, 0], [], []>} : vector<64x32xbf16>, vector<16x32xbf16>, vector<64x16xf32> -> vector<64x16xf32>
    %9 = vector.broadcast %1 : vector<1x16xf32> to vector<64x16xf32>
    %10 = arith.addf %8, %9 : vector<64x16xf32>
    %cst_6 = arith.constant dense<0xFF800000> : vector<64xf32>
    %11 = vector.multi_reduction <maximumf>, %10, %cst_6 [1] : vector<64x16xf32> to vector<64xf32>
    %12 = vector.shape_cast %11 : vector<64xf32> to vector<64x1xf32>
    %13 = vector.broadcast %12 : vector<64x1xf32> to vector<64x16xf32>
    %14 = arith.subf %10, %13 : vector<64x16xf32>
    %15 = math.exp %14 : vector<64x16xf32>
    %cst_7 = arith.constant dense<0.000000e+00> : vector<64xf32>
    %16 = vector.multi_reduction <add>, %15, %cst_7 [1] : vector<64x16xf32> to vector<64xf32>
    %17 = vector.shape_cast %16 : vector<64xf32> to vector<64x1xf32>
    %18 = tpu.reciprocal %17 {approx = true} : vector<64x1xf32> -> vector<64x1xf32>
    %19 = vector.broadcast %18 : vector<64x1xf32> to vector<64x16xf32>
    %20 = arith.mulf %15, %19 : vector<64x16xf32>
    %21 = arith.truncf %20 : vector<64x16xf32> to vector<64x16xbf16>
    %cst_8 = arith.constant dense<0.000000e+00> : vector<64x32xf32>
    %22 = tpu.matmul %21, %7, %cst_8 {dimension_numbers = #tpu.dot_dimension_numbers<[1], [0], [0], [1], [0, 0, 1, 1], [], []>} : vector<64x16xbf16>, vector<16x32xbf16>, vector<64x32xf32> -> vector<64x32xf32>
    %23 = vector.extract_strided_slice %2 {offsets = [0, 32], sizes = [64, 32], strides = [1, 1]} : vector<64x128xbf16> to vector<64x32xbf16>
    %24 = vector.extract_strided_slice %3 {offsets = [0, 32], sizes = [16, 32], strides = [1, 1]} : vector<16x128xbf16> to vector<16x32xbf16>
    %25 = vector.extract_strided_slice %4 {offsets = [0, 32], sizes = [16, 32], strides = [1, 1]} : vector<16x128xbf16> to vector<16x32xbf16>
    %cst_9 = arith.constant dense<0.000000e+00> : vector<64x16xf32>
    %26 = tpu.matmul %23, %24, %cst_9 {dimension_numbers = #tpu.dot_dimension_numbers<[1], [1], [0], [0], [0, 0, 1, 0], [], []>} : vector<64x32xbf16>, vector<16x32xbf16>, vector<64x16xf32> -> vector<64x16xf32>
    %27 = vector.broadcast %1 : vector<1x16xf32> to vector<64x16xf32>
    %28 = arith.addf %26, %27 : vector<64x16xf32>
    %cst_10 = arith.constant dense<0xFF800000> : vector<64xf32>
    %29 = vector.multi_reduction <maximumf>, %28, %cst_10 [1] : vector<64x16xf32> to vector<64xf32>
    %30 = vector.shape_cast %29 : vector<64xf32> to vector<64x1xf32>
    %31 = vector.broadcast %30 : vector<64x1xf32> to vector<64x16xf32>
    %32 = arith.subf %28, %31 : vector<64x16xf32>
    %33 = math.exp %32 : vector<64x16xf32>
    %cst_11 = arith.constant dense<0.000000e+00> : vector<64xf32>
    %34 = vector.multi_reduction <add>, %33, %cst_11 [1] : vector<64x16xf32> to vector<64xf32>
    %35 = vector.shape_cast %34 : vector<64xf32> to vector<64x1xf32>
    %36 = tpu.reciprocal %35 {approx = true} : vector<64x1xf32> -> vector<64x1xf32>
    %37 = vector.broadcast %36 : vector<64x1xf32> to vector<64x16xf32>
    %38 = arith.mulf %33, %37 : vector<64x16xf32>
    %39 = arith.truncf %38 : vector<64x16xf32> to vector<64x16xbf16>
    %cst_12 = arith.constant dense<0.000000e+00> : vector<64x32xf32>
    %40 = tpu.matmul %39, %25, %cst_12 {dimension_numbers = #tpu.dot_dimension_numbers<[1], [0], [0], [1], [0, 0, 1, 1], [], []>} : vector<64x16xbf16>, vector<16x32xbf16>, vector<64x32xf32> -> vector<64x32xf32>
    %41 = vector.extract_strided_slice %2 {offsets = [0, 64], sizes = [64, 32], strides = [1, 1]} : vector<64x128xbf16> to vector<64x32xbf16>
    %42 = vector.extract_strided_slice %3 {offsets = [0, 64], sizes = [16, 32], strides = [1, 1]} : vector<16x128xbf16> to vector<16x32xbf16>
    %43 = vector.extract_strided_slice %4 {offsets = [0, 64], sizes = [16, 32], strides = [1, 1]} : vector<16x128xbf16> to vector<16x32xbf16>
    %cst_13 = arith.constant dense<0.000000e+00> : vector<64x16xf32>
    %44 = tpu.matmul %41, %42, %cst_13 {dimension_numbers = #tpu.dot_dimension_numbers<[1], [1], [0], [0], [0, 0, 1, 0], [], []>} : vector<64x32xbf16>, vector<16x32xbf16>, vector<64x16xf32> -> vector<64x16xf32>
    %45 = vector.broadcast %1 : vector<1x16xf32> to vector<64x16xf32>
    %46 = arith.addf %44, %45 : vector<64x16xf32>
    %cst_14 = arith.constant dense<0xFF800000> : vector<64xf32>
    %47 = vector.multi_reduction <maximumf>, %46, %cst_14 [1] : vector<64x16xf32> to vector<64xf32>
    %48 = vector.shape_cast %47 : vector<64xf32> to vector<64x1xf32>
    %49 = vector.broadcast %48 : vector<64x1xf32> to vector<64x16xf32>
    %50 = arith.subf %46, %49 : vector<64x16xf32>
    %51 = math.exp %50 : vector<64x16xf32>
    %cst_15 = arith.constant dense<0.000000e+00> : vector<64xf32>
    %52 = vector.multi_reduction <add>, %51, %cst_15 [1] : vector<64x16xf32> to vector<64xf32>
    %53 = vector.shape_cast %52 : vector<64xf32> to vector<64x1xf32>
    %54 = tpu.reciprocal %53 {approx = true} : vector<64x1xf32> -> vector<64x1xf32>
    %55 = vector.broadcast %54 : vector<64x1xf32> to vector<64x16xf32>
    %56 = arith.mulf %51, %55 : vector<64x16xf32>
    %57 = arith.truncf %56 : vector<64x16xf32> to vector<64x16xbf16>
    %cst_16 = arith.constant dense<0.000000e+00> : vector<64x32xf32>
    %58 = tpu.matmul %57, %43, %cst_16 {dimension_numbers = #tpu.dot_dimension_numbers<[1], [0], [0], [1], [0, 0, 1, 1], [], []>} : vector<64x16xbf16>, vector<16x32xbf16>, vector<64x32xf32> -> vector<64x32xf32>
    %59 = vector.extract_strided_slice %2 {offsets = [0, 96], sizes = [64, 32], strides = [1, 1]} : vector<64x128xbf16> to vector<64x32xbf16>
    %60 = vector.extract_strided_slice %3 {offsets = [0, 96], sizes = [16, 32], strides = [1, 1]} : vector<16x128xbf16> to vector<16x32xbf16>
    %61 = vector.extract_strided_slice %4 {offsets = [0, 96], sizes = [16, 32], strides = [1, 1]} : vector<16x128xbf16> to vector<16x32xbf16>
    %cst_17 = arith.constant dense<0.000000e+00> : vector<64x16xf32>
    %62 = tpu.matmul %59, %60, %cst_17 {dimension_numbers = #tpu.dot_dimension_numbers<[1], [1], [0], [0], [0, 0, 1, 0], [], []>} : vector<64x32xbf16>, vector<16x32xbf16>, vector<64x16xf32> -> vector<64x16xf32>
    %63 = vector.broadcast %1 : vector<1x16xf32> to vector<64x16xf32>
    %64 = arith.addf %62, %63 : vector<64x16xf32>
    %cst_18 = arith.constant dense<0xFF800000> : vector<64xf32>
    %65 = vector.multi_reduction <maximumf>, %64, %cst_18 [1] : vector<64x16xf32> to vector<64xf32>
    %66 = vector.shape_cast %65 : vector<64xf32> to vector<64x1xf32>
    %67 = vector.broadcast %66 : vector<64x1xf32> to vector<64x16xf32>
    %68 = arith.subf %64, %67 : vector<64x16xf32>
    %69 = math.exp %68 : vector<64x16xf32>
    %cst_19 = arith.constant dense<0.000000e+00> : vector<64xf32>
    %70 = vector.multi_reduction <add>, %69, %cst_19 [1] : vector<64x16xf32> to vector<64xf32>
    %71 = vector.shape_cast %70 : vector<64xf32> to vector<64x1xf32>
    %72 = tpu.reciprocal %71 {approx = true} : vector<64x1xf32> -> vector<64x1xf32>
    %73 = vector.broadcast %72 : vector<64x1xf32> to vector<64x16xf32>
    %74 = arith.mulf %69, %73 : vector<64x16xf32>
    %75 = arith.truncf %74 : vector<64x16xf32> to vector<64x16xbf16>
    %cst_20 = arith.constant dense<0.000000e+00> : vector<64x32xf32>
    %76 = tpu.matmul %75, %61, %cst_20 {dimension_numbers = #tpu.dot_dimension_numbers<[1], [0], [0], [1], [0, 0, 1, 1], [], []>} : vector<64x16xbf16>, vector<16x32xbf16>, vector<64x32xf32> -> vector<64x32xf32>
    %77 = tpu.concatenate %22, %40, %58, %76 in 1 : vector<64x32xf32>, vector<64x32xf32>, vector<64x32xf32>, vector<64x32xf32> -> vector<64x128xf32>
    %78 = arith.truncf %77 : vector<64x128xf32> to vector<64x128xbf16>
    %c0_21 = arith.constant 0 : index
    %c0_22 = arith.constant 0 : index
    %79 = vector.load %arg5[%c0_21, %c0_22] : memref<64x128xbf16, #tpu.memory_space<vmem>>, vector<64x128xbf16>
    tpu.vector_store %arg5[%c0_21, %c0_22], %78 {strides = array<i32>} : memref<64x128xbf16, #tpu.memory_space<vmem>>, vector<64x128xbf16>,
    return
  }
  func.func @transform_0(%arg0: i32) -> (i32, i32) {
    %c0_i32 = arith.constant 0 : i32
    %c0_i32_0 = arith.constant 0 : i32
    %c0_i32_1 = arith.constant 0 : i32
    return %c0_i32, %c0_i32_0 : i32, i32
  }
  func.func @transform_1(%arg0: i32) -> (i32, i32) {
    %c0_i32 = arith.constant 0 : i32
    %c0_i32_0 = arith.constant 0 : i32
    return %arg0, %c0_i32 : i32, i32
  }
  func.func @transform_2(%arg0: i32) -> (i32, i32) {
    %c0_i32 = arith.constant 0 : i32
    %c0_i32_0 = arith.constant 0 : i32
    return %arg0, %c0_i32 : i32, i32
  }
  func.func @transform_3(%arg0: i32) -> (i32, i32) {
    %c1_i32 = arith.constant 1 : i32
    %c0_i32 = arith.constant 0 : i32
    return %arg0, %c1_i32 : i32, i32
  }
  func.func @transform_4(%arg0: i32) -> (i32, i32) {
    %c0_i32 = arith.constant 0 : i32
    %c0_i32_0 = arith.constant 0 : i32
    return %arg0, %c0_i32 : i32, i32
  }
}

module attributes {stable_mosaic.version = 11 : i64} {
  func.func @_ffn_kernel(%arg0: i32, %arg1: memref<64x128xf32, #tpu.memory_space<vmem>>, %arg2: memref<1x128xf32, #tpu.memory_space<vmem>>, %arg3: memref<1x128xf32, #tpu.memory_space<vmem>>, %arg4: memref<128x256xbf16, #tpu.memory_space<vmem>>, %arg5: memref<1x256xf32, #tpu.memory_space<vmem>>, %arg6: memref<1x256xf32, #tpu.memory_space<vmem>>, %arg7: memref<1x256xf32, #tpu.memory_space<vmem>>, %arg8: memref<256x128xbf16, #tpu.memory_space<vmem>>, %arg9: memref<1x128xf32, #tpu.memory_space<vmem>>, %arg10: memref<64x128xf32, #tpu.memory_space<vmem>>) attributes {dimension_semantics = [#tpu.dimension_semantics<parallel>], iteration_bounds = array<i64: 2>, scalar_prefetch = 0 : i64, scratch_operands = 0 : i64, tpu.core_type = #tpu.core_type<tc>, window_params = [{transform_indices = @transform_0, window_bounds = array<i64: 64, 128>}, {pipeline_mode = #tpu.pipeline_mode<synchronous>, transform_indices = @transform_1, window_bounds = array<i64: 1, 128>}, {pipeline_mode = #tpu.pipeline_mode<synchronous>, transform_indices = @transform_2, window_bounds = array<i64: 1, 128>}, {pipeline_mode = #tpu.pipeline_mode<synchronous>, transform_indices = @transform_3, window_bounds = array<i64: 128, 256>}, {pipeline_mode = #tpu.pipeline_mode<synchronous>, transform_indices = @transform_4, window_bounds = array<i64: 1, 256>}, {pipeline_mode = #tpu.pipeline_mode<synchronous>, transform_indices = @transform_5, window_bounds = array<i64: 1, 256>}, {pipeline_mode = #tpu.pipeline_mode<synchronous>, transform_indices = @transform_6, window_bounds = array<i64: 1, 256>}, {pipeline_mode = #tpu.pipeline_mode<synchronous>, transform_indices = @transform_7, window_bounds = array<i64: 256, 128>}, {pipeline_mode = #tpu.pipeline_mode<synchronous>, transform_indices = @transform_8, window_bounds = array<i64: 1, 128>}, {transform_indices = @transform_9, window_bounds = array<i64: 64, 128>}]} {
    %c0 = arith.constant 0 : index
    %c0_0 = arith.constant 0 : index
    %0 = vector.load %arg1[%c0, %c0_0] : memref<64x128xf32, #tpu.memory_space<vmem>>, vector<64x128xf32>
    %c0_1 = arith.constant 0 : index
    %c0_2 = arith.constant 0 : index
    %1 = vector.load %arg2[%c0_1, %c0_2] : memref<1x128xf32, #tpu.memory_space<vmem>>, vector<1x128xf32>
    %c0_3 = arith.constant 0 : index
    %c0_4 = arith.constant 0 : index
    %2 = vector.load %arg3[%c0_3, %c0_4] : memref<1x128xf32, #tpu.memory_space<vmem>>, vector<1x128xf32>
    %cst = arith.constant dense<0.000000e+00> : vector<64xf32>
    %3 = vector.multi_reduction <add>, %0, %cst [1] : vector<64x128xf32> to vector<64xf32>
    %4 = vector.shape_cast %3 : vector<64xf32> to vector<64x1xf32>
    %cst_5 = arith.constant 1.280000e+02 : f32
    %5 = vector.broadcast %cst_5 : f32 to vector<64x1xf32>
    %6 = arith.divf %4, %5 : vector<64x1xf32>
    %7 = vector.broadcast %6 : vector<64x1xf32> to vector<64x128xf32>
    %8 = arith.subf %0, %7 : vector<64x128xf32>
    %9 = arith.mulf %8, %8 : vector<64x128xf32>
    %cst_6 = arith.constant dense<0.000000e+00> : vector<64xf32>
    %10 = vector.multi_reduction <add>, %9, %cst_6 [1] : vector<64x128xf32> to vector<64xf32>
    %11 = vector.shape_cast %10 : vector<64xf32> to vector<64x1xf32>
    %cst_7 = arith.constant 1.280000e+02 : f32
    %12 = vector.broadcast %cst_7 : f32 to vector<64x1xf32>
    %13 = arith.divf %11, %12 : vector<64x1xf32>
    %14 = vector.broadcast %6 : vector<64x1xf32> to vector<64x128xf32>
    %15 = arith.subf %0, %14 : vector<64x128xf32>
    %cst_8 = arith.constant 9.99999974E-6 : f32
    %16 = vector.broadcast %cst_8 : f32 to vector<64x1xf32>
    %17 = arith.addf %13, %16 : vector<64x1xf32>
    %18 = math.rsqrt %17 : vector<64x1xf32>
    %19 = vector.broadcast %18 : vector<64x1xf32> to vector<64x128xf32>
    %20 = arith.mulf %15, %19 : vector<64x128xf32>
    %21 = vector.broadcast %1 : vector<1x128xf32> to vector<64x128xf32>
    %22 = arith.mulf %20, %21 : vector<64x128xf32>
    %23 = vector.broadcast %2 : vector<1x128xf32> to vector<64x128xf32>
    %24 = arith.addf %22, %23 : vector<64x128xf32>
    %25 = arith.truncf %24 : vector<64x128xf32> to vector<64x128xbf16>
    %c0_9 = arith.constant 0 : index
    %c0_10 = arith.constant 0 : index
    %26 = vector.load %arg4[%c0_9, %c0_10] : memref<128x256xbf16, #tpu.memory_space<vmem>>, vector<128x256xbf16>
    %cst_11 = arith.constant dense<0.000000e+00> : vector<64x256xf32>
    %27 = tpu.matmul %25, %26, %cst_11 {dimension_numbers = #tpu.dot_dimension_numbers<[1], [0], [0], [1], [0, 0, 1, 1], [], []>} : vector<64x128xbf16>, vector<128x256xbf16>, vector<64x256xf32> -> vector<64x256xf32>
    %c0_12 = arith.constant 0 : index
    %c0_13 = arith.constant 0 : index
    %28 = vector.load %arg5[%c0_12, %c0_13] : memref<1x256xf32, #tpu.memory_space<vmem>>, vector<1x256xf32>
    %29 = vector.broadcast %28 : vector<1x256xf32> to vector<64x256xf32>
    %30 = arith.addf %27, %29 : vector<64x256xf32>
    %cst_14 = arith.constant 0.000000e+00 : f32
    %31 = vector.broadcast %cst_14 : f32 to vector<64x256xf32>
    %32 = arith.maximumf %30, %31 : vector<64x256xf32>
    %c0_15 = arith.constant 0 : index
    %c0_16 = arith.constant 0 : index
    %33 = vector.load %arg6[%c0_15, %c0_16] : memref<1x256xf32, #tpu.memory_space<vmem>>, vector<1x256xf32>
    %c0_17 = arith.constant 0 : index
    %c0_18 = arith.constant 0 : index
    %34 = vector.load %arg7[%c0_17, %c0_18] : memref<1x256xf32, #tpu.memory_space<vmem>>, vector<1x256xf32>
    %cst_19 = arith.constant dense<0.000000e+00> : vector<64xf32>
    %35 = vector.multi_reduction <add>, %32, %cst_19 [1] : vector<64x256xf32> to vector<64xf32>
    %36 = vector.shape_cast %35 : vector<64xf32> to vector<64x1xf32>
    %cst_20 = arith.constant 2.560000e+02 : f32
    %37 = vector.broadcast %cst_20 : f32 to vector<64x1xf32>
    %38 = arith.divf %36, %37 : vector<64x1xf32>
    %39 = vector.broadcast %38 : vector<64x1xf32> to vector<64x256xf32>
    %40 = arith.subf %32, %39 : vector<64x256xf32>
    %41 = arith.mulf %40, %40 : vector<64x256xf32>
    %cst_21 = arith.constant dense<0.000000e+00> : vector<64xf32>
    %42 = vector.multi_reduction <add>, %41, %cst_21 [1] : vector<64x256xf32> to vector<64xf32>
    %43 = vector.shape_cast %42 : vector<64xf32> to vector<64x1xf32>
    %cst_22 = arith.constant 2.560000e+02 : f32
    %44 = vector.broadcast %cst_22 : f32 to vector<64x1xf32>
    %45 = arith.divf %43, %44 : vector<64x1xf32>
    %46 = vector.broadcast %38 : vector<64x1xf32> to vector<64x256xf32>
    %47 = arith.subf %32, %46 : vector<64x256xf32>
    %cst_23 = arith.constant 9.99999974E-6 : f32
    %48 = vector.broadcast %cst_23 : f32 to vector<64x1xf32>
    %49 = arith.addf %45, %48 : vector<64x1xf32>
    %50 = math.rsqrt %49 : vector<64x1xf32>
    %51 = vector.broadcast %50 : vector<64x1xf32> to vector<64x256xf32>
    %52 = arith.mulf %47, %51 : vector<64x256xf32>
    %53 = vector.broadcast %33 : vector<1x256xf32> to vector<64x256xf32>
    %54 = arith.mulf %52, %53 : vector<64x256xf32>
    %55 = vector.broadcast %34 : vector<1x256xf32> to vector<64x256xf32>
    %56 = arith.addf %54, %55 : vector<64x256xf32>
    %57 = arith.truncf %56 : vector<64x256xf32> to vector<64x256xbf16>
    %c0_24 = arith.constant 0 : index
    %c0_25 = arith.constant 0 : index
    %58 = vector.load %arg8[%c0_24, %c0_25] : memref<256x128xbf16, #tpu.memory_space<vmem>>, vector<256x128xbf16>
    %cst_26 = arith.constant dense<0.000000e+00> : vector<64x128xf32>
    %59 = tpu.matmul %57, %58, %cst_26 {dimension_numbers = #tpu.dot_dimension_numbers<[1], [0], [0], [1], [0, 0, 1, 1], [], []>} : vector<64x256xbf16>, vector<256x128xbf16>, vector<64x128xf32> -> vector<64x128xf32>
    %c0_27 = arith.constant 0 : index
    %c0_28 = arith.constant 0 : index
    %60 = vector.load %arg9[%c0_27, %c0_28] : memref<1x128xf32, #tpu.memory_space<vmem>>, vector<1x128xf32>
    %61 = vector.broadcast %60 : vector<1x128xf32> to vector<64x128xf32>
    %62 = arith.addf %59, %61 : vector<64x128xf32>
    %63 = arith.addf %0, %62 : vector<64x128xf32>
    %c0_29 = arith.constant 0 : index
    %c0_30 = arith.constant 0 : index
    %64 = vector.load %arg10[%c0_29, %c0_30] : memref<64x128xf32, #tpu.memory_space<vmem>>, vector<64x128xf32>
    tpu.vector_store %arg10[%c0_29, %c0_30], %63 {strides = array<i32>} : memref<64x128xf32, #tpu.memory_space<vmem>>, vector<64x128xf32>,
    return
  }
  func.func @transform_0(%arg0: i32) -> (i32, i32) {
    %c0_i32 = arith.constant 0 : i32
    %c0_i32_0 = arith.constant 0 : i32
    return %arg0, %c0_i32 : i32, i32
  }
  func.func @transform_1(%arg0: i32) -> (i32, i32) {
    %c0_i32 = arith.constant 0 : i32
    %c0_i32_0 = arith.constant 0 : i32
    %c0_i32_1 = arith.constant 0 : i32
    return %c0_i32, %c0_i32_0 : i32, i32
  }
  func.func @transform_2(%arg0: i32) -> (i32, i32) {
    %c0_i32 = arith.constant 0 : i32
    %c0_i32_0 = arith.constant 0 : i32
    %c0_i32_1 = arith.constant 0 : i32
    return %c0_i32, %c0_i32_0 : i32, i32
  }
  func.func @transform_3(%arg0: i32) -> (i32, i32) {
    %c0_i32 = arith.constant 0 : i32
    %c0_i32_0 = arith.constant 0 : i32
    %c0_i32_1 = arith.constant 0 : i32
    return %c0_i32, %c0_i32_0 : i32, i32
  }
  func.func @transform_4(%arg0: i32) -> (i32, i32) {
    %c0_i32 = arith.constant 0 : i32
    %c0_i32_0 = arith.constant 0 : i32
    %c0_i32_1 = arith.constant 0 : i32
    return %c0_i32, %c0_i32_0 : i32, i32
  }
  func.func @transform_5(%arg0: i32) -> (i32, i32) {
    %c0_i32 = arith.constant 0 : i32
    %c0_i32_0 = arith.constant 0 : i32
    %c0_i32_1 = arith.constant 0 : i32
    return %c0_i32, %c0_i32_0 : i32, i32
  }
  func.func @transform_6(%arg0: i32) -> (i32, i32) {
    %c0_i32 = arith.constant 0 : i32
    %c0_i32_0 = arith.constant 0 : i32
    %c0_i32_1 = arith.constant 0 : i32
    return %c0_i32, %c0_i32_0 : i32, i32
  }
  func.func @transform_7(%arg0: i32) -> (i32, i32) {
    %c0_i32 = arith.constant 0 : i32
    %c0_i32_0 = arith.constant 0 : i32
    %c0_i32_1 = arith.constant 0 : i32
    return %c0_i32, %c0_i32_0 : i32, i32
  }
  func.func @transform_8(%arg0: i32) -> (i32, i32) {
    %c0_i32 = arith.constant 0 : i32
    %c0_i32_0 = arith.constant 0 : i32
    %c0_i32_1 = arith.constant 0 : i32
    return %c0_i32, %c0_i32_0 : i32, i32
  }
  func.func @transform_9(%arg0: i32) -> (i32, i32) {
    %c0_i32 = arith.constant 0 : i32
    %c0_i32_0 = arith.constant 0 : i32
    return %arg0, %c0_i32 : i32, i32
  }
}

</mosaic_0001>

<bundles_post_ra>
// kernel: decoder_layer.10
= control target key start
LH: loop header
LB: loop body
LE: loop exit
PB: predicated region body
PF: predicated region fallthrough
CT: control target
= control target key end

     0   :  { %s816_s21 = smov 0   ;;  %s939_s0 = inlined_call_operand.vmem [shape: bf16[128,128], index: 0, kind: input, shape index: {}]   ;;  %s940_s1 = inlined_call_operand.vmem [shape: f32[128,128], index: 1, kind: input, shape index: {}]   ;;  %s941_s2 = inlined_call_operand.vmem [shape: bf16[128,128], index: 2, kind: input, shape index: {}]   ;;  %s942_s3 = inlined_call_operand.vmem [shape: f32[1,128], index: 3, kind: input, shape index: {}]   ;;  %s943_s4 = inlined_call_operand.vmem [shape: f32[1,128], index: 4, kind: input, shape index: {}]   ;;  %s944_s5 = inlined_call_operand.vmem [shape: f32[1,128], index: 5, kind: input, shape index: {}]   ;;  %s945_s6 = inlined_call_operand.vmem [shape: f32[128,128], index: 6, kind: output, shape index: {}]  }
   0x1 LB: > { %s657_s22 = sadd.s32 4294967295, %s779_s21   ;;  %p661_p0 = scmp.ge.s32.totalorder %s779_s21, 1  ;;  %s779_s21 = sphi %s816_s21, %s16_s21  }
   0x2   : > { %p224_p1 = scmp.lt.s32.totalorder %s779_s21, 3 }
   0x4   : > { %p225_p2 = pnand %p661_p0, %p224_p1 }
   0x5   : > { %s662_s25 = sshll.u32 (!%p225_p2), %s657_s22, 3 }
   0x6   : > { %228 = sbr.rel (%p225_p2) target bundleno = 566 (0x236), region = 44  ;;  %p260_p3 = scmp.lt.s32.totalorder (!%p225_p2), %s662_s25, 15 }
   0xb   : > { %v745_v0 = vld [vmem:[%s941_s2 + $0x38] sm:$0xff]   ;;  %v746_v1 = vld [vmem:[%s941_s2 + $0x30] sm:$0xff]   ;;  %s947_s25 = smov (!%p260_p3, %s662_s25), 15  ;;  %v747_v2 = vld [vmem:[%s941_s2 + $0x28] sm:$0xff]  }
   0xc   : > { %697 = vmatprep.subr.bf16.mxu0 %v745_v0  ;;  %721 = vmatprep.subr.bf16.mxu1 %v745_v0  ;;  %s663_s30 = sshll.u32 %s947_s25, 2  ;;  %v748_v3 = vld [vmem:[%s941_s2 + $0x20] sm:$0xff]   ;;  %v749_v6 = vld [vmem:[%s941_s2 + $0x18] sm:$0xff]   ;;  %v750_v7 = vld [vmem:[%s941_s2 + $0x10] sm:$0xff]   ;;  %s665_s23 = sshll.u32 %s947_s25, 3 }
   0xd   : > { %698 = vmatpush3.bf16.msra.mxu0 %v745_v0  ;;  %729 = vmatpush3.bf16.msra.mxu1 %v745_v0  ;;  %s839_s9 = scalar_lea.vmem %s939_s0, %s663_s30  ;;  %v751_v8 = vld [vmem:[%s941_s2 + $0x8] sm:$0xff]   ;;  %v752_v9 = vld [vmem:[%s941_s2] sm:$0xff]   ;;  %s902_s29 = scalar_lea.vmem %s940_s1, %s665_s23 }
   0xe   : > { %699 = vmatprep.subr.bf16.mxu0 %v746_v1  ;;  %722 = vmatprep.subr.bf16.mxu1 %v746_v1  ;;  %v753_v4 = vld [vmem:[%s839_s9] sm:$0xff]   ;;  %v754_v5 = vld [vmem:[%s839_s9 + $0x10] sm:$0xff]   ;;  %v755_v10 = vld [vmem:[%s839_s9 + $0x8] sm:$0xff]  }
   0xf   : > { %713 = vmatprep.mubr.bf16.mxu0 %v753_v4  ;;  %717 = vmatprep.mubr.bf16.mxu1 %v754_v5  ;;  %v756_v11 = vld [vmem:[%s839_s9 + $0x18] sm:$0xff]   ;;  %v668_v12 = vld [vmem:[%s942_s3] ss:$0 sm:$0xff]  ;;  %s913_s9 = scalar_lea.vmem %s945_s6, %s665_s23 }
  0x11   : > { %700 = vmatpush3.bf16.msra.mxu0 %v746_v1  ;;  %730 = vmatpush3.bf16.msra.mxu1 %v746_v1 }
  0x12   : > { %701 = vmatprep.subr.bf16.mxu0 %v747_v2  ;;  %723 = vmatprep.subr.bf16.mxu1 %v747_v2 }
  0x15   : > { %702 = vmatpush3.bf16.msra.mxu0 %v747_v2  ;;  %731 = vmatpush3.bf16.msra.mxu1 %v747_v2 }
  0x16   : > { %703 = vmatprep.subr.bf16.mxu0 %v748_v3  ;;  %724 = vmatprep.subr.bf16.mxu1 %v748_v3 }
  0x19   : > { %704 = vmatpush3.bf16.msra.mxu0 %v748_v3  ;;  %732 = vmatpush3.bf16.msra.mxu1 %v748_v3 }
  0x1a   : > { %705 = vmatprep.subr.bf16.mxu0 %v749_v6  ;;  %725 = vmatprep.subr.bf16.mxu1 %v749_v6 }
  0x1d   : > { %706 = vmatpush3.bf16.msra.mxu0 %v749_v6  ;;  %733 = vmatpush3.bf16.msra.mxu1 %v749_v6 }
  0x1e   : > { %707 = vmatprep.subr.bf16.mxu0 %v750_v7  ;;  %726 = vmatprep.subr.bf16.mxu1 %v750_v7 }
  0x21   : > { %708 = vmatpush3.bf16.msra.mxu0 %v750_v7  ;;  %734 = vmatpush3.bf16.msra.mxu1 %v750_v7 }
  0x22   : > { %709 = vmatprep.subr.bf16.mxu0 %v751_v8  ;;  %727 = vmatprep.subr.bf16.mxu1 %v751_v8 }
  0x25   : > { %710 = vmatpush3.bf16.msra.mxu0 %v751_v8  ;;  %735 = vmatpush3.bf16.msra.mxu1 %v751_v8 }
  0x26   : > { %711 = vmatprep.subr.bf16.mxu0 %v752_v9  ;;  %728 = vmatprep.subr.bf16.mxu1 %v752_v9 }
  0x29   : > { %712 = vmatpush3.bf16.msra.mxu0 %v752_v9  ;;  %736 = vmatpush3.bf16.msra.mxu1 %v752_v9 }
  0x2c   : > { %714 = vmatmul.mubr.bf16.vlgmr.msra.gmra.mxu0 %v755_v10  ;;  %718 = vmatmul.mubr.bf16.vlgmr.msra.gmra.mxu1 %v756_v11 }
  0xec   : > { %v715_v13 = vpop.f32.mrf.mxu0  ;;  %v719_v14 = vpop.f32.mrf.mxu1 }
  0xed   : > { %v424_v15 = vadd.f32 %v715_v13, %v668_v12  ;;  %v440_v28 = vadd.f32 %v719_v14, %v668_v12 }
  0xee   : > { %v415_v16 = vpop.f32.mrf.mxu0  ;;  %v431_v17 = vpop.f32.mrf.mxu1 }
  0xef   : > { %v416_v18 = vadd.f32 %v668_v12, %v415_v16  ;;  %452 = vadd.xlane.f32.xlu1 %v424_v15  ;;  %v432_v23 = vadd.f32 %v668_v12, %v431_v17 }
  0xf0   : > { %v716_v19 = vpop.f32.mrf.mxu0  ;;  %v720_v20 = vpop.f32.mrf.mxu1 }
  0xf1   : > { %v427_v21 = vadd.f32 %v716_v19, %v668_v12  ;;  %448 = vadd.xlane.f32.xlu0 %v416_v18  ;;  %v443_v27 = vadd.f32 %v720_v20, %v668_v12  ;;  %v681_v19 = vld [vmem:[%s943_s4] ss:$0 sm:$0xff] }
  0xf2   : > { %v434_v22 = vpop.f32.mrf.mxu1  ;;  %v418_v24 = vpop.f32.mrf.mxu0 }
  0xf3   : > { %454 = vadd.xlane.f32.xlu1 %v427_v21  ;;  %v435_v25 = vadd.f32 %v668_v12, %v434_v22  ;;  %v419_v26 = vadd.f32 %v668_v12, %v418_v24 }
  0xf5   : > { %456 = vadd.xlane.f32.xlu0 %v432_v23 }
  0xf7   : > { %458 = vadd.xlane.f32.xlu1 %v435_v25 }
  0xf9   : > { %450 = vadd.xlane.f32.xlu0 %v419_v26 }
  0xfb   : > { %462 = vadd.xlane.f32.xlu1 %v443_v27 }
  0xfd   : > { %460 = vadd.xlane.f32.xlu0 %v440_v28 }
 0x178   : > { %v453_v29 = vpop.xlane.xlu1 %452 }
 0x179   : > { %v467_v30 = vmul.f32 0.0078125, %v453_v29 }
 0x17a   : > { %v449_v31 = vpop.xlane.xlu0 %448 }
 0x17b   : > { %v863_v32 = vsub.f32 %v424_v15, %v467_v30  ;;  %v465_v33 = vmul.f32 0.0078125, %v449_v31 }
 0x17c   : > { %v455_v34 = vpop.xlane.xlu1 %454 }
 0x17d   : > { %v865_v35 = vsub.f32 %v416_v18, %v465_v33  ;;  %v468_v36 = vmul.f32 0.0078125, %v455_v34  ;;  %v483_v37 = vmul.f32 %v863_v32, %v863_v32 }
 0x17e   : > { %v457_v38 = vpop.xlane.xlu0 %456 }
 0x17f   : > { %v869_v39 = vsub.f32 %v427_v21, %v468_v36  ;;  %v469_v40 = vmul.f32 0.0078125, %v457_v38  ;;  %493 = vadd.xlane.f32.xlu0 %v483_v37  ;;  %v481_v44 = vmul.f32 %v865_v35, %v865_v35  ;;  %v568_v36 = vld [vmem:[%s902_s29 + $0x18] sm:$0xff] }
 0x180   : > { %v459_v41 = vpop.xlane.xlu1 %458 }
 0x181   : > { %v871_v42 = vsub.f32 %v432_v23, %v469_v40  ;;  %v484_v43 = vmul.f32 %v869_v39, %v869_v39  ;;  %v470_v46 = vmul.f32 0.0078125, %v459_v41  ;;  %v682_v23 = vld [vmem:[%s944_s5] ss:$0 sm:$0xff] }
 0x182   : > { %v451_v45 = vpop.xlane.xlu0 %450 }
 0x183   : > { %v466_v47 = vmul.f32 0.0078125, %v451_v45  ;;  %495 = vadd.xlane.f32.xlu1 %v484_v43  ;;  %489 = vadd.xlane.f32.xlu0 %v481_v44  ;;  %v485_v50 = vmul.f32 %v871_v42, %v871_v42  ;;  %v881_v52 = vsub.f32 %v435_v25, %v470_v46 }
 0x184   : > { %v463_v48 = vpop.xlane.xlu1 %462 }
 0x185   : > { %v877_v49 = vsub.f32 %v419_v26, %v466_v47  ;;  %v472_v53 = vmul.f32 0.0078125, %v463_v48  ;;  %v486_v58 = vmul.f32 %v881_v52, %v881_v52  ;;  %v569_v47 = vld [vmem:[%s902_s29 + $0x20] sm:$0xff] }
 0x186   : > { %v461_v51 = vpop.xlane.xlu0 %460 }
 0x187   : > { %v471_v54 = vmul.f32 0.0078125, %v461_v51  ;;  %497 = vadd.xlane.f32.xlu0 %v485_v50  ;;  %v482_v55 = vmul.f32 %v877_v49, %v877_v49  ;;  %v887_v57 = vsub.f32 %v443_v27, %v472_v53  ;;  %v567_v27 = vld [vmem:[%s902_s29 + $0x10] sm:$0xff]  ;;  %v566_v53 = vld [vmem:[%s902_s29 + $0x8] sm:$0xff] }
 0x189   : > { %v885_v56 = vsub.f32 %v440_v28, %v471_v54  ;;  %491 = vadd.xlane.f32.xlu1 %v482_v55  ;;  %v488_v60 = vmul.f32 %v887_v57, %v887_v57 }
 0x18b   : > { %v487_v59 = vmul.f32 %v885_v56, %v885_v56 }
 0x18d   : > { %499 = vadd.xlane.f32.xlu1 %v486_v58  ;;  %501 = vadd.xlane.f32.xlu0 %v487_v59 }
 0x191   : > { %503 = vadd.xlane.f32.xlu1 %v488_v60 }
 0x208   : > { %v494_v61 = vpop.xlane.xlu0 %493 }
 0x209   : > { %v507_v62 = vmul.f32 0.0078125, %v494_v61 }
 0x20b   : > { %v515_v63 = vadd.f32 1e-05, %v507_v62  ;;  %v570_v62 = vld [vmem:[%s902_s29 + $0x28] sm:$0xff] }
 0x20c   : > { %v496_v0 = vpop.xlane.xlu1 %495  ;;  %v490_v1 = vpop.xlane.xlu0 %489 }
 0x20d   : > { %757 = vrsqrt.f32 %v515_v63  ;;  %v508_v2 = vmul.f32 0.0078125, %v496_v0  ;;  %v505_v3 = vmul.f32 0.0078125, %v490_v1  ;;  %v571_v1 = vld [vmem:[%s902_s29 + $0x30] sm:$0xff] }
 0x20f   : > { %v516_v4 = vadd.f32 1e-05, %v508_v2  ;;  %v513_v5 = vadd.f32 1e-05, %v505_v3 }
 0x210   : > { %v498_v6 = vpop.xlane.xlu0 %497 }
 0x211   : > { %759 = vrsqrt.f32 %v516_v4  ;;  %v509_v7 = vmul.f32 0.0078125, %v498_v6  ;;  %v572_v6 = vld [vmem:[%s902_s29 + $0x38] sm:$0xff] }
 0x212   : > { %761 = vrsqrt.f32 %v513_v5  ;;  %v492_v8 = vpop.xlane.xlu1 %491 }
 0x213   : > { %v517_v9 = vadd.f32 1e-05, %v509_v7  ;;  %v506_v10 = vmul.f32 0.0078125, %v492_v8 }
 0x215   : > { %763 = vrsqrt.f32 %v517_v9  ;;  %v514_v11 = vadd.f32 1e-05, %v506_v10 }
 0x216   : > { %v500_v12 = vpop.xlane.xlu1 %499  ;;  %v502_v13 = vpop.xlane.xlu0 %501 }
 0x217   : > { %765 = vrsqrt.f32 %v514_v11  ;;  %v510_v14 = vmul.f32 0.0078125, %v500_v12  ;;  %v511_v15 = vmul.f32 0.0078125, %v502_v13 }
 0x219   : > { %v518_v16 = vadd.f32 1e-05, %v510_v14  ;;  %v519_v17 = vadd.f32 1e-05, %v511_v15 }
 0x21a   : > { %v758_v18 = vpop.eup %757  ;;  %v504_v20 = vpop.xlane.xlu1 %503 }
 0x21b   : > { %v531_v21 = vmul.f32 %v758_v18, %v863_v32  ;;  %767 = vrsqrt.f32 %v518_v16  ;;  %v512_v22 = vmul.f32 0.0078125, %v504_v20 }
 0x21c   : > { %769 = vrsqrt.f32 %v519_v17 }
 0x21d   : > { %v545_v24 = vmul.f32 %v681_v19, %v531_v21  ;;  %v520_v25 = vadd.f32 1e-05, %v512_v22 }
 0x21e   : > { %v760_v26 = vpop.eup %759 }
 0x21f   : > { %v762_v28 = vpop.eup %761  ;;  %v559_v29 = vadd.f32 %v682_v23, %v545_v24  ;;  %v532_v30 = vmul.f32 %v760_v26, %v869_v39  ;;  %771 = vrsqrt.f32 %v520_v25  ;;  %v565_v39 = vld [vmem:[%s902_s29] sm:$0xff] }
 0x220   : > { %v529_v31 = vmul.f32 %v762_v28, %v865_v35 }
 0x221   : > { %v575_v32 = vadd.f32 %v567_v27, %v559_v29  ;;  %v546_v33 = vmul.f32 %v681_v19, %v532_v30 }
 0x222   : > { %v764_v34 = vpop.eup %763  ;;  %v543_v37 = vmul.f32 %v681_v19, %v529_v31 }
 0x223   : > { %583 = vst [vmem:[%s913_s9 + $0x10] sm:$0xff] %v575_v32  ;;  %v560_v38 = vadd.f32 %v682_v23, %v546_v33  ;;  %v533_v40 = vmul.f32 %v764_v34, %v871_v42 }
 0x224   : > { %v766_v41 = vpop.eup %765  ;;  %v557_v43 = vadd.f32 %v682_v23, %v543_v37 }
 0x225   : > { %v576_v44 = vadd.f32 %v568_v36, %v560_v38  ;;  %v547_v45 = vmul.f32 %v681_v19, %v533_v40  ;;  %v530_v35 = vmul.f32 %v766_v41, %v877_v49 }
 0x226   : > { %v573_v46 = vadd.f32 %v565_v39, %v557_v43 }
 0x227   : > { %584 = vst [vmem:[%s913_s9 + $0x18] sm:$0xff] %v576_v44  ;;  %v561_v48 = vadd.f32 %v682_v23, %v547_v45  ;;  %v544_v50 = vmul.f32 %v681_v19, %v530_v35 }
 0x228   : > { %v768_v51 = vpop.eup %767  ;;  %581 = vst [vmem:[%s913_s9] sm:$0xff] %v573_v46 }
 0x229   : > { %v770_v54 = vpop.eup %769  ;;  %v577_v42 = vadd.f32 %v569_v47, %v561_v48  ;;  %v558_v55 = vadd.f32 %v682_v23, %v544_v50  ;;  %v534_v58 = vmul.f32 %v768_v51, %v881_v52 }
 0x22a   : > { %v535_v59 = vmul.f32 %v770_v54, %v885_v56 }
 0x22b   : > { %585 = vst [vmem:[%s913_s9 + $0x20] sm:$0xff] %v577_v42  ;;  %v574_v49 = vadd.f32 %v566_v53, %v558_v55  ;;  %v548_v60 = vmul.f32 %v681_v19, %v534_v58 }
 0x22c   : > { %v772_v61 = vpop.eup %771  ;;  %v549_v63 = vmul.f32 %v681_v19, %v535_v59 }
 0x22d   : > { %582 = vst [vmem:[%s913_s9 + $0x8] sm:$0xff] %v574_v49  ;;  %v562_v0 = vadd.f32 %v682_v23, %v548_v60  ;;  %v536_v2 = vmul.f32 %v772_v61, %v887_v57 }
 0x22e   : > { %v563_v3 = vadd.f32 %v682_v23, %v549_v63 }
 0x22f   : > { %v578_v4 = vadd.f32 %v570_v62, %v562_v0  ;;  %v550_v52 = vmul.f32 %v681_v19, %v536_v2 }
 0x230   : > { %v579_v5 = vadd.f32 %v571_v1, %v563_v3 }
 0x231   : > { %586 = vst [vmem:[%s913_s9 + $0x28] sm:$0xff] %v578_v4  ;;  %v564_v56 = vadd.f32 %v682_v23, %v550_v52 }
 0x232   : > { %587 = vst [vmem:[%s913_s9 + $0x30] sm:$0xff] %v579_v5 }
 0x233   : > { %v580_v7 = vadd.f32 %v572_v6, %v564_v56 }
 0x235   : > { %588 = vst [vmem:[%s913_s9 + $0x38] sm:$0xff] %v580_v7 }
 0x236 PF: > { %s16_s21 = sadd.s32 1, %s779_s21  }
 0x237   : > { %p13_p4 = scmp.ge.s32.totalorder %s16_s21, 4  }
 0x239   :  { %15 = sbr.rel (!%p13_p4) target bundleno = 1 (0x1), region = 77 }

// kernel: decoder_layer.11
= control target key start
LH: loop header
LB: loop body
LE: loop exit
PB: predicated region body
PF: predicated region fallthrough
CT: control target
= control target key end

     0   :  { %s823_s21 = smov 0   ;;  %s941_s0 = inlined_call_operand.vmem [shape: f32[128,128], index: 0, kind: input, shape index: {}]   ;;  %s942_s1 = inlined_call_operand.vmem [shape: f32[64,128], index: 1, kind: input, shape index: {}]   ;;  %s943_s2 = inlined_call_operand.vmem [shape: f32[1,128], index: 2, kind: input, shape index: {}]   ;;  %s944_s3 = inlined_call_operand.vmem [shape: f32[1,128], index: 3, kind: input, shape index: {}]   ;;  %s945_s4 = inlined_call_operand.vmem [shape: bf16[128,128], index: 4, kind: input, shape index: {}]   ;;  %s946_s5 = inlined_call_operand.vmem [shape: f32[1,128], index: 5, kind: input, shape index: {}]   ;;  %s947_s6 = inlined_call_operand.vmem [shape: bf16[128,128], index: 6, kind: output, shape index: {}]  }
   0x1 LB: > { %s635_s22 = sadd.s32 4294967295, %s786_s21   ;;  %p639_p0 = scmp.ge.s32.totalorder %s786_s21, 1  ;;  %s786_s21 = sphi %s823_s21, %s16_s21  }
   0x2   : > { %p213_p1 = scmp.lt.s32.totalorder %s786_s21, 3 }
   0x4   : > { %p214_p2 = pnand %p639_p0, %p213_p1 }
   0x5   : > { %s640_s23 = sshll.u32 (!%p214_p2), %s635_s22, 3 }
   0x6   : > { %217 = sbr.rel (%p214_p2) target bundleno = 545 (0x221), region = 44  ;;  %p244_p3 = scmp.lt.s32.totalorder (!%p214_p2), %s640_s23, 15 }
   0xb   : > { %s949_s23 = smov (!%p244_p3, %s640_s23), 15  ;;  %v756_v40 = vld [vmem:[%s945_s4 + $0x38] sm:$0xff]   ;;  %v757_v41 = vld [vmem:[%s945_s4 + $0x30] sm:$0xff]   ;;  %v758_v42 = vld [vmem:[%s945_s4 + $0x28] sm:$0xff]  }
   0xc   : > { %s641_s24 = sshll.u32 %s949_s23, 3  ;;  %708 = vmatprep.subr.bf16.mxu0 %v756_v40  ;;  %732 = vmatprep.subr.bf16.mxu1 %v756_v40  ;;  %v759_v43 = vld [vmem:[%s945_s4 + $0x20] sm:$0xff]   ;;  %v760_v44 = vld [vmem:[%s945_s4 + $0x18] sm:$0xff]   ;;  %v761_v45 = vld [vmem:[%s945_s4 + $0x10] sm:$0xff]   ;;  %s643_s20 = sshll.u32 %s949_s23, 2 }
   0xd   : > { %s247_s27 = scalar_lea.vmem %s941_s0, %s641_s24  ;;  %709 = vmatpush3.bf16.msra.mxu0 %v756_v40  ;;  %740 = vmatpush3.bf16.msra.mxu1 %v756_v40  ;;  %v762_v46 = vld [vmem:[%s945_s4 + $0x8] sm:$0xff]   ;;  %v763_v47 = vld [vmem:[%s945_s4] sm:$0xff]   ;;  %s253_s25 = scalar_lea.vmem %s947_s6, %s643_s20 }
   0xe   : > { %v256_v0 = vld [vmem:[%s247_s27] sm:$0xff]  ;;  %v257_v2 = vld [vmem:[%s247_s27 + $0x8] sm:$0xff]  ;;  %v258_v4 = vld [vmem:[%s247_s27 + $0x10] sm:$0xff]  ;;  %710 = vmatprep.subr.bf16.mxu0 %v757_v41  ;;  %733 = vmatprep.subr.bf16.mxu1 %v757_v41 }
   0xf   : > { %v260_v1 = vld [vmem:[%s247_s27 + $0x20] sm:$0xff]  ;;  %266 = vadd.xlane.f32.xlu0 %v256_v0  ;;  %v261_v3 = vld [vmem:[%s247_s27 + $0x28] sm:$0xff]  ;;  %v259_v5 = vld [vmem:[%s247_s27 + $0x18] sm:$0xff] }
  0x10   : > { %274 = vadd.xlane.f32.xlu1 %v260_v1  ;;  %v262_v6 = vld [vmem:[%s247_s27 + $0x30] sm:$0xff]  ;;  %v263_v7 = vld [vmem:[%s247_s27 + $0x38] sm:$0xff] }
  0x11   : > { %711 = vmatpush3.bf16.msra.mxu0 %v757_v41  ;;  %741 = vmatpush3.bf16.msra.mxu1 %v757_v41 }
  0x12   : > { %712 = vmatprep.subr.bf16.mxu0 %v758_v42  ;;  %734 = vmatprep.subr.bf16.mxu1 %v758_v42 }
  0x13   : > { %268 = vadd.xlane.f32.xlu0 %v257_v2 }
  0x14   : > { %276 = vadd.xlane.f32.xlu1 %v261_v3 }
  0x15   : > { %713 = vmatpush3.bf16.msra.mxu0 %v758_v42  ;;  %742 = vmatpush3.bf16.msra.mxu1 %v758_v42 }
  0x16   : > { %714 = vmatprep.subr.bf16.mxu0 %v759_v43  ;;  %735 = vmatprep.subr.bf16.mxu1 %v759_v43 }
  0x17   : > { %270 = vadd.xlane.f32.xlu0 %v258_v4 }
  0x18   : > { %272 = vadd.xlane.f32.xlu1 %v259_v5 }
  0x19   : > { %715 = vmatpush3.bf16.msra.mxu0 %v759_v43  ;;  %743 = vmatpush3.bf16.msra.mxu1 %v759_v43 }
  0x1a   : > { %716 = vmatprep.subr.bf16.mxu0 %v760_v44  ;;  %736 = vmatprep.subr.bf16.mxu1 %v760_v44 }
  0x1b   : > { %278 = vadd.xlane.f32.xlu0 %v262_v6 }
  0x1c   : > { %280 = vadd.xlane.f32.xlu1 %v263_v7 }
  0x1d   : > { %717 = vmatpush3.bf16.msra.mxu0 %v760_v44  ;;  %744 = vmatpush3.bf16.msra.mxu1 %v760_v44 }
  0x1e   : > { %718 = vmatprep.subr.bf16.mxu0 %v761_v45  ;;  %737 = vmatprep.subr.bf16.mxu1 %v761_v45 }
  0x21   : > { %719 = vmatpush3.bf16.msra.mxu0 %v761_v45  ;;  %745 = vmatpush3.bf16.msra.mxu1 %v761_v45 }
  0x22   : > { %720 = vmatprep.subr.bf16.mxu0 %v762_v46  ;;  %738 = vmatprep.subr.bf16.mxu1 %v762_v46 }
  0x25   : > { %721 = vmatpush3.bf16.msra.mxu0 %v762_v46  ;;  %746 = vmatpush3.bf16.msra.mxu1 %v762_v46 }
  0x26   : > { %722 = vmatprep.subr.bf16.mxu0 %v763_v47  ;;  %739 = vmatprep.subr.bf16.mxu1 %v763_v47 }
  0x29   : > { %723 = vmatpush3.bf16.msra.mxu0 %v763_v47  ;;  %747 = vmatpush3.bf16.msra.mxu1 %v763_v47 }
  0x98   : > { %v267_v8 = vpop.xlane.xlu0 %266 }
  0x99   : > { %v275_v9 = vpop.xlane.xlu1 %274  ;;  %v283_v10 = vmul.f32 0.0078125, %v267_v8  ;;  %v644_v8 = vld [vmem:[%s943_s2] ss:$0 sm:$0xff] }
  0x9a   : > { %v287_v11 = vmul.f32 0.0078125, %v275_v9 }
  0x9b   : > { %v837_v12 = vsub.f32 %v256_v0, %v283_v10 }
  0x9c   : > { %v839_v13 = vsub.f32 %v260_v1, %v287_v11  ;;  %v269_v14 = vpop.xlane.xlu0 %268 }
  0x9d   : > { %v277_v15 = vpop.xlane.xlu1 %276  ;;  %v284_v16 = vmul.f32 0.0078125, %v269_v14  ;;  %v299_v17 = vmul.f32 %v837_v12, %v837_v12 }
  0x9e   : > { %v288_v18 = vmul.f32 0.0078125, %v277_v15  ;;  %v303_v21 = vmul.f32 %v839_v13, %v839_v13  ;;  %v645_v15 = vld [vmem:[%s944_s3] ss:$0 sm:$0xff] }
  0x9f   : > { %v843_v19 = vsub.f32 %v257_v2, %v284_v16  ;;  %307 = vadd.xlane.f32.xlu0 %v299_v17 }
  0xa0   : > { %v845_v20 = vsub.f32 %v261_v3, %v288_v18  ;;  %v271_v22 = vpop.xlane.xlu0 %270 }
  0xa1   : > { %v273_v23 = vpop.xlane.xlu1 %272  ;;  %v285_v24 = vmul.f32 0.0078125, %v271_v22  ;;  %v300_v25 = vmul.f32 %v843_v19, %v843_v19 }
  0xa2   : > { %v286_v26 = vmul.f32 0.0078125, %v273_v23  ;;  %v304_v29 = vmul.f32 %v845_v20, %v845_v20 }
  0xa3   : > { %v851_v27 = vsub.f32 %v258_v4, %v285_v24  ;;  %315 = vadd.xlane.f32.xlu0 %v303_v21  ;;  %309 = vadd.xlane.f32.xlu1 %v300_v25  ;;  %v383_v24 = vld [vmem:[%s942_s1] sm:$0xff] }
  0xa4   : > { %v853_v28 = vsub.f32 %v259_v5, %v286_v26  ;;  %v279_v30 = vpop.xlane.xlu0 %278 }
  0xa5   : > { %v281_v31 = vpop.xlane.xlu1 %280  ;;  %v289_v32 = vmul.f32 0.0078125, %v279_v30  ;;  %v301_v33 = vmul.f32 %v851_v27, %v851_v27 }
  0xa6   : > { %v290_v34 = vmul.f32 0.0078125, %v281_v31  ;;  %v302_v37 = vmul.f32 %v853_v28, %v853_v28 }
  0xa7   : > { %v859_v35 = vsub.f32 %v262_v6, %v289_v32  ;;  %317 = vadd.xlane.f32.xlu1 %v304_v29  ;;  %311 = vadd.xlane.f32.xlu0 %v301_v33 }
  0xa8   : > { %v861_v36 = vsub.f32 %v263_v7, %v290_v34 }
  0xa9   : > { %v305_v38 = vmul.f32 %v859_v35, %v859_v35 }
  0xaa   : > { %v306_v39 = vmul.f32 %v861_v36, %v861_v36 }
  0xab   : > { %313 = vadd.xlane.f32.xlu1 %v302_v37  ;;  %319 = vadd.xlane.f32.xlu0 %v305_v38  ;;  %v387_v37 = vld [vmem:[%s942_s1 + $0x20] sm:$0xff]  ;;  %v388_v38 = vld [vmem:[%s942_s1 + $0x28] sm:$0xff] }
  0xaf   : > { %321 = vadd.xlane.f32.xlu1 %v306_v39 }
 0x128   : > { %v308_v48 = vpop.xlane.xlu0 %307 }
 0x129   : > { %v323_v49 = vmul.f32 0.0078125, %v308_v48  ;;  %v385_v48 = vld [vmem:[%s942_s1 + $0x10] sm:$0xff] }
 0x12b   : > { %v331_v50 = vadd.f32 1e-05, %v323_v49  ;;  %v386_v49 = vld [vmem:[%s942_s1 + $0x18] sm:$0xff] }
 0x12c   : > { %v310_v51 = vpop.xlane.xlu1 %309  ;;  %v316_v52 = vpop.xlane.xlu0 %315 }
 0x12d   : > { %764 = vrsqrt.f32 %v331_v50  ;;  %v324_v53 = vmul.f32 0.0078125, %v310_v51  ;;  %v327_v54 = vmul.f32 0.0078125, %v316_v52 }
 0x12f   : > { %v332_v55 = vadd.f32 1e-05, %v324_v53  ;;  %v335_v56 = vadd.f32 1e-05, %v327_v54 }
 0x130   : > { %v318_v57 = vpop.xlane.xlu1 %317  ;;  %v312_v58 = vpop.xlane.xlu0 %311 }
 0x131   : > { %766 = vrsqrt.f32 %v332_v55  ;;  %v328_v59 = vmul.f32 0.0078125, %v318_v57  ;;  %v325_v60 = vmul.f32 0.0078125, %v312_v58  ;;  %v390_v57 = vld [vmem:[%s942_s1 + $0x38] sm:$0xff] }
 0x132   : > { %768 = vrsqrt.f32 %v335_v56  ;;  %v389_v56 = vld [vmem:[%s942_s1 + $0x30] sm:$0xff] }
 0x133   : > { %v336_v61 = vadd.f32 1e-05, %v328_v59  ;;  %v333_v62 = vadd.f32 1e-05, %v325_v60 }
 0x134   : > { %v314_v63 = vpop.xlane.xlu1 %313  ;;  %v320_v0 = vpop.xlane.xlu0 %319 }
 0x135   : > { %770 = vrsqrt.f32 %v336_v61  ;;  %v326_v1 = vmul.f32 0.0078125, %v314_v63  ;;  %v329_v2 = vmul.f32 0.0078125, %v320_v0  ;;  %v646_v63 = vld [vmem:[%s946_s5] ss:$0 sm:$0xff] }
 0x136   : > { %772 = vrsqrt.f32 %v333_v62 }
 0x137   : > { %v334_v3 = vadd.f32 1e-05, %v326_v1  ;;  %v337_v4 = vadd.f32 1e-05, %v329_v2 }
 0x138   : > { %v322_v5 = vpop.xlane.xlu1 %321 }
 0x139   : > { %774 = vrsqrt.f32 %v334_v3  ;;  %v330_v6 = vmul.f32 0.0078125, %v322_v5 }
 0x13a   : > { %v765_v7 = vpop.eup %764  ;;  %776 = vrsqrt.f32 %v337_v4 }
 0x13b   : > { %v338_v9 = vadd.f32 1e-05, %v330_v6  ;;  %v347_v10 = vmul.f32 %v765_v7, %v837_v12  ;;  %v384_v12 = vld [vmem:[%s942_s1 + $0x8] sm:$0xff] }
 0x13d   : > { %778 = vrsqrt.f32 %v338_v9  ;;  %v361_v11 = vmul.f32 %v644_v8, %v347_v10 }
 0x13e   : > { %v767_v14 = vpop.eup %766 }
 0x13f   : > { %v769_v16 = vpop.eup %768  ;;  %v348_v17 = vmul.f32 %v767_v14, %v843_v19  ;;  %v375_v22 = vadd.f32 %v645_v15, %v361_v11 }
 0x140   : > { %v351_v18 = vmul.f32 %v769_v16, %v839_v13 }
 0x141   : > { %v362_v21 = vmul.f32 %v644_v8, %v348_v17  ;;  %v391_v31 = vadd.f32 %v383_v24, %v375_v22 }
 0x142   : > { %v771_v23 = vpop.eup %770  ;;  %v365_v25 = vmul.f32 %v644_v8, %v351_v18 }
 0x143   : > { %v773_v26 = vpop.eup %772  ;;  %v376_v29 = vadd.f32 %v645_v15, %v362_v21  ;;  %v352_v30 = vmul.f32 %v771_v23, %v845_v20 }
 0x144   : > { %v349_v19 = vmul.f32 %v773_v26, %v851_v27  ;;  %v379_v33 = vadd.f32 %v645_v15, %v365_v25 }
 0x145   : > { %v392_v13 = vadd.f32 %v384_v12, %v376_v29  ;;  %v366_v32 = vmul.f32 %v644_v8, %v352_v30 }
 0x146   : > { %v775_v34 = vpop.eup %774  ;;  %v363_v39 = vmul.f32 %v644_v8, %v349_v19  ;;  %v395_v43 = vadd.f32 %v387_v37, %v379_v33 }
 0x147   : > { %v777_v40 = vpop.eup %776  ;;  %v399_v41 = vpack.c.bf16 %v392_v13, %v391_v31  ;;  %v380_v42 = vadd.f32 %v645_v15, %v366_v32  ;;  %v350_v20 = vmul.f32 %v775_v34, %v853_v28 }
 0x148   : > { %v353_v27 = vmul.f32 %v777_v40, %v859_v35  ;;  %v377_v46 = vadd.f32 %v645_v15, %v363_v39 }
 0x149   : > { %724 = vmatprep.mubr.bf16.mxu0 %v399_v41  ;;  %v396_v44 = vadd.f32 %v388_v38, %v380_v42  ;;  %v364_v45 = vmul.f32 %v644_v8, %v350_v20 }
 0x14a   : > { %v779_v47 = vpop.eup %778  ;;  %v367_v50 = vmul.f32 %v644_v8, %v353_v27  ;;  %v393_v35 = vadd.f32 %v385_v48, %v377_v46 }
 0x14b   : > { %v401_v51 = vpack.c.bf16 %v396_v44, %v395_v43  ;;  %v378_v52 = vadd.f32 %v645_v15, %v364_v45  ;;  %v354_v28 = vmul.f32 %v779_v47, %v861_v36 }
 0x14c   : > { %v381_v55 = vadd.f32 %v645_v15, %v367_v50 }
 0x14d   : > { %728 = vmatprep.mubr.bf16.mxu1 %v401_v51  ;;  %v394_v53 = vadd.f32 %v386_v49, %v378_v52  ;;  %v368_v54 = vmul.f32 %v644_v8, %v354_v28 }
 0x14e   : > { %v397_v60 = vadd.f32 %v389_v56, %v381_v55 }
 0x14f   : > { %v400_v58 = vpack.c.bf16 %v394_v53, %v393_v35  ;;  %v382_v59 = vadd.f32 %v645_v15, %v368_v54 }
 0x151   : > { %725 = vmatmul.mubr.bf16.vlgmr.msra.gmra.mxu0 %v400_v58  ;;  %v398_v61 = vadd.f32 %v390_v57, %v382_v59 }
 0x153   : > { %v402_v36 = vpack.c.bf16 %v398_v61, %v397_v60 }
 0x155   : > { %729 = vmatmul.mubr.bf16.vlgmr.msra.gmra.mxu1 %v402_v36 }
 0x211   : > { %v726_v62 = vpop.f32.mrf.mxu0 }
 0x212   : > { %v517_v3 = vadd.f32 %v726_v62, %v646_v63 }
 0x213   : > { %v508_v0 = vpop.f32.mrf.mxu0 }
 0x214   : > { %v509_v7 = vadd.f32 %v646_v63, %v508_v0 }
 0x215   : > { %v727_v1 = vpop.f32.mrf.mxu0  ;;  %v730_v2 = vpop.f32.mrf.mxu1 }
 0x216   : > { %v520_v4 = vadd.f32 %v727_v1, %v646_v63  ;;  %v533_v11 = vadd.f32 %v730_v2, %v646_v63 }
 0x217   : > { %v511_v5 = vpop.f32.mrf.mxu0  ;;  %v524_v6 = vpop.f32.mrf.mxu1 }
 0x218   : > { %v681_v8 = vpack.c.bf16 %v520_v4, %v517_v3  ;;  %v512_v9 = vadd.f32 %v646_v63, %v511_v5  ;;  %v525_v17 = vadd.f32 %v646_v63, %v524_v6 }
 0x219   : > { %v731_v10 = vpop.f32.mrf.mxu1 }
 0x21a   : > { %693 = vst [vmem:[%s253_s25 + $0x8] sm:$0xff] %v681_v8   ;;  %v676_v14 = vpack.c.bf16 %v512_v9, %v509_v7  ;;  %v536_v15 = vadd.f32 %v731_v10, %v646_v63 }
 0x21b   : > { %v527_v16 = vpop.f32.mrf.mxu1 }
 0x21c   : > { %677 = vst [vmem:[%s253_s25] sm:$0xff] %v676_v14   ;;  %v691_v18 = vpack.c.bf16 %v536_v15, %v533_v11  ;;  %v528_v21 = vadd.f32 %v646_v63, %v527_v16 }
 0x21e   : > { %695 = vst [vmem:[%s253_s25 + $0x18] sm:$0xff] %v691_v18   ;;  %v686_v22 = vpack.c.bf16 %v528_v21, %v525_v17 }
 0x220   : > { %694 = vst [vmem:[%s253_s25 + $0x10] sm:$0xff] %v686_v22  }
 0x221 PF: > { %s16_s21 = sadd.s32 1, %s786_s21  }
 0x222   : > { %p13_p4 = scmp.ge.s32.totalorder %s16_s21, 4  }
 0x224   :  { %15 = sbr.rel (!%p13_p4) target bundleno = 1 (0x1), region = 74 }

// kernel: decoder_layer.8
= control target key start
LH: loop header
LB: loop body
LE: loop exit
PB: predicated region body
PF: predicated region fallthrough
CT: control target
= control target key end

     0   :  { %s1152_s27 = smov 0   ;;  %s1363_s0 = inlined_call_operand.vmem [shape: f32[128,128], index: 0, kind: input, shape index: {}]   ;;  %s1364_s1 = inlined_call_operand.vmem [shape: f32[64,128], index: 1, kind: input, shape index: {}]   ;;  %s1365_s2 = inlined_call_operand.vmem [shape: f32[1,128], index: 2, kind: input, shape index: {}]   ;;  %s1366_s3 = inlined_call_operand.vmem [shape: f32[1,128], index: 3, kind: input, shape index: {}]   ;;  %s1367_s4 = inlined_call_operand.vmem [shape: bf16[128,256], index: 4, kind: input, shape index: {}]   ;;  %s1368_s5 = inlined_call_operand.vmem [shape: f32[1,256], index: 5, kind: input, shape index: {}]   ;;  %s1369_s6 = inlined_call_operand.vmem [shape: bf16[128,128], index: 6, kind: input, shape index: {}]   ;;  %s1370_s7 = inlined_call_operand.vmem [shape: f32[1,128], index: 7, kind: input, shape index: {}]   ;;  %s1371_s8 = inlined_call_operand.vmem [shape: bf16[128,384], index: 8, kind: output, shape index: {}]  }
   0x1 LB: > { %s934_s28 = sadd.s32 4294967295, %s1104_s27   ;;  %p938_p0 = scmp.ge.s32.totalorder %s1104_s27, 1  ;;  %s1104_s27 = sphi %s1152_s27, %s18_s27  }
   0x2   : > { %p263_p1 = scmp.lt.s32.totalorder %s1104_s27, 3 }
   0x4   : > { %p264_p2 = pnand %p938_p0, %p263_p1 }
   0x5   : > { %s939_s29 = sshll.u32 (!%p264_p2), %s934_s28, 3 }
   0x6   : > { %267 = sbr.rel (%p264_p2) target bundleno = 557 (0x22d), region = 52  ;;  %p299_p3 = scmp.lt.s32.totalorder (!%p264_p2), %s939_s29, 15 }
   0xb   : > { %s1373_s29 = smov (!%p299_p3, %s939_s29), 15  ;;  %v1050_v38 = vld [vmem:[%s1367_s4 + $0x74] ss:$8 sps:$4 sm:$0xff]   ;;  %v1052_v39 = vld [vmem:[%s1367_s4 + $0x70] ss:$8 sps:$4 sm:$0xff]   ;;  %v1061_v48 = vld [vmem:[%s1369_s6 + $0x28] sm:$0xff]  }
   0xc   : > { %s940_s30 = sshll.u32 %s1373_s29, 3  ;;  %567 = vmatprep.subr.bf16.mxu0 %v1050_v38  ;;  %v1053_v41 = vld [vmem:[%s1369_s6 + $0x38] sm:$0xff]   ;;  %v1054_v43 = vld [vmem:[%s1367_s4 + $0x64] ss:$8 sps:$4 sm:$0xff]   ;;  %v1056_v44 = vld [vmem:[%s1367_s4 + $0x60] ss:$8 sps:$4 sm:$0xff]  }
   0xd   : > { %s302_s11 = scalar_lea.vmem %s1363_s0, %s940_s30  ;;  %568 = vmatpush1.bf16.msra.mxu0 %v1052_v39  ;;  %1016 = vmatprep.subr.bf16.mxu1 %v1053_v41  ;;  %v1057_v45 = vld [vmem:[%s1369_s6 + $0x30] sm:$0xff]   ;;  %v1062_v49 = vld [vmem:[%s1367_s4 + $0x44] ss:$8 sps:$4 sm:$0xff]   ;;  %v1064_v50 = vld [vmem:[%s1367_s4 + $0x40] ss:$8 sps:$4 sm:$0xff]   ;;  %s1040_s22 = smul.u32 12, %s1373_s29 }
   0xe   : > { %v312_v0 = vld [vmem:[%s302_s11] sm:$0xff]  ;;  %v314_v1 = vld [vmem:[%s302_s11 + $0x10] sm:$0xff]  ;;  %v313_v2 = vld [vmem:[%s302_s11 + $0x8] sm:$0xff]  ;;  %1017 = vmatpush3.bf16.msra.mxu1 %v1053_v41  ;;  %569 = vmatprep.subr.bf16.mxu0 %v1054_v43 }
   0xf   : > { %322 = vadd.xlane.f32.xlu0 %v312_v0  ;;  %326 = vadd.xlane.f32.xlu1 %v314_v1  ;;  %v315_v3 = vld [vmem:[%s302_s11 + $0x18] sm:$0xff]  ;;  %v316_v4 = vld [vmem:[%s302_s11 + $0x20] sm:$0xff]  ;;  %v317_v5 = vld [vmem:[%s302_s11 + $0x28] sm:$0xff]  ;;  %s1328_s28 = scalar_lea.vmem %s1371_s8, %s1040_s22 }
  0x10   : > { %v318_v6 = vld [vmem:[%s302_s11 + $0x30] sm:$0xff]  ;;  %v319_v7 = vld [vmem:[%s302_s11 + $0x38] sm:$0xff]  ;;  %1018 = vmatprep.subr.bf16.mxu1 %v1057_v45  ;;  %v1065_v51 = vld [vmem:[%s1369_s6 + $0x20] sm:$0xff]  }
  0x11   : > { %570 = vmatpush1.bf16.msra.mxu0 %v1056_v44  ;;  %v1058_v46 = vld [vmem:[%s1367_s4 + $0x54] ss:$8 sps:$4 sm:$0xff]   ;;  %v1060_v47 = vld [vmem:[%s1367_s4 + $0x50] ss:$8 sps:$4 sm:$0xff]   ;;  %v1070_v55 = vld [vmem:[%s1367_s4 + $0x24] ss:$8 sps:$4 sm:$0xff]  }
  0x12   : > { %1019 = vmatpush3.bf16.msra.mxu1 %v1057_v45  ;;  %571 = vmatprep.subr.bf16.mxu0 %v1058_v46  ;;  %v1066_v52 = vld [vmem:[%s1367_s4 + $0x34] ss:$8 sps:$4 sm:$0xff]   ;;  %v1068_v53 = vld [vmem:[%s1367_s4 + $0x30] ss:$8 sps:$4 sm:$0xff]   ;;  %v1072_v56 = vld [vmem:[%s1367_s4 + $0x20] ss:$8 sps:$4 sm:$0xff]  }
  0x13   : > { %324 = vadd.xlane.f32.xlu0 %v313_v2  ;;  %328 = vadd.xlane.f32.xlu1 %v315_v3  ;;  %v1069_v54 = vld [vmem:[%s1369_s6 + $0x18] sm:$0xff]   ;;  %v1073_v57 = vld [vmem:[%s1369_s6 + $0x10] sm:$0xff]   ;;  %v1077_v59 = vld [vmem:[%s1369_s6 + $0x8] sm:$0xff]  }
  0x14   : > { %1020 = vmatprep.subr.bf16.mxu1 %v1061_v48  ;;  %v1074_v58 = vld [vmem:[%s1367_s4 + $0x14] ss:$8 sps:$4 sm:$0xff]   ;;  %v1076_v60 = vld [vmem:[%s1367_s4 + $0x10] ss:$8 sps:$4 sm:$0xff]   ;;  %v1078_v61 = vld [vmem:[%s1367_s4 + $0x4] ss:$8 sps:$4 sm:$0xff]  }
  0x15   : > { %572 = vmatpush1.bf16.msra.mxu0 %v1060_v47  ;;  %v1081_v62 = vld [vmem:[%s1369_s6] sm:$0xff]  }
  0x16   : > { %1021 = vmatpush3.bf16.msra.mxu1 %v1061_v48  ;;  %573 = vmatprep.subr.bf16.mxu0 %v1062_v49  ;;  %v1080_v63 = vld [vmem:[%s1367_s4] ss:$8 sps:$4 sm:$0xff]  }
  0x17   : > { %330 = vadd.xlane.f32.xlu0 %v316_v4  ;;  %332 = vadd.xlane.f32.xlu1 %v317_v5  ;;  %v944_v38 = vld [vmem:[%s1366_s3] ss:$0 sm:$0xff] }
  0x18   : > { %1022 = vmatprep.subr.bf16.mxu1 %v1065_v51  ;;  %v439_v45 = vld [vmem:[%s1364_s1] sm:$0xff] }
  0x19   : > { %574 = vmatpush1.bf16.msra.mxu0 %v1064_v50 }
  0x1a   : > { %1023 = vmatpush3.bf16.msra.mxu1 %v1065_v51  ;;  %575 = vmatprep.subr.bf16.mxu0 %v1066_v52 }
  0x1b   : > { %334 = vadd.xlane.f32.xlu0 %v318_v6  ;;  %336 = vadd.xlane.f32.xlu1 %v319_v7 }
  0x1c   : > { %1024 = vmatprep.subr.bf16.mxu1 %v1069_v54 }
  0x1d   : > { %576 = vmatpush1.bf16.msra.mxu0 %v1068_v53 }
  0x1e   : > { %1025 = vmatpush3.bf16.msra.mxu1 %v1069_v54  ;;  %577 = vmatprep.subr.bf16.mxu0 %v1070_v55 }
  0x1f   : > { %1026 = vmatprep.subr.bf16.mxu1 %v1073_v57 }
  0x21   : > { %578 = vmatpush1.bf16.msra.mxu0 %v1072_v56 }
  0x22   : > { %579 = vmatprep.subr.bf16.mxu0 %v1074_v58  ;;  %1027 = vmatpush3.bf16.msra.mxu1 %v1073_v57 }
  0x23   : > { %1028 = vmatprep.subr.bf16.mxu1 %v1077_v59 }
  0x25   : > { %580 = vmatpush1.bf16.msra.mxu0 %v1076_v60 }
  0x26   : > { %581 = vmatprep.subr.bf16.mxu0 %v1078_v61  ;;  %1029 = vmatpush3.bf16.msra.mxu1 %v1077_v59 }
  0x27   : > { %1030 = vmatprep.subr.bf16.mxu1 %v1081_v62 }
  0x29   : > { %582 = vmatpush1.bf16.msra.mxu0 %v1080_v63 }
  0x2a   : > { %1031 = vmatpush3.bf16.msra.mxu1 %v1081_v62 }
  0x98   : > { %v323_v8 = vpop.xlane.xlu0 %322  ;;  %v327_v9 = vpop.xlane.xlu1 %326 }
  0x99   : > { %v339_v10 = vmul.f32 0.0078125, %v323_v8  ;;  %v341_v11 = vmul.f32 0.0078125, %v327_v9 }
  0x9b   : > { %v1166_v12 = vsub.f32 %v312_v0, %v339_v10  ;;  %v1168_v13 = vsub.f32 %v314_v1, %v341_v11  ;;  %v1106_v0 = vmov 0  }
  0x9c   : > { %v325_v14 = vpop.xlane.xlu0 %324  ;;  %v329_v15 = vpop.xlane.xlu1 %328  ;;  %599 = vmatprep.mubr.bf16.mxu0 %v1106_v0 }
  0x9d   : > { %v340_v16 = vmul.f32 0.0078125, %v325_v14  ;;  %v355_v17 = vmul.f32 %v1166_v12, %v1166_v12  ;;  %v342_v18 = vmul.f32 0.0078125, %v329_v15  ;;  %v357_v21 = vmul.f32 %v1168_v13, %v1168_v13 }
  0x9f   : > { %v1172_v19 = vsub.f32 %v313_v2, %v340_v16  ;;  %363 = vadd.xlane.f32.xlu0 %v355_v17  ;;  %v1174_v20 = vsub.f32 %v315_v3, %v342_v18 }
  0xa0   : > { %v331_v22 = vpop.xlane.xlu0 %330  ;;  %v333_v23 = vpop.xlane.xlu1 %332 }
  0xa1   : > { %v343_v24 = vmul.f32 0.0078125, %v331_v22  ;;  %v356_v25 = vmul.f32 %v1172_v19, %v1172_v19  ;;  %v344_v26 = vmul.f32 0.0078125, %v333_v23  ;;  %v358_v29 = vmul.f32 %v1174_v20, %v1174_v20 }
  0xa3   : > { %v1180_v27 = vsub.f32 %v316_v4, %v343_v24  ;;  %367 = vadd.xlane.f32.xlu0 %v357_v21  ;;  %365 = vadd.xlane.f32.xlu1 %v356_v25  ;;  %v1182_v28 = vsub.f32 %v317_v5, %v344_v26 }
  0xa4   : > { %v335_v30 = vpop.xlane.xlu0 %334  ;;  %v337_v31 = vpop.xlane.xlu1 %336 }
  0xa5   : > { %v345_v32 = vmul.f32 0.0078125, %v335_v30  ;;  %v359_v33 = vmul.f32 %v1180_v27, %v1180_v27  ;;  %v346_v34 = vmul.f32 0.0078125, %v337_v31  ;;  %v360_v37 = vmul.f32 %v1182_v28, %v1182_v28  ;;  %v943_v31 = vld [vmem:[%s1365_s2] ss:$0 sm:$0xff] }
  0xa7   : > { %v1188_v35 = vsub.f32 %v318_v6, %v345_v32  ;;  %369 = vadd.xlane.f32.xlu1 %v358_v29  ;;  %371 = vadd.xlane.f32.xlu0 %v359_v33  ;;  %v1190_v36 = vsub.f32 %v319_v7, %v346_v34 }
  0xa9   : > { %v361_v40 = vmul.f32 %v1188_v35, %v1188_v35  ;;  %v362_v42 = vmul.f32 %v1190_v36, %v1190_v36 }
  0xab   : > { %373 = vadd.xlane.f32.xlu1 %v360_v37  ;;  %375 = vadd.xlane.f32.xlu0 %v361_v40 }
  0xaf   : > { %377 = vadd.xlane.f32.xlu1 %v362_v42 }
 0x128   : > { %v364_v1 = vpop.xlane.xlu0 %363 }
 0x129   : > { %v379_v2 = vmul.f32 0.0078125, %v364_v1  ;;  %v441_v1 = vld [vmem:[%s1364_s1 + $0x10] sm:$0xff] }
 0x12b   : > { %v387_v3 = vadd.f32 1e-05, %v379_v2 }
 0x12c   : > { %v366_v4 = vpop.xlane.xlu1 %365  ;;  %v368_v5 = vpop.xlane.xlu0 %367 }
 0x12d   : > { %1082 = vrsqrt.f32 %v387_v3  ;;  %v380_v6 = vmul.f32 0.0078125, %v366_v4  ;;  %v381_v7 = vmul.f32 0.0078125, %v368_v5 }
 0x12f   : > { %v388_v8 = vadd.f32 1e-05, %v380_v6  ;;  %v389_v9 = vadd.f32 1e-05, %v381_v7 }
 0x130   : > { %v370_v10 = vpop.xlane.xlu1 %369  ;;  %v372_v11 = vpop.xlane.xlu0 %371 }
 0x131   : > { %1084 = vrsqrt.f32 %v388_v8  ;;  %v382_v14 = vmul.f32 0.0078125, %v370_v10  ;;  %v383_v15 = vmul.f32 0.0078125, %v372_v11  ;;  %v444_v10 = vld [vmem:[%s1364_s1 + $0x28] sm:$0xff] }
 0x132   : > { %1086 = vrsqrt.f32 %v389_v9 }
 0x133   : > { %v390_v16 = vadd.f32 1e-05, %v382_v14  ;;  %v391_v17 = vadd.f32 1e-05, %v383_v15 }
 0x134   : > { %v374_v18 = vpop.xlane.xlu1 %373  ;;  %v376_v21 = vpop.xlane.xlu0 %375 }
 0x135   : > { %1088 = vrsqrt.f32 %v390_v16  ;;  %v384_v22 = vmul.f32 0.0078125, %v374_v18  ;;  %v385_v23 = vmul.f32 0.0078125, %v376_v21  ;;  %v445_v18 = vld [vmem:[%s1364_s1 + $0x30] sm:$0xff] }
 0x136   : > { %1090 = vrsqrt.f32 %v391_v17  ;;  %v446_v17 = vld [vmem:[%s1364_s1 + $0x38] sm:$0xff] }
 0x137   : > { %v392_v24 = vadd.f32 1e-05, %v384_v22  ;;  %v393_v25 = vadd.f32 1e-05, %v385_v23 }
 0x138   : > { %v378_v26 = vpop.xlane.xlu1 %377 }
 0x139   : > { %1092 = vrsqrt.f32 %v392_v24  ;;  %v386_v29 = vmul.f32 0.0078125, %v378_v26  ;;  %v477_v24 = vlaneseq }
 0x13a   : > { %v1083_v30 = vpop.eup %1082  ;;  %1094 = vrsqrt.f32 %v393_v25 }
 0x13b   : > { %v394_v32 = vadd.f32 1e-05, %v386_v29  ;;  %v403_v33 = vmul.f32 %v1083_v30, %v1166_v12  ;;  %v440_v12 = vld [vmem:[%s1364_s1 + $0x8] sm:$0xff]  ;;  %v478_v25 = vshrl.u32 %v477_v24, 7  ;;  %v475_v30 = vld [vmem:[%s1368_s5] sm:$0x3] }
 0x13d   : > { %1096 = vrsqrt.f32 %v394_v32  ;;  %v417_v34 = vmul.f32 %v943_v31, %v403_v33  ;;  %v479_v26 = vsub.s32 0, %v478_v25  ;;  %v483_v29 = vsub.s32 1, %v478_v25  ;;  %v961_v33 = vld [vmem:[%s1370_s7] ss:$0 sm:$0xff] }
 0x13e   : > { %v1085_v37 = vpop.eup %1084 }
 0x13f   : > { %v1087_v39 = vpop.eup %1086  ;;  %v404_v40 = vmul.f32 %v1085_v37, %v1172_v19  ;;  %v431_v43 = vadd.f32 %v944_v38, %v417_v34  ;;  %v1317_v32 = vrot.slane %v475_v30, %v483_v29 }
 0x140   : > { %v405_v41 = vmul.f32 %v1087_v39, %v1168_v13 }
 0x141   : > { %v418_v42 = vmul.f32 %v943_v31, %v404_v40  ;;  %v447_v50 = vadd.f32 %v439_v45, %v431_v43 }
 0x142   : > { %v1089_v44 = vpop.eup %1088  ;;  %v419_v49 = vmul.f32 %v943_v31, %v405_v41 }
 0x143   : > { %v1091_v46 = vpop.eup %1090  ;;  %v432_v47 = vadd.f32 %v944_v38, %v418_v42  ;;  %v406_v48 = vmul.f32 %v1089_v44, %v1174_v20  ;;  %v442_v20 = vld [vmem:[%s1364_s1 + $0x18] sm:$0xff] }
 0x144   : > { %v407_v19 = vmul.f32 %v1091_v46, %v1180_v27  ;;  %v433_v57 = vadd.f32 %v944_v38, %v419_v49 }
 0x145   : > { %v448_v13 = vadd.f32 %v440_v12, %v432_v47  ;;  %v640_v51 = vpack.c.bf16 %v432_v47, %v431_v43  ;;  %v420_v52 = vmul.f32 %v943_v31, %v406_v48 }
 0x146   : > { %v1093_v53 = vpop.eup %1092  ;;  %v421_v54 = vmul.f32 %v943_v31, %v407_v19  ;;  %v449_v6 = vadd.f32 %v441_v1, %v433_v57 }
 0x147   : > { %v1095_v55 = vpop.eup %1094  ;;  %1032 = vmatprep.mubr.bf16.mxu1 %v640_v51  ;;  %v455_v56 = vpack.c.bf16 %v448_v13, %v447_v50  ;;  %v434_v58 = vadd.f32 %v944_v38, %v420_v52  ;;  %v408_v59 = vmul.f32 %v1093_v53, %v1182_v28 }
 0x148   : > { %v409_v60 = vmul.f32 %v1095_v55, %v1188_v35  ;;  %v435_v63 = vadd.f32 %v944_v38, %v421_v54 }
 0x149   : > { %600 = vmatmul.mubr.bf16.vlgmr.msra.gmra.mxu0 %v455_v56  ;;  %v641_v27 = vpack.c.bf16 %v434_v58, %v433_v57  ;;  %v422_v61 = vmul.f32 %v943_v31, %v408_v59  ;;  %v450_v28 = vadd.f32 %v442_v20, %v434_v58 }
 0x14a   : > { %v1097_v62 = vpop.eup %1096  ;;  %609 = vmatprep.mubr.bf16.mxu0 %v1106_v0  ;;  %v423_v4 = vmul.f32 %v943_v31, %v409_v60 }
 0x14b   : > { %1033 = vmatmul.mubr.bf16.vlgmr.msra.gmra.mxu1 %v641_v27  ;;  %v436_v2 = vadd.f32 %v944_v38, %v422_v61  ;;  %v410_v3 = vmul.f32 %v1097_v62, %v1190_v36  ;;  %v456_v7 = vpack.c.bf16 %v450_v28, %v449_v6  ;;  %v443_v36 = vld [vmem:[%s1364_s1 + $0x20] sm:$0xff] }
 0x14c   : > { %v437_v8 = vadd.f32 %v944_v38, %v423_v4  ;;  %v451_v15 = vadd.f32 %v443_v36, %v435_v63 }
 0x14d   : > { %v642_v5 = vpack.c.bf16 %v436_v2, %v435_v63  ;;  %v424_v35 = vmul.f32 %v943_v31, %v410_v3  ;;  %v452_v14 = vadd.f32 %v444_v10, %v436_v2  ;;  %v1315_v31 = vrot.slane %v475_v30, %v479_v26 }
 0x14e   : > { %v453_v22 = vadd.f32 %v445_v18, %v437_v8 }
 0x14f   : > { %1036 = vmatprep.mubr.bf16.mxu1 %v642_v5  ;;  %v438_v9 = vadd.f32 %v944_v38, %v424_v35  ;;  %v457_v16 = vpack.c.bf16 %v452_v14, %v451_v15 }
 0x151   : > { %610 = vmatmul.mubr.bf16.gmra.mxu0 %v456_v7  ;;  %v643_v11 = vpack.c.bf16 %v438_v9, %v437_v8  ;;  %v454_v21 = vadd.f32 %v446_v17, %v438_v9 }
 0x152   : > { %619 = vmatprep.mubr.bf16.mxu0 %v1106_v0 }
 0x153   : > { %1037 = vmatmul.mubr.bf16.gmra.mxu1 %v643_v11  ;;  %v458_v23 = vpack.c.bf16 %v454_v21, %v453_v22 }
 0x159   : > { %620 = vmatmul.mubr.bf16.gmra.mxu0 %v457_v16 }
 0x15a   : > { %629 = vmatprep.mubr.bf16.mxu0 %v1106_v0 }
 0x161   : > { %630 = vmatmul.mubr.bf16.gmra.mxu0 %v458_v23 }
 0x209   : > { %v601_v0 = vpop.f32.mrf.mxu0 }
 0x20a   : > { %v602_v38 = vadd.f32 %v601_v0, %v1315_v31 }
 0x20b   : > { %v603_v34 = vpop.f32.mrf.mxu0  ;;  %v1034_v37 = vpop.f32.mrf.mxu1 }
 0x20c   : > { %v604_v39 = vadd.f32 %v603_v34, %v1317_v32  ;;  %v758_v40 = vadd.f32 %v1034_v37, %v961_v33 }
 0x20d   : > { %v605_v41 = vpop.f32.mrf.mxu0  ;;  %v749_v42 = vpop.f32.mrf.mxu1 }
 0x20e   : > { %v988_v43 = vpack.c.bf16 %v604_v39, %v602_v38  ;;  %v998_v44 = vpack.c.bf16 %v758_v40, %v758_v40  ;;  %v750_v45 = vadd.f32 %v961_v33, %v749_v42  ;;  %v606_v47 = vadd.f32 %v605_v41, %v1315_v31 }
 0x20f   : > { %v607_v12 = vpop.f32.mrf.mxu0  ;;  %v1035_v46 = vpop.f32.mrf.mxu1 }
 0x210   : > { %828 = vst [vmem:[%s1328_s28] sm:$0xff] %v988_v43  ;;  %870 = vst [vmem:[%s1328_s28 + $0x20] sm:$0xf] %v998_v44  ;;  %v996_v48 = vpack.c.bf16 %v750_v45, %v750_v45  ;;  %v608_v49 = vadd.f32 %v607_v12, %v1317_v32  ;;  %v761_v19 = vadd.f32 %v1035_v46, %v961_v33 }
 0x211   : > { %v611_v50 = vpop.f32.mrf.mxu0  ;;  %v752_v13 = vpop.f32.mrf.mxu1 }
 0x212   : > { %868 = vst [vmem:[%s1328_s28 + $0x8] sm:$0xf] %v996_v48  ;;  %v989_v51 = vpack.c.bf16 %v608_v49, %v606_v47  ;;  %v999_v52 = vpack.c.bf16 %v761_v19, %v761_v19  ;;  %v753_v53 = vadd.f32 %v961_v33, %v752_v13  ;;  %v612_v56 = vadd.f32 %v611_v50, %v1315_v31 }
 0x213   : > { %v613_v54 = vpop.f32.mrf.mxu0  ;;  %v1038_v55 = vpop.f32.mrf.mxu1 }
 0x214   : > { %829 = vst [vmem:[%s1328_s28 + $0xc] sm:$0xff] %v989_v51  ;;  %871 = vst [vmem:[%s1328_s28 + $0x2c] sm:$0xf] %v999_v52  ;;  %v997_v57 = vpack.c.bf16 %v753_v53, %v753_v53  ;;  %v614_v58 = vadd.f32 %v613_v54, %v1317_v32  ;;  %v774_v59 = vadd.f32 %v1038_v55, %v961_v33 }
 0x215   : > { %v615_v20 = vpop.f32.mrf.mxu0  ;;  %v765_v60 = vpop.f32.mrf.mxu1 }
 0x216   : > { %869 = vst [vmem:[%s1328_s28 + $0x14] sm:$0xf] %v997_v57  ;;  %v990_v27 = vpack.c.bf16 %v614_v58, %v612_v56  ;;  %v1002_v61 = vpack.c.bf16 %v774_v59, %v774_v59  ;;  %v766_v62 = vadd.f32 %v961_v33, %v765_v60  ;;  %v616_v2 = vadd.f32 %v615_v20, %v1315_v31 }
 0x217   : > { %v617_v63 = vpop.f32.mrf.mxu0  ;;  %v1039_v1 = vpop.f32.mrf.mxu1 }
 0x218   : > { %830 = vst [vmem:[%s1328_s28 + $0x18] sm:$0xff] %v990_v27  ;;  %874 = vst [vmem:[%s1328_s28 + $0x50] sm:$0xf] %v1002_v61  ;;  %v1000_v28 = vpack.c.bf16 %v766_v62, %v766_v62  ;;  %v618_v3 = vadd.f32 %v617_v63, %v1317_v32  ;;  %v777_v4 = vadd.f32 %v1039_v1, %v961_v33 }
 0x219   : > { %v621_v5 = vpop.f32.mrf.mxu0  ;;  %v768_v6 = vpop.f32.mrf.mxu1 }
 0x21a   : > { %872 = vst [vmem:[%s1328_s28 + $0x38] sm:$0xf] %v1000_v28  ;;  %v991_v35 = vpack.c.bf16 %v618_v3, %v616_v2  ;;  %v1003_v7 = vpack.c.bf16 %v777_v4, %v777_v4  ;;  %v769_v8 = vadd.f32 %v961_v33, %v768_v6  ;;  %v622_v10 = vadd.f32 %v621_v5, %v1315_v31 }
 0x21b   : > { %v623_v9 = vpop.f32.mrf.mxu0 }
 0x21c   : > { %831 = vst [vmem:[%s1328_s28 + $0x24] sm:$0xff] %v991_v35  ;;  %875 = vst [vmem:[%s1328_s28 + $0x5c] sm:$0xf] %v1003_v7  ;;  %v1001_v11 = vpack.c.bf16 %v769_v8, %v769_v8  ;;  %v624_v36 = vadd.f32 %v623_v9, %v1317_v32 }
 0x21d   : > { %v625_v14 = vpop.f32.mrf.mxu0 }
 0x21e   : > { %873 = vst [vmem:[%s1328_s28 + $0x44] sm:$0xf] %v1001_v11  ;;  %v992_v15 = vpack.c.bf16 %v624_v36, %v622_v10  ;;  %v626_v17 = vadd.f32 %v625_v14, %v1315_v31 }
 0x21f   : > { %v627_v16 = vpop.f32.mrf.mxu0 }
 0x220   : > { %832 = vst [vmem:[%s1328_s28 + $0x30] sm:$0xff] %v992_v15  ;;  %v628_v18 = vadd.f32 %v627_v16, %v1317_v32 }
 0x221   : > { %v631_v21 = vpop.f32.mrf.mxu0 }
 0x222   : > { %v993_v22 = vpack.c.bf16 %v628_v18, %v626_v17  ;;  %v632_v24 = vadd.f32 %v631_v21, %v1315_v31 }
 0x223   : > { %v633_v23 = vpop.f32.mrf.mxu0 }
 0x224   : > { %833 = vst [vmem:[%s1328_s28 + $0x3c] sm:$0xff] %v993_v22  ;;  %v634_v25 = vadd.f32 %v633_v23, %v1317_v32 }
 0x225   : > { %v635_v26 = vpop.f32.mrf.mxu0 }
 0x226   : > { %v994_v29 = vpack.c.bf16 %v634_v25, %v632_v24  ;;  %v636_v0 = vadd.f32 %v635_v26, %v1315_v31 }
 0x227   : > { %v637_v30 = vpop.f32.mrf.mxu0 }
 0x228   : > { %834 = vst [vmem:[%s1328_s28 + $0x48] sm:$0xff] %v994_v29  ;;  %v638_v33 = vadd.f32 %v637_v30, %v1317_v32 }
 0x22a   : > { %v995_v34 = vpack.c.bf16 %v638_v33, %v636_v0 }
 0x22c   : > { %835 = vst [vmem:[%s1328_s28 + $0x54] sm:$0xff] %v995_v34 }
 0x22d PF: > { %s18_s27 = sadd.s32 1, %s1104_s27  }
 0x22e   : > { %p15_p4 = scmp.ge.s32.totalorder %s18_s27, 4  }
 0x230   :  { %17 = sbr.rel (!%p15_p4) target bundleno = 1 (0x1), region = 82 }

// kernel: decoder_layer.9
= control target key start
LH: loop header
LB: loop body
LE: loop exit
PB: predicated region body
PF: predicated region fallthrough
CT: control target
= control target key end

     0   :  { %s2512_s12 = smov 0   ;;  %s2514_s13 = smov 0   ;;  %s3049_s0 = inlined_call_operand.vmem [shape: bf16[128,384], index: 0, kind: input, shape index: {}, may-alias: {0,1,2}]   ;;  %s3050_s1 = inlined_call_operand.vmem [shape: bf16[128,384], index: 1, kind: input, shape index: {}, may-alias: {0,1,2}]   ;;  %s3051_s2 = inlined_call_operand.vmem [shape: bf16[128,384], index: 2, kind: input, shape index: {}, may-alias: {0,1,2}]   ;;  %s3052_s3 = inlined_call_operand.vmem [shape: bf16[128,128], index: 3, kind: output, shape index: {}]  }
   0x1   :  { %s2516_s14 = smov 0  }
   0x2 LB: > { %s1906_s15 = sadd.s32 4294967295, %s2487_s14   ;;  %s2529_s16 = sadd.s32 1, %s2487_s14   ;;  %s2487_s14 = sphi %s2516_s14, %s3056_s14   ;;  %s2483_s13 = sphi %s2514_s13, %s3055_s13   ;;  %s2479_s12 = sphi %s2512_s12, %s3054_s12  }
   0x3   : > { %s17_s17 = ssub.s32 %s2487_s14, %s2529_s16  ;;  %s20_s18 = sadd.s32 1, %s2483_s13 }
   0x4   : > { %p18_p0 = scmp.eq.s32.totalorder %s17_s17, 0  ;;  %p27_p1 = scmp.ne.s32.totalorder %s2483_s13, %s2479_s12 }
   0x5   : > { %p28_p2 = scmp.eq.s32.totalorder %s2487_s14, 0  ;;  %p1909_p4 = scmp.ge.s32.totalorder %s2487_s14, 2 }
   0x6   : > { %s2538_s19 = scalar_select %p18_p0, %s2483_s13, %s20_s18  }
   0x7   : > { %p2540_p3 = por %p28_p2, %p27_p1  ;;  %131 = sbr.rel (%p1909_p4) target bundleno = 42 (0x2a), region = 16 }
   0xc   : > { %134 = sbr.rel (!%p2540_p3) target bundleno = 22 (0x16), region = 20  ;;  %s136_s21 = sand.u32 (%p2540_p3), 1, %s2483_s13  }
   0xd   : > { %s2233_s22 = smul.u32 (%p2540_p3), 96, %s2487_s14  ;;  %s1910_s23 = sshll.u32 (%p2540_p3), %s136_s21, 5 }
   0xe   : > { %s138_s27 = scalar_lea.vmem (%p2540_p3), [#allocation2], %s1910_s23 }
   0xf   : > { %s142_s26 = scalar_lea.vmem (%p2540_p3), %s3049_s0, %s2233_s22 }
  0x10   : > { %v159_v0 = vld [vmem:[%s142_s26] sm:$0xf] (%p2540_p3)  ;;  %v161_v1 = vld [vmem:[%s142_s26 + $0xc] sm:$0xf] (%p2540_p3)  ;;  %v163_v2 = vld [vmem:[%s142_s26 + $0x18] sm:$0xf] (%p2540_p3) }
  0x11   : > { %160 = vst [vmem:[%s138_s27] sm:$0xf] %v159_v0  ;;  %162 = vst [vmem:[%s138_s27 + $0x4] sm:$0xf] %v161_v1  ;;  %v165_v3 = vld [vmem:[%s142_s26 + $0x24] sm:$0xf] }
  0x12   : > { %164 = vst [vmem:[%s138_s27 + $0x8] sm:$0xf] %v163_v2  ;;  %v167_v4 = vld [vmem:[%s142_s26 + $0x30] sm:$0xf]  ;;  %v169_v5 = vld [vmem:[%s142_s26 + $0x3c] sm:$0xf] }
  0x13   : > { %166 = vst [vmem:[%s138_s27 + $0xc] sm:$0xf] %v165_v3  ;;  %168 = vst [vmem:[%s138_s27 + $0x10] sm:$0xf] %v167_v4  ;;  %v171_v6 = vld [vmem:[%s142_s26 + $0x48] sm:$0xf] }
  0x14   : > { %170 = vst [vmem:[%s138_s27 + $0x14] sm:$0xf] %v169_v5  ;;  %v173_v7 = vld [vmem:[%s142_s26 + $0x54] sm:$0xf]  ;;  %172 = vst [vmem:[%s138_s27 + $0x18] sm:$0xf] %v171_v6 }
  0x15   : > { %174 = vst [vmem:[%s138_s27 + $0x1c] sm:$0xf] %v173_v7 }
  0x16 PF: > { %214 = sbr.rel (!%p2540_p3) target bundleno = 32 (0x20), region = 61  ;;  %s216_s28 = sand.u32 (%p2540_p3), 1, %s2483_s13  }
  0x17   : > { %s1915_s29 = smul.u32 (%p2540_p3), 96, %s2487_s14  ;;  %s1914_s30 = sshll.u32 (%p2540_p3), %s216_s28, 5 }
  0x18   : > { %s218_s7 = scalar_lea.vmem (%p2540_p3), [#allocation3], %s1914_s30 }
  0x19   : > { %s1834_s6 = scalar_lea.vmem (%p2540_p3), %s3050_s1, %s1915_s29 }
  0x1a   : > { %v1916_v8 = vld [vmem:[%s1834_s6 + $0x4] sm:$0xf] (%p2540_p3)  ;;  %v1917_v9 = vld [vmem:[%s1834_s6 + $0x10] sm:$0xf] (%p2540_p3)  ;;  %v1918_v10 = vld [vmem:[%s1834_s6 + $0x1c] sm:$0xf] (%p2540_p3) }
  0x1b   : > { %241 = vst [vmem:[%s218_s7] sm:$0xf] %v1916_v8  ;;  %243 = vst [vmem:[%s218_s7 + $0x4] sm:$0xf] %v1917_v9  ;;  %v1919_v11 = vld [vmem:[%s1834_s6 + $0x28] sm:$0xf] }
  0x1c   : > { %245 = vst [vmem:[%s218_s7 + $0x8] sm:$0xf] %v1918_v10  ;;  %v1920_v12 = vld [vmem:[%s1834_s6 + $0x34] sm:$0xf]  ;;  %v1921_v13 = vld [vmem:[%s1834_s6 + $0x40] sm:$0xf] }
  0x1d   : > { %247 = vst [vmem:[%s218_s7 + $0xc] sm:$0xf] %v1919_v11  ;;  %249 = vst [vmem:[%s218_s7 + $0x10] sm:$0xf] %v1920_v12  ;;  %v1922_v14 = vld [vmem:[%s1834_s6 + $0x4c] sm:$0xf] }
  0x1e   : > { %251 = vst [vmem:[%s218_s7 + $0x14] sm:$0xf] %v1921_v13  ;;  %v1923_v15 = vld [vmem:[%s1834_s6 + $0x58] sm:$0xf]  ;;  %253 = vst [vmem:[%s218_s7 + $0x18] sm:$0xf] %v1922_v14 }
  0x1f   : > { %255 = vst [vmem:[%s218_s7 + $0x1c] sm:$0xf] %v1923_v15 }
  0x20 PF: > { %295 = sbr.rel (!%p2540_p3) target bundleno = 42 (0x2a), region = 102  ;;  %s297_s8 = sand.u32 (%p2540_p3), 1, %s2483_s13  }
  0x21   : > { %s1925_s9 = smul.u32 (%p2540_p3), 96, %s2487_s14  ;;  %s1924_s10 = sshll.u32 (%p2540_p3), %s297_s8, 5 }
  0x22   : > { %s299_s21 = scalar_lea.vmem (%p2540_p3), [#allocation4], %s1924_s10 }
  0x23   : > { %s1840_s18 = scalar_lea.vmem (%p2540_p3), %s3051_s2, %s1925_s9 }
  0x24   : > { %v1926_v16 = vld [vmem:[%s1840_s18 + $0x8] sm:$0xf] (%p2540_p3)  ;;  %v1927_v17 = vld [vmem:[%s1840_s18 + $0x14] sm:$0xf] (%p2540_p3)  ;;  %v1928_v18 = vld [vmem:[%s1840_s18 + $0x20] sm:$0xf] (%p2540_p3) }
  0x25   : > { %322 = vst [vmem:[%s299_s21] sm:$0xf] %v1926_v16  ;;  %324 = vst [vmem:[%s299_s21 + $0x4] sm:$0xf] %v1927_v17  ;;  %v1929_v19 = vld [vmem:[%s1840_s18 + $0x2c] sm:$0xf] }
  0x26   : > { %326 = vst [vmem:[%s299_s21 + $0x8] sm:$0xf] %v1928_v18  ;;  %v1930_v20 = vld [vmem:[%s1840_s18 + $0x38] sm:$0xf]  ;;  %v1931_v21 = vld [vmem:[%s1840_s18 + $0x44] sm:$0xf] }
  0x27   : > { %328 = vst [vmem:[%s299_s21 + $0xc] sm:$0xf] %v1929_v19  ;;  %330 = vst [vmem:[%s299_s21 + $0x10] sm:$0xf] %v1930_v20  ;;  %v1932_v22 = vld [vmem:[%s1840_s18 + $0x50] sm:$0xf] }
  0x28   : > { %332 = vst [vmem:[%s299_s21 + $0x14] sm:$0xf] %v1931_v21  ;;  %v1933_v23 = vld [vmem:[%s1840_s18 + $0x5c] sm:$0xf]  ;;  %334 = vst [vmem:[%s299_s21 + $0x18] sm:$0xf] %v1932_v22 }
  0x29   : > { %336 = vst [vmem:[%s299_s21 + $0x1c] sm:$0xf] %v1933_v23 }
  0x2a PF: > { %p1934_p5 = scmp.ge.s32.totalorder %s2487_s14, 1  ;;  %p375_p6 = scmp.lt.s32.totalorder %s2487_s14, 3 }
  0x2c   : > { %p376_p7 = pnand %p1934_p5, %p375_p6 }
  0x2d   : > { %s382_s20 = sand.u32 (!%p376_p7), 1, %s2479_s12   ;;  %s2489_s25 = smov (!%p376_p7), 96  }
  0x2e   : > { %379 = sbr.rel (%p376_p7) target bundleno = 2682 (0xa7a), region = 143  ;;  %s2569_s22 = sshll.u32 (!%p376_p7), %s382_s20, 5 }
  0x2f   : > { %s391_s23 = scalar_lea.vmem (!%p376_p7), [#allocation3], %s2569_s22  ;;  %s384_s12 = scalar_lea.vmem (!%p376_p7), [#allocation2], %s2569_s22 }
  0x30   : > { %s2652_s24 = scalar_lea.vmem (!%p376_p7), [#allocation4], %s2569_s22  ;;  %s2490_s26 = smov (!%p376_p7), 64  }
  0x31   : > { %s2491_s27 = smov (!%p376_p7), 32   ;;  %s1938_s28 = sshll.u32 (!%p376_p7), %s1906_s15, 3 }
  0x32   : > { %p431_p8 = scmp.lt.s32.totalorder (!%p376_p7), %s1938_s28, 15 }
  0x33   : > { %vm501_vm0 = vcmask 261120   ;;  %v2572_v24 = vld [vmem:[%s391_s23 + $0x18] sm:$0xff]   ;;  %v2574_v25 = vld [vmem:[%s391_s23 + $0x10] sm:$0xff]   ;;  %v2583_v27 = vld [vmem:[%s384_s12] sm:$0xff]   ;;  %vm591_vm1 = vcmask 523264   ;;  %vm1755_vm2 = vcmask 785408  }
  0x34   : > { %2217 = vmatprep.subr.msk.bf16.mxu0 %vm501_vm0, %v2572_v24  ;;  %v524_v26 = vsel %vm501_vm0, %v2572_v24, 0  ;;  %2097 = vmatprep.mubr.msk.bf16.mxu0 %vm501_vm0, %v2583_v27  ;;  %v521_v28 = vsel %vm501_vm0, %v2574_v25, 0  ;;  %v2589_v29 = vld [vmem:[%s391_s23 + $0x8] sm:$0xff]   ;;  %v2595_v31 = vld [vmem:[%s391_s23] sm:$0xff]   ;;  %v2603_v34 = vld [vmem:[%s384_s12 + $0x10] sm:$0xff]   ;;  %s3058_s28 = smov (!%p431_p8, %s1938_s28), 15 }
  0x35   : > { %2090 = vmatpush3.bf16.xpose.msra.mxu0 %v524_v26  ;;  %v518_v30 = vsel %vm501_vm0, %v2589_v29, 0  ;;  %v515_v32 = vsel %vm501_vm0, %v2595_v31, 0  ;;  %v2601_v33 = vld [vmem:[%s384_s12 + $0x8] sm:$0xff]   ;;  %v2609_v35 = vld [vmem:[%s384_s12 + $0x18] sm:$0xff]   ;;  %v2660_v19 = vld [vmem:[%s2652_s24 + $0x10] sm:$0xff]   ;;  %s1939_s29 = sshll.u32 %s3058_s28, 2 }
  0x36   : > { %2218 = vmatprep.subr.msk.bf16.mxu0 %vm501_vm0, %v2574_v25  ;;  %v2655_v18 = vld [vmem:[%s2652_s24 + $0x18] sm:$0xff]   ;;  %v2667_v20 = vld [vmem:[%s2652_s24 + $0x8] sm:$0xff]   ;;  %v2670_v21 = vld [vmem:[%s2652_s24] sm:$0xff]   ;;  %s3011_s30 = scalar_lea.vmem %s3052_s3, %s1939_s29 }
  0x37   : > { %2105 = vmatprep.subr.bf16.mxu1 %v2655_v18 }
  0x38   : > { %2106 = vmatpush3.bf16.msra.mxu1 %v2655_v18 }
  0x39   : > { %2107 = vmatprep.subr.bf16.mxu1 %v2660_v19 }
  0x3c   : > { %2108 = vmatpush3.bf16.msra.mxu1 %v2660_v19 }
  0x3d   : > { %2092 = vmatpush3.bf16.xpose.msra.mxu0 %v521_v28  ;;  %2109 = vmatprep.subr.bf16.mxu1 %v2667_v20 }
  0x3e   : > { %2219 = vmatprep.subr.msk.bf16.mxu0 %vm501_vm0, %v2589_v29 }
  0x40   : > { %2110 = vmatpush3.bf16.msra.mxu1 %v2667_v20 }
  0x41   : > { %2111 = vmatprep.subr.bf16.mxu1 %v2670_v21 }
  0x44   : > { %2112 = vmatpush3.bf16.msra.mxu1 %v2670_v21 }
  0x45   : > { %2094 = vmatpush3.bf16.xpose.msra.mxu0 %v518_v30 }
  0x46   : > { %2220 = vmatprep.subr.msk.bf16.mxu0 %vm501_vm0, %v2595_v31 }
  0x4d   : > { %2096 = vmatpush3.bf16.xpose.msra.mxu0 %v515_v32 }
  0x54   : > { %2098 = vmatmul.mubr.msk.bf16.vlgmr.msra.gmra.mxu0 %vm501_vm0, %v2601_v33 }
  0x55   : > { %2101 = vmatprep.mubr.msk.bf16.mxu0 %vm501_vm0, %v2603_v34 }
  0x5c   : > { %2102 = vmatmul.mubr.msk.bf16.gmra.mxu0 %vm501_vm0, %v2609_v35 }
 0x114   : > { %v2099_v36 = vpop.f32.mrf.mxu0 }
 0x115   : > { %v598_v37 = vsel %vm591_vm1, %v2099_v36, -inf }
 0x116   : > { %599 = vmax.xlane.f32.xlu1 %v598_v37  ;;  %v560_v38 = vpop.f32.mrf.mxu0 }
 0x117   : > { %v592_v39 = vsel %vm591_vm1, %v560_v38, -inf }
 0x118   : > { %593 = vmax.xlane.f32.xlu0 %v592_v39  ;;  %v2100_v40 = vpop.f32.mrf.mxu0 }
 0x119   : > { %v601_v41 = vsel %vm591_vm1, %v2100_v40, -inf }
 0x11a   : > { %602 = vmax.xlane.f32.xlu1 %v601_v41  ;;  %v563_v42 = vpop.f32.mrf.mxu0 }
 0x11b   : > { %v595_v43 = vsel %vm591_vm1, %v563_v42, -inf }
 0x11c   : > { %596 = vmax.xlane.f32.xlu0 %v595_v43  ;;  %v2103_v44 = vpop.f32.mrf.mxu0 }
 0x11d   : > { %v610_v48 = vsel %vm591_vm1, %v2103_v44, -inf }
 0x11e   : > { %v576_v45 = vpop.f32.mrf.mxu0 }
 0x11f   : > { %v604_v46 = vsel %vm591_vm1, %v576_v45, -inf }
 0x120   : > { %605 = vmax.xlane.f32.xlu0 %v604_v46  ;;  %v2618_v47 = vpop.f32.mrf.mxu0 }
 0x121   : > { %v613_v51 = vsel %vm591_vm1, %v2618_v47, -inf }
 0x122   : > { %v2621_v49 = vpop.f32.mrf.mxu0 }
 0x123   : > { %v607_v50 = vsel %vm591_vm1, %v2621_v49, -inf }
 0x124   : > { %611 = vmax.xlane.f32.xlu0 %v610_v48  ;;  %608 = vmax.xlane.f32.xlu1 %v607_v50 }
 0x128   : > { %614 = vmax.xlane.f32.xlu1 %v613_v51 }
 0x19f   : > { %v600_v52 = vpop.xlane.xlu1 %599 }
 0x1a0   : > { %v618_v53 = vsub.f32 %v2099_v36, %v600_v52 }
 0x1a1   : > { %v594_v54 = vpop.xlane.xlu0 %593 }
 0x1a2   : > { %v628_v55 = vmul.f32 1.442695, %v618_v53  ;;  %v616_v56 = vsub.f32 %v560_v38, %v594_v54 }
 0x1a3   : > { %v603_v57 = vpop.xlane.xlu1 %602 }
 0x1a4   : > { %2333 = vpow2.f32 %v628_v55  ;;  %v624_v58 = vmul.f32 1.442695, %v616_v56  ;;  %v619_v59 = vsub.f32 %v2100_v40, %v603_v57 }
 0x1a5   : > { %v597_v60 = vpop.xlane.xlu0 %596 }
 0x1a6   : > { %2335 = vpow2.f32 %v624_v58  ;;  %v630_v61 = vmul.f32 1.442695, %v619_v59  ;;  %v617_v62 = vsub.f32 %v563_v42, %v597_v60 }
 0x1a8   : > { %2337 = vpow2.f32 %v630_v61  ;;  %v626_v63 = vmul.f32 1.442695, %v617_v62 }
 0x1a9   : > { %v606_v0 = vpop.xlane.xlu0 %605 }
 0x1aa   : > { %2339 = vpow2.f32 %v626_v63  ;;  %v620_v1 = vsub.f32 %v576_v45, %v606_v0 }
 0x1ac   : > { %v632_v4 = vmul.f32 1.442695, %v620_v1 }
 0x1ad   : > { %v612_v2 = vpop.xlane.xlu0 %611  ;;  %v609_v22 = vpop.xlane.xlu1 %608 }
 0x1ae   : > { %v622_v3 = vsub.f32 %v2103_v44, %v612_v2  ;;  %v621_v28 = vsub.f32 %v2621_v49, %v609_v22 }
 0x1b0   : > { %v636_v5 = vmul.f32 1.442695, %v622_v3  ;;  %v634_v32 = vmul.f32 1.442695, %v621_v28 }
 0x1b1   : > { %v2627_v6 = vpop.eup %2333  ;;  %v615_v23 = vpop.xlane.xlu1 %614 }
 0x1b2   : > { %2341 = vpow2.f32 %v636_v5  ;;  %v646_v7 = vsel %vm591_vm1, %v2627_v6, 0.0  ;;  %v623_v26 = vsub.f32 %v2618_v47, %v615_v23 }
 0x1b3   : > { %v2631_v8 = vpop.eup %2335  ;;  %647 = vadd.xlane.f32.xlu0 %v646_v7  ;;  %2343 = vpow2.f32 %v632_v4 }
 0x1b4   : > { %v640_v10 = vsel %vm591_vm1, %v2631_v8, 0.0  ;;  %v638_v30 = vmul.f32 1.442695, %v623_v26 }
 0x1b5   : > { %v2633_v9 = vpop.eup %2337 }
 0x1b6   : > { %v649_v11 = vsel %vm591_vm1, %v2633_v9, 0.0  ;;  %2345 = vpow2.f32 %v638_v30 }
 0x1b7   : > { %v2639_v12 = vpop.eup %2339  ;;  %641 = vadd.xlane.f32.xlu0 %v640_v10  ;;  %650 = vadd.xlane.f32.xlu1 %v649_v11  ;;  %2347 = vpow2.f32 %v634_v32 }
 0x1b8   : > { %v643_v13 = vsel %vm591_vm1, %v2639_v12, 0.0 }
 0x1bb   : > { %644 = vadd.xlane.f32.xlu1 %v643_v13 }
 0x1bf   : > { %v2643_v14 = vpop.eup %2341 }
 0x1c0   : > { %v658_v15 = vsel %vm591_vm1, %v2643_v14, 0.0  ;;  %v2647_v16 = vpop.eup %2343 }
 0x1c1   : > { %659 = vadd.xlane.f32.xlu0 %v658_v15  ;;  %v652_v17 = vsel %vm591_vm1, %v2647_v16, 0.0 }
 0x1c3   : > { %v2346_v36 = vpop.eup %2345 }
 0x1c4   : > { %v661_v37 = vsel %vm591_vm1, %v2346_v36, 0.0  ;;  %v2348_v38 = vpop.eup %2347 }
 0x1c5   : > { %653 = vadd.xlane.f32.xlu0 %v652_v17  ;;  %v655_v39 = vsel %vm591_vm1, %v2348_v38, 0.0 }
 0x1cc   : > { %797 = vrot.lane.b32.xlu1 %v2574_v25, %s2489_s25 }
 0x1d0   : > { %795 = vrot.lane.b32.xlu1 %v2589_v29, %s2489_s25 }
 0x1db   : > { %799 = vrot.lane.b32.xlu0 %v2572_v24, %s2489_s25 }
 0x1df   : > { %785 = vrot.lane.b32.xlu0 %v2583_v27, %s2489_s25 }
 0x1e3   : > { %789 = vrot.lane.b32.xlu0 %v2603_v34, %s2489_s25 }
 0x1f4   : > { %662 = vadd.xlane.f32.xlu1 %v661_v37 }
 0x1f8   : > { %656 = vadd.xlane.f32.xlu1 %v655_v39 }
 0x209   : > { %793 = vrot.lane.b32.xlu1 %v2595_v31, %s2489_s25 }
 0x20d   : > { %787 = vrot.lane.b32.xlu1 %v2601_v33, %s2489_s25 }
 0x211   : > { %791 = vrot.lane.b32.xlu1 %v2609_v35, %s2489_s25 }
 0x23c   : > { %v648_v40 = vpop.xlane.xlu0 %647 }
 0x240   : > { %v642_v41 = vpop.xlane.xlu0 %641  ;;  %v651_v42 = vpop.xlane.xlu1 %650 }
 0x241   : > { %2349 = vrcp.f32 %v651_v42 }
 0x242   : > { %2351 = vrcp.f32 %v642_v41 }
 0x243   : > { %2353 = vrcp.f32 %v648_v40 }
 0x244   : > { %v645_v43 = vpop.xlane.xlu1 %644 }
 0x245   : > { %2355 = vrcp.f32 %v645_v43 }
 0x248   : > { %v798_v58 = vpop.permute.xlu1 %797 }
 0x249   : > { %v820_v59 = vsel %vm501_vm0, %v798_v58, 0 }
 0x24a   : > { %v660_v44 = vpop.xlane.xlu0 %659 }
 0x24c   : > { %v796_v60 = vpop.permute.xlu1 %795 }
 0x24d   : > { %v817_v61 = vsel %vm501_vm0, %v796_v60, 0 }
 0x24e   : > { %v654_v45 = vpop.xlane.xlu0 %653  ;;  %v2350_v46 = vpop.eup %2349 }
 0x24f   : > { %v2352_v47 = vpop.eup %2351  ;;  %v675_v51 = vmul.f32 %v2350_v46, %v2633_v9 }
 0x250   : > { %v2354_v48 = vpop.eup %2353  ;;  %v672_v52 = vmul.f32 %v2352_v47, %v2631_v8 }
 0x251   : > { %v674_v54 = vmul.f32 %v2354_v48, %v2627_v6 }
 0x252   : > { %v2356_v49 = vpop.eup %2355  ;;  %v800_v50 = vpop.permute.xlu0 %799 }
 0x253   : > { %v673_v53 = vmul.f32 %v2356_v49, %v2639_v12  ;;  %2221 = vmatprep.subr.msk.bf16.mxu1 %vm501_vm0, %v800_v50  ;;  %v823_v56 = vsel %vm501_vm0, %v800_v50, 0  ;;  %v681_v57 = vpack.c.bf16 %v675_v51, %v674_v54 }
 0x255   : > { %v680_v55 = vpack.c.bf16 %v673_v53, %v672_v52 }
 0x256   : > { %v786_v12 = vpop.permute.xlu0 %785 }
 0x257   : > { %2113 = vmatprep.mubr.msk.bf16.mxu1 %vm591_vm1, %v680_v55 }
 0x258   : > { %2114 = vmatmul.mubr.msk.bf16.vlgmr.msra.gmra.mxu1 %vm591_vm1, %v681_v57 }
 0x259   : > { %2122 = vmatpush3.bf16.xpose.msra.mxu1 %v823_v56 }
 0x25a   : > { %2222 = vmatprep.subr.msk.bf16.mxu1 %vm501_vm0, %v798_v58  ;;  %v790_v15 = vpop.permute.xlu0 %789 }
 0x261   : > { %2124 = vmatpush3.bf16.xpose.msra.mxu1 %v820_v59 }
 0x262   : > { %2223 = vmatprep.subr.msk.bf16.mxu1 %vm501_vm0, %v796_v60 }
 0x269   : > { %2126 = vmatpush3.bf16.xpose.msra.mxu1 %v817_v61 }
 0x27d   : > { %v663_v62 = vpop.xlane.xlu1 %662 }
 0x27e   : > { %2357 = vrcp.f32 %v663_v62 }
 0x27f   : > { %2359 = vrcp.f32 %v654_v45 }
 0x280   : > { %2361 = vrcp.f32 %v660_v44 }
 0x281   : > { %v657_v63 = vpop.xlane.xlu1 %656 }
 0x282   : > { %2363 = vrcp.f32 %v657_v63 }
 0x285   : > { %v794_v0 = vpop.permute.xlu1 %793 }
 0x286   : > { %v814_v1 = vsel %vm501_vm0, %v794_v0, 0  ;;  %2224 = vmatprep.subr.msk.bf16.mxu1 %vm501_vm0, %v794_v0 }
 0x287   : > { %2128 = vmatpush3.bf16.xpose.msra.mxu1 %v814_v1 }
 0x289   : > { %v788_v13 = vpop.permute.xlu1 %787 }
 0x28b   : > { %v2358_v2 = vpop.eup %2357 }
 0x28c   : > { %v2360_v3 = vpop.eup %2359  ;;  %v679_v6 = vmul.f32 %v2358_v2, %v2346_v36 }
 0x28d   : > { %v2362_v4 = vpop.eup %2361  ;;  %v676_v7 = vmul.f32 %v2360_v3, %v2647_v16  ;;  %v792_v17 = vpop.permute.xlu1 %791 }
 0x28e   : > { %v678_v9 = vmul.f32 %v2362_v4, %v2643_v14 }
 0x28f   : > { %v2364_v5 = vpop.eup %2363 }
 0x290   : > { %v677_v8 = vmul.f32 %v2364_v5, %v2348_v38  ;;  %v683_v11 = vpack.c.bf16 %v679_v6, %v678_v9 }
 0x292   : > { %v682_v10 = vpack.c.bf16 %v677_v8, %v676_v7 }
 0x294   : > { %2117 = vmatprep.mubr.msk.bf16.mxu1 %vm591_vm1, %v682_v10 }
 0x295   : > { %2118 = vmatmul.mubr.msk.bf16.gmra.mxu1 %vm591_vm1, %v683_v11 }
 0x296   : > { %2129 = vmatprep.mubr.msk.bf16.mxu1 %vm501_vm0, %v786_v12 }
 0x29d   : > { %2130 = vmatmul.mubr.msk.bf16.vlgmr.msra.gmra.mxu1 %vm501_vm0, %v788_v13 }
 0x29e   : > { %2133 = vmatprep.mubr.msk.bf16.mxu1 %vm501_vm0, %v790_v15 }
 0x2a5   : > { %2134 = vmatmul.mubr.msk.bf16.gmra.mxu1 %vm501_vm0, %v792_v17 }
 0x318   : > { %v2716_v16 = vpop.f32.mrf.mxu1 }
 0x31a   : > { %v2718_v14 = vpop.f32.mrf.mxu1 }
 0x31c   : > { %v2720_v22 = vpop.f32.mrf.mxu1 }
 0x31e   : > { %v2722_v23 = vpop.f32.mrf.mxu1 }
 0x355   : > { %v2724_v26 = vpop.f32.mrf.mxu1 }
 0x357   : > { %v2726_v28 = vpop.f32.mrf.mxu1 }
 0x359   : > { %v2728_v30 = vpop.f32.mrf.mxu1 }
 0x35b   : > { %v2730_v32 = vpop.f32.mrf.mxu1 }
 0x35d   : > { %v2131_v36 = vpop.f32.mrf.mxu1 }
 0x35e   : > { %v896_v41 = vsel %vm591_vm1, %v2131_v36, -inf }
 0x35f   : > { %v859_v37 = vpop.f32.mrf.mxu1 }
 0x360   : > { %v890_v38 = vsel %vm591_vm1, %v859_v37, -inf }
 0x361   : > { %891 = vmax.xlane.f32.xlu0 %v890_v38  ;;  %v2132_v39 = vpop.f32.mrf.mxu1 }
 0x362   : > { %v899_v45 = vsel %vm591_vm1, %v2132_v39, -inf }
 0x363   : > { %v862_v40 = vpop.f32.mrf.mxu1 }
 0x364   : > { %v893_v42 = vsel %vm591_vm1, %v862_v40, -inf }
 0x365   : > { %897 = vmax.xlane.f32.xlu0 %v896_v41  ;;  %894 = vmax.xlane.f32.xlu1 %v893_v42  ;;  %v2135_v43 = vpop.f32.mrf.mxu1 }
 0x366   : > { %v908_v48 = vsel %vm591_vm1, %v2135_v43, -inf }
 0x367   : > { %v875_v44 = vpop.f32.mrf.mxu1 }
 0x368   : > { %v902_v51 = vsel %vm591_vm1, %v875_v44, -inf }
 0x369   : > { %900 = vmax.xlane.f32.xlu0 %v899_v45  ;;  %v2136_v46 = vpop.f32.mrf.mxu1 }
 0x36a   : > { %v911_v47 = vsel %vm591_vm1, %v2136_v46, -inf }
 0x36b   : > { %912 = vmax.xlane.f32.xlu1 %v911_v47  ;;  %v878_v49 = vpop.f32.mrf.mxu1 }
 0x36c   : > { %v905_v50 = vsel %vm591_vm1, %v878_v49, -inf }
 0x36d   : > { %909 = vmax.xlane.f32.xlu0 %v908_v48 }
 0x36f   : > { %906 = vmax.xlane.f32.xlu1 %v905_v50 }
 0x371   : > { %903 = vmax.xlane.f32.xlu0 %v902_v51 }
 0x380   : > { %986 = vrot.lane.b32.xlu1 %v2660_v19, %s2489_s25 }
 0x384   : > { %984 = vrot.lane.b32.xlu1 %v2667_v20, %s2489_s25 }
 0x387   : > { %988 = vrot.lane.b32.xlu0 %v2655_v18, %s2489_s25 }
 0x388   : > { %982 = vrot.lane.b32.xlu1 %v2670_v21, %s2489_s25 }
 0x3ea   : > { %v892_v52 = vpop.xlane.xlu0 %891 }
 0x3eb   : > { %v914_v53 = vsub.f32 %v859_v37, %v892_v52 }
 0x3ed   : > { %v922_v57 = vmul.f32 1.442695, %v914_v53 }
 0x3ee   : > { %v898_v54 = vpop.xlane.xlu0 %897  ;;  %v895_v55 = vpop.xlane.xlu1 %894 }
 0x3ef   : > { %v916_v56 = vsub.f32 %v2131_v36, %v898_v54  ;;  %v915_v59 = vsub.f32 %v862_v40, %v895_v55 }
 0x3f1   : > { %v926_v58 = vmul.f32 1.442695, %v916_v56  ;;  %v924_v63 = vmul.f32 1.442695, %v915_v59 }
 0x3f2   : > { %v901_v60 = vpop.xlane.xlu0 %900 }
 0x3f3   : > { %2365 = vpow2.f32 %v926_v58  ;;  %v917_v61 = vsub.f32 %v2132_v39, %v901_v60 }
 0x3f4   : > { %v913_v62 = vpop.xlane.xlu1 %912  ;;  %2367 = vpow2.f32 %v922_v57 }
 0x3f5   : > { %v928_v0 = vmul.f32 1.442695, %v917_v61  ;;  %v921_v1 = vsub.f32 %v2136_v46, %v913_v62 }
 0x3f6   : > { %v910_v2 = vpop.xlane.xlu0 %909 }
 0x3f7   : > { %2369 = vpow2.f32 %v928_v0  ;;  %v920_v3 = vsub.f32 %v2135_v43, %v910_v2  ;;  %v936_v5 = vmul.f32 1.442695, %v921_v1 }
 0x3f8   : > { %v907_v4 = vpop.xlane.xlu1 %906  ;;  %2371 = vpow2.f32 %v924_v63 }
 0x3f9   : > { %v934_v6 = vmul.f32 1.442695, %v920_v3  ;;  %v919_v7 = vsub.f32 %v878_v49, %v907_v4 }
 0x3fa   : > { %v904_v8 = vpop.xlane.xlu0 %903 }
 0x3fb   : > { %2373 = vpow2.f32 %v934_v6  ;;  %v918_v9 = vsub.f32 %v875_v44, %v904_v8  ;;  %v932_v11 = vmul.f32 1.442695, %v919_v7 }
 0x3fc   : > { %v987_v10 = vpop.permute.xlu1 %986  ;;  %2375 = vpow2.f32 %v936_v5 }
 0x3fd   : > { %v930_v12 = vmul.f32 1.442695, %v918_v9 }
 0x3fe   : > { %v989_v13 = vpop.permute.xlu0 %988 }
 0x3ff   : > { %2377 = vpow2.f32 %v930_v12  ;;  %2137 = vmatprep.subr.bf16.mxu0 %v989_v13 }
 0x400   : > { %v2748_v15 = vpop.eup %2365  ;;  %2138 = vmatpush3.bf16.msra.mxu0 %v989_v13  ;;  %v985_v17 = vpop.permute.xlu1 %984  ;;  %2379 = vpow2.f32 %v932_v11 }
 0x401   : > { %v944_v36 = vsel %vm591_vm1, %v2748_v15, 0.0  ;;  %2139 = vmatprep.subr.bf16.mxu0 %v987_v10  ;;  %v2368_v37 = vpop.eup %2367 }
 0x402   : > { %945 = vadd.xlane.f32.xlu0 %v944_v36  ;;  %v938_v39 = vsel %vm591_vm1, %v2368_v37, 0.0 }
 0x404   : > { %v2370_v38 = vpop.eup %2369  ;;  %2140 = vmatpush3.bf16.msra.mxu0 %v987_v10  ;;  %v983_v42 = vpop.permute.xlu1 %982 }
 0x405   : > { %v947_v40 = vsel %vm591_vm1, %v2370_v38, 0.0  ;;  %2141 = vmatprep.subr.bf16.mxu0 %v985_v17  ;;  %v2372_v41 = vpop.eup %2371 }
 0x406   : > { %939 = vadd.xlane.f32.xlu0 %v938_v39  ;;  %948 = vadd.xlane.f32.xlu1 %v947_v40  ;;  %v941_v45 = vsel %vm591_vm1, %v2372_v41, 0.0 }
 0x408   : > { %v2754_v43 = vpop.eup %2373  ;;  %2142 = vmatpush3.bf16.msra.mxu0 %v985_v17 }
 0x409   : > { %v956_v44 = vsel %vm591_vm1, %v2754_v43, 0.0  ;;  %2143 = vmatprep.subr.bf16.mxu0 %v983_v42  ;;  %v2376_v46 = vpop.eup %2375 }
 0x40a   : > { %957 = vadd.xlane.f32.xlu0 %v956_v44  ;;  %942 = vadd.xlane.f32.xlu1 %v941_v45  ;;  %v959_v49 = vsel %vm591_vm1, %v2376_v46, 0.0 }
 0x40c   : > { %v2378_v47 = vpop.eup %2377  ;;  %2144 = vmatpush3.bf16.msra.mxu0 %v983_v42 }
 0x40d   : > { %v950_v48 = vsel %vm591_vm1, %v2378_v47, 0.0  ;;  %v2380_v50 = vpop.eup %2379 }
 0x40e   : > { %951 = vadd.xlane.f32.xlu1 %v950_v48  ;;  %960 = vadd.xlane.f32.xlu0 %v959_v49  ;;  %v953_v51 = vsel %vm591_vm1, %v2380_v50, 0.0 }
 0x412   : > { %954 = vadd.xlane.f32.xlu0 %v953_v51 }
 0x41f   : > { %1083 = vrot.lane.b32.xlu1 %v2574_v25, %s2490_s26 }
 0x423   : > { %1081 = vrot.lane.b32.xlu1 %v2589_v29, %s2490_s26 }
 0x427   : > { %1079 = vrot.lane.b32.xlu1 %v2595_v31, %s2490_s26 }
 0x428   : > { %1085 = vrot.lane.b32.xlu0 %v2572_v24, %s2490_s26 }
 0x42b   : > { %1073 = vrot.lane.b32.xlu1 %v2601_v33, %s2490_s26 }
 0x42c   : > { %1071 = vrot.lane.b32.xlu0 %v2583_v27, %s2490_s26 }
 0x42f   : > { %1077 = vrot.lane.b32.xlu1 %v2609_v35, %s2490_s26 }
 0x430   : > { %1075 = vrot.lane.b32.xlu0 %v2603_v34, %s2490_s26 }
 0x48b   : > { %v946_v52 = vpop.xlane.xlu0 %945 }
 0x48f   : > { %v940_v53 = vpop.xlane.xlu0 %939  ;;  %v949_v54 = vpop.xlane.xlu1 %948 }
 0x490   : > { %2381 = vrcp.f32 %v949_v54 }
 0x491   : > { %2383 = vrcp.f32 %v940_v53 }
 0x492   : > { %2385 = vrcp.f32 %v946_v52 }
 0x493   : > { %v958_v55 = vpop.xlane.xlu0 %957  ;;  %v943_v56 = vpop.xlane.xlu1 %942 }
 0x494   : > { %2387 = vrcp.f32 %v943_v56 }
 0x497   : > { %v961_v57 = vpop.xlane.xlu0 %960  ;;  %v952_v58 = vpop.xlane.xlu1 %951 }
 0x498   : > { %2389 = vrcp.f32 %v961_v57 }
 0x499   : > { %2391 = vrcp.f32 %v952_v58 }
 0x49a   : > { %2393 = vrcp.f32 %v958_v55 }
 0x49b   : > { %v955_v59 = vpop.xlane.xlu0 %954  ;;  %v1084_v10 = vpop.permute.xlu1 %1083 }
 0x49c   : > { %2395 = vrcp.f32 %v955_v59 }
 0x49d   : > { %v2382_v60 = vpop.eup %2381 }
 0x49e   : > { %v2384_v62 = vpop.eup %2383  ;;  %v973_v1 = vmul.f32 %v2382_v60, %v2370_v38  ;;  %v1106_v38 = vsel %vm501_vm0, %v1084_v10, 0 }
 0x49f   : > { %v1086_v61 = vpop.permute.xlu0 %1085  ;;  %v2386_v63 = vpop.eup %2385  ;;  %v970_v2 = vmul.f32 %v2384_v62, %v2368_v37 }
 0x4a0   : > { %2225 = vmatprep.subr.msk.bf16.mxu0 %vm501_vm0, %v1086_v61  ;;  %v972_v4 = vmul.f32 %v2386_v63, %v2748_v15  ;;  %v1109_v8 = vsel %vm501_vm0, %v1086_v61, 0 }
 0x4a1   : > { %v2388_v0 = vpop.eup %2387 }
 0x4a2   : > { %v971_v3 = vmul.f32 %v2388_v0, %v2372_v41  ;;  %v979_v7 = vpack.c.bf16 %v973_v1, %v972_v4  ;;  %v1082_v41 = vpop.permute.xlu1 %1081 }
 0x4a3   : > { %v1072_v40 = vpop.permute.xlu0 %1071  ;;  %v1103_v42 = vsel %vm501_vm0, %v1082_v41, 0 }
 0x4a4   : > { %v978_v5 = vpack.c.bf16 %v971_v3, %v970_v2 }
 0x4a5   : > { %v2390_v6 = vpop.eup %2389 }
 0x4a6   : > { %v2392_v9 = vpop.eup %2391  ;;  %2145 = vmatprep.mubr.msk.bf16.mxu0 %vm591_vm1, %v978_v5  ;;  %v977_v36 = vmul.f32 %v2390_v6, %v2376_v46  ;;  %v1080_v44 = vpop.permute.xlu1 %1079 }
 0x4a7   : > { %v2394_v11 = vpop.eup %2393  ;;  %2146 = vmatmul.mubr.msk.bf16.vlgmr.msra.gmra.mxu0 %vm591_vm1, %v979_v7  ;;  %v974_v13 = vmul.f32 %v2392_v9, %v2378_v47  ;;  %v1076_v46 = vpop.permute.xlu0 %1075 }
 0x4a8   : > { %2154 = vmatpush3.bf16.xpose.msra.mxu0 %v1109_v8  ;;  %v976_v37 = vmul.f32 %v2394_v11, %v2754_v43  ;;  %v1100_v43 = vsel %vm501_vm0, %v1080_v44, 0 }
 0x4a9   : > { %v2396_v12 = vpop.eup %2395  ;;  %2226 = vmatprep.subr.msk.bf16.mxu0 %vm501_vm0, %v1084_v10 }
 0x4aa   : > { %v975_v17 = vmul.f32 %v2396_v12, %v2380_v50  ;;  %v981_v39 = vpack.c.bf16 %v977_v36, %v976_v37  ;;  %v1074_v45 = vpop.permute.xlu1 %1073 }
 0x4ac   : > { %v980_v15 = vpack.c.bf16 %v975_v17, %v974_v13 }
 0x4ae   : > { %2149 = vmatprep.mubr.msk.bf16.mxu0 %vm591_vm1, %v980_v15  ;;  %v1078_v47 = vpop.permute.xlu1 %1077 }
 0x4af   : > { %2150 = vmatmul.mubr.msk.bf16.gmra.mxu0 %vm591_vm1, %v981_v39 }
 0x4b0   : > { %2156 = vmatpush3.bf16.xpose.msra.mxu0 %v1106_v38  ;;  %2161 = vmatprep.mubr.msk.bf16.mxu0 %vm501_vm0, %v1072_v40 }
 0x4b1   : > { %2227 = vmatprep.subr.msk.bf16.mxu0 %vm501_vm0, %v1082_v41 }
 0x4b8   : > { %2158 = vmatpush3.bf16.xpose.msra.mxu0 %v1103_v42 }
 0x4b9   : > { %2228 = vmatprep.subr.msk.bf16.mxu0 %vm501_vm0, %v1080_v44 }
 0x4c0   : > { %2160 = vmatpush3.bf16.xpose.msra.mxu0 %v1100_v43 }
 0x4c7   : > { %2162 = vmatmul.mubr.msk.bf16.vlgmr.msra.gmra.mxu0 %vm501_vm0, %v1074_v45 }
 0x4c8   : > { %2165 = vmatprep.mubr.msk.bf16.mxu0 %vm501_vm0, %v1076_v46 }
 0x4cf   : > { %2166 = vmatmul.mubr.msk.bf16.gmra.mxu0 %vm501_vm0, %v1078_v47 }
 0x567   : > { %v2796_v48 = vpop.f32.mrf.mxu0 }
 0x569   : > { %v2798_v49 = vpop.f32.mrf.mxu0 }
 0x56b   : > { %v2800_v50 = vpop.f32.mrf.mxu0 }
 0x56c   : > { %v2266_v51 = vpack.i.bf16 %v2800_v50, %v2796_v48 }
 0x56d   : > { %v2804_v52 = vpop.f32.mrf.mxu0 }
 0x56e   : > { %v2261_v53 = vpack.i.bf16 %v2804_v52, %v2798_v49 }
 0x56f   : > { %v2808_v54 = vpop.f32.mrf.mxu0 }
 0x571   : > { %v2810_v55 = vpop.f32.mrf.mxu0 }
 0x573   : > { %v2812_v56 = vpop.f32.mrf.mxu0 }
 0x574   : > { %v2276_v57 = vpack.i.bf16 %v2812_v56, %v2808_v54 }
 0x575   : > { %v2816_v58 = vpop.f32.mrf.mxu0 }
 0x576   : > { %v2271_v59 = vpack.i.bf16 %v2816_v58, %v2810_v55  ;;  %v2464_v58 = vld [vmem:[%s2652_s24] sm:$0xff]  }
 0x587   : > { %v2163_v60 = vpop.f32.mrf.mxu0 }
 0x588   : > { %v1182_v1 = vsel %vm591_vm1, %v2163_v60, -inf }
 0x589   : > { %v1145_v61 = vpop.f32.mrf.mxu0 }
 0x58a   : > { %v1176_v62 = vsel %vm591_vm1, %v1145_v61, -inf }
 0x58b   : > { %1177 = vmax.xlane.f32.xlu0 %v1176_v62  ;;  %v2164_v63 = vpop.f32.mrf.mxu0 }
 0x58c   : > { %v1185_v5 = vsel %vm591_vm1, %v2164_v63, -inf }
 0x58d   : > { %v1148_v0 = vpop.f32.mrf.mxu0 }
 0x58e   : > { %v1179_v2 = vsel %vm591_vm1, %v1148_v0, -inf }
 0x58f   : > { %1183 = vmax.xlane.f32.xlu0 %v1182_v1  ;;  %1180 = vmax.xlane.f32.xlu1 %v1179_v2  ;;  %v2167_v3 = vpop.f32.mrf.mxu0 }
 0x590   : > { %v1194_v8 = vsel %vm591_vm1, %v2167_v3, -inf }
 0x591   : > { %v1161_v4 = vpop.f32.mrf.mxu0 }
 0x592   : > { %v1188_v11 = vsel %vm591_vm1, %v1161_v4, -inf }
 0x593   : > { %1186 = vmax.xlane.f32.xlu0 %v1185_v5  ;;  %v2168_v6 = vpop.f32.mrf.mxu0 }
 0x594   : > { %v1197_v7 = vsel %vm591_vm1, %v2168_v6, -inf }
 0x595   : > { %1198 = vmax.xlane.f32.xlu1 %v1197_v7  ;;  %v1164_v9 = vpop.f32.mrf.mxu0 }
 0x596   : > { %v1191_v10 = vsel %vm591_vm1, %v1164_v9, -inf }
 0x597   : > { %1195 = vmax.xlane.f32.xlu0 %v1194_v8 }
 0x599   : > { %1192 = vmax.xlane.f32.xlu1 %v1191_v10 }
 0x59b   : > { %1189 = vmax.xlane.f32.xlu0 %v1188_v11 }
 0x5aa   : > { %1272 = vrot.lane.b32.xlu1 %v2660_v19, %s2490_s26 }
 0x5ae   : > { %1270 = vrot.lane.b32.xlu1 %v2667_v20, %s2490_s26 }
 0x5b1   : > { %1274 = vrot.lane.b32.xlu0 %v2655_v18, %s2490_s26 }
 0x5b2   : > { %1268 = vrot.lane.b32.xlu1 %v2670_v21, %s2490_s26 }
 0x614   : > { %v1178_v12 = vpop.xlane.xlu0 %1177 }
 0x615   : > { %v1200_v13 = vsub.f32 %v1145_v61, %v1178_v12 }
 0x617   : > { %v1208_v37 = vmul.f32 1.442695, %v1200_v13 }
 0x618   : > { %v1184_v17 = vpop.xlane.xlu0 %1183  ;;  %v1181_v36 = vpop.xlane.xlu1 %1180 }
 0x619   : > { %v1202_v15 = vsub.f32 %v2163_v60, %v1184_v17  ;;  %v1201_v39 = vsub.f32 %v1148_v0, %v1181_v36 }
 0x61b   : > { %v1212_v38 = vmul.f32 1.442695, %v1202_v15  ;;  %v1210_v20 = vmul.f32 1.442695, %v1201_v39 }
 0x61c   : > { %v1187_v40 = vpop.xlane.xlu0 %1186 }
 0x61d   : > { %2397 = vpow2.f32 %v1212_v38  ;;  %v1203_v19 = vsub.f32 %v2164_v63, %v1187_v40 }
 0x61e   : > { %v1199_v41 = vpop.xlane.xlu1 %1198  ;;  %2399 = vpow2.f32 %v1208_v37 }
 0x61f   : > { %v1214_v42 = vmul.f32 1.442695, %v1203_v19  ;;  %v1207_v44 = vsub.f32 %v2168_v6, %v1199_v41 }
 0x620   : > { %v1196_v18 = vpop.xlane.xlu0 %1195 }
 0x621   : > { %2401 = vpow2.f32 %v1214_v42  ;;  %v1206_v43 = vsub.f32 %v2167_v3, %v1196_v18  ;;  %v1222_v45 = vmul.f32 1.442695, %v1207_v44 }
 0x622   : > { %v1193_v21 = vpop.xlane.xlu1 %1192  ;;  %2403 = vpow2.f32 %v1210_v20 }
 0x623   : > { %v1220_v46 = vmul.f32 1.442695, %v1206_v43  ;;  %v1205_v47 = vsub.f32 %v1164_v9, %v1193_v21 }
 0x624   : > { %v1190_v60 = vpop.xlane.xlu0 %1189 }
 0x625   : > { %2405 = vpow2.f32 %v1220_v46  ;;  %v1204_v61 = vsub.f32 %v1161_v4, %v1190_v60  ;;  %v1218_v0 = vmul.f32 1.442695, %v1205_v47 }
 0x626   : > { %v1273_v62 = vpop.permute.xlu1 %1272  ;;  %2407 = vpow2.f32 %v1222_v45 }
 0x627   : > { %v1216_v63 = vmul.f32 1.442695, %v1204_v61 }
 0x628   : > { %v1275_v1 = vpop.permute.xlu0 %1274 }
 0x629   : > { %2409 = vpow2.f32 %v1216_v63  ;;  %2169 = vmatprep.subr.bf16.mxu1 %v1275_v1 }
 0x62a   : > { %v2836_v2 = vpop.eup %2397  ;;  %2170 = vmatpush3.bf16.msra.mxu1 %v1275_v1  ;;  %v1271_v5 = vpop.permute.xlu1 %1270  ;;  %2411 = vpow2.f32 %v1218_v0 }
 0x62b   : > { %v1230_v3 = vsel %vm591_vm1, %v2836_v2, 0.0  ;;  %2171 = vmatprep.subr.bf16.mxu1 %v1273_v62  ;;  %v2400_v6 = vpop.eup %2399 }
 0x62c   : > { %1231 = vadd.xlane.f32.xlu0 %v1230_v3  ;;  %v1224_v4 = vsel %vm591_vm1, %v2400_v6, 0.0 }
 0x62e   : > { %v2402_v7 = vpop.eup %2401  ;;  %2172 = vmatpush3.bf16.msra.mxu1 %v1273_v62  ;;  %v1269_v10 = vpop.permute.xlu1 %1268 }
 0x62f   : > { %v1233_v8 = vsel %vm591_vm1, %v2402_v7, 0.0  ;;  %2173 = vmatprep.subr.bf16.mxu1 %v1271_v5  ;;  %v2404_v9 = vpop.eup %2403 }
 0x630   : > { %1225 = vadd.xlane.f32.xlu0 %v1224_v4  ;;  %1234 = vadd.xlane.f32.xlu1 %v1233_v8  ;;  %v1227_v13 = vsel %vm591_vm1, %v2404_v9, 0.0 }
 0x632   : > { %v2842_v11 = vpop.eup %2405  ;;  %2174 = vmatpush3.bf16.msra.mxu1 %v1271_v5 }
 0x633   : > { %v1242_v12 = vsel %vm591_vm1, %v2842_v11, 0.0  ;;  %2175 = vmatprep.subr.bf16.mxu1 %v1269_v10  ;;  %v2408_v17 = vpop.eup %2407 }
 0x634   : > { %1243 = vadd.xlane.f32.xlu0 %v1242_v12  ;;  %1228 = vadd.xlane.f32.xlu1 %v1227_v13  ;;  %v1245_v37 = vsel %vm591_vm1, %v2408_v17, 0.0 }
 0x636   : > { %v2410_v36 = vpop.eup %2409  ;;  %2176 = vmatpush3.bf16.msra.mxu1 %v1269_v10 }
 0x637   : > { %v1236_v15 = vsel %vm591_vm1, %v2410_v36, 0.0  ;;  %v2412_v38 = vpop.eup %2411 }
 0x638   : > { %1237 = vadd.xlane.f32.xlu1 %v1236_v15  ;;  %1246 = vadd.xlane.f32.xlu0 %v1245_v37  ;;  %v1239_v39 = vsel %vm591_vm1, %v2412_v38, 0.0 }
 0x63c   : > { %1240 = vadd.xlane.f32.xlu0 %v1239_v39 }
 0x649   : > { %1369 = vrot.lane.b32.xlu1 %v2574_v25, %s2491_s27 }
 0x64d   : > { %1367 = vrot.lane.b32.xlu1 %v2589_v29, %s2491_s27 }
 0x651   : > { %1365 = vrot.lane.b32.xlu1 %v2595_v31, %s2491_s27 }
 0x652   : > { %1371 = vrot.lane.b32.xlu0 %v2572_v24, %s2491_s27 }
 0x655   : > { %1359 = vrot.lane.b32.xlu1 %v2601_v33, %s2491_s27 }
 0x656   : > { %1357 = vrot.lane.b32.xlu0 %v2583_v27, %s2491_s27 }
 0x659   : > { %1363 = vrot.lane.b32.xlu1 %v2609_v35, %s2491_s27 }
 0x65a   : > { %1361 = vrot.lane.b32.xlu0 %v2603_v34, %s2491_s27 }
 0x6b5   : > { %v1232_v25 = vpop.xlane.xlu0 %1231 }
 0x6b9   : > { %v1226_v29 = vpop.xlane.xlu0 %1225  ;;  %v1235_v40 = vpop.xlane.xlu1 %1234 }
 0x6ba   : > { %2413 = vrcp.f32 %v1235_v40 }
 0x6bb   : > { %2415 = vrcp.f32 %v1226_v29 }
 0x6bc   : > { %2417 = vrcp.f32 %v1232_v25 }
 0x6bd   : > { %v1244_v31 = vpop.xlane.xlu0 %1243  ;;  %v1229_v19 = vpop.xlane.xlu1 %1228 }
 0x6be   : > { %2419 = vrcp.f32 %v1229_v19 }
 0x6c1   : > { %v1247_v24 = vpop.xlane.xlu0 %1246  ;;  %v1238_v33 = vpop.xlane.xlu1 %1237 }
 0x6c2   : > { %2421 = vrcp.f32 %v1247_v24 }
 0x6c3   : > { %2423 = vrcp.f32 %v1238_v33 }
 0x6c4   : > { %2425 = vrcp.f32 %v1244_v31 }
 0x6c5   : > { %v1241_v27 = vpop.xlane.xlu0 %1240  ;;  %v1370_v62 = vpop.permute.xlu1 %1369 }
 0x6c6   : > { %2427 = vrcp.f32 %v1241_v27 }
 0x6c7   : > { %v2414_v35 = vpop.eup %2413 }
 0x6c8   : > { %v2416_v20 = vpop.eup %2415  ;;  %v1259_v44 = vmul.f32 %v2414_v35, %v2402_v7  ;;  %v1392_v7 = vsel %vm501_vm0, %v1370_v62, 0 }
 0x6c9   : > { %v1372_v41 = vpop.permute.xlu0 %1371  ;;  %v2418_v34 = vpop.eup %2417  ;;  %v1256_v18 = vmul.f32 %v2416_v20, %v2400_v6 }
 0x6ca   : > { %2229 = vmatprep.subr.msk.bf16.mxu1 %vm501_vm0, %v1372_v41  ;;  %v1258_v21 = vmul.f32 %v2418_v34, %v2836_v2  ;;  %v1395_v60 = vsel %vm501_vm0, %v1372_v41, 0 }
 0x6cb   : > { %v2420_v42 = vpop.eup %2419 }
 0x6cc   : > { %v1257_v43 = vmul.f32 %v2420_v42, %v2404_v9  ;;  %v1265_v47 = vpack.c.bf16 %v1259_v44, %v1258_v21  ;;  %v1368_v9 = vpop.permute.xlu1 %1367 }
 0x6cd   : > { %v1358_v8 = vpop.permute.xlu0 %1357  ;;  %v1389_v10 = vsel %vm501_vm0, %v1368_v9, 0 }
 0x6ce   : > { %v1264_v45 = vpack.c.bf16 %v1257_v43, %v1256_v18 }
 0x6cf   : > { %v2422_v46 = vpop.eup %2421 }
 0x6d0   : > { %v2424_v61 = vpop.eup %2423  ;;  %2177 = vmatprep.mubr.msk.bf16.mxu1 %vm591_vm1, %v1264_v45  ;;  %v1263_v3 = vmul.f32 %v2422_v46, %v2408_v17  ;;  %v1366_v12 = vpop.permute.xlu1 %1365 }
 0x6d1   : > { %v2426_v0 = vpop.eup %2425  ;;  %2178 = vmatmul.mubr.msk.bf16.vlgmr.msra.gmra.mxu1 %vm591_vm1, %v1265_v47  ;;  %v1260_v1 = vmul.f32 %v2424_v61, %v2410_v36  ;;  %v1362_v17 = vpop.permute.xlu0 %1361 }
 0x6d2   : > { %2186 = vmatpush3.bf16.xpose.msra.mxu1 %v1395_v60  ;;  %v1262_v6 = vmul.f32 %v2426_v0, %v2842_v11  ;;  %v1386_v11 = vsel %vm501_vm0, %v1366_v12, 0 }
 0x6d3   : > { %v2428_v63 = vpop.eup %2427  ;;  %2230 = vmatprep.subr.msk.bf16.mxu1 %vm501_vm0, %v1370_v62 }
 0x6d4   : > { %v1261_v5 = vmul.f32 %v2428_v63, %v2412_v38  ;;  %v1267_v4 = vpack.c.bf16 %v1263_v3, %v1262_v6  ;;  %v1360_v13 = vpop.permute.xlu1 %1359 }
 0x6d6   : > { %v1266_v2 = vpack.c.bf16 %v1261_v5, %v1260_v1 }
 0x6d8   : > { %2181 = vmatprep.mubr.msk.bf16.mxu1 %vm591_vm1, %v1266_v2  ;;  %v1364_v36 = vpop.permute.xlu1 %1363 }
 0x6d9   : > { %2182 = vmatmul.mubr.msk.bf16.gmra.mxu1 %vm591_vm1, %v1267_v4 }
 0x6da   : > { %2188 = vmatpush3.bf16.xpose.msra.mxu1 %v1392_v7  ;;  %2193 = vmatprep.mubr.msk.bf16.mxu1 %vm501_vm0, %v1358_v8 }
 0x6db   : > { %2231 = vmatprep.subr.msk.bf16.mxu1 %vm501_vm0, %v1368_v9 }
 0x6e2   : > { %2190 = vmatpush3.bf16.xpose.msra.mxu1 %v1389_v10 }
 0x6e3   : > { %2232 = vmatprep.subr.msk.bf16.mxu1 %vm501_vm0, %v1366_v12 }
 0x6ea   : > { %2192 = vmatpush3.bf16.xpose.msra.mxu1 %v1386_v11 }
 0x6f1   : > { %2194 = vmatmul.mubr.msk.bf16.vlgmr.msra.gmra.mxu1 %vm501_vm0, %v1360_v13 }
 0x6f2   : > { %2197 = vmatprep.mubr.msk.bf16.mxu1 %vm501_vm0, %v1362_v17 }
 0x6f9   : > { %2198 = vmatmul.mubr.msk.bf16.gmra.mxu1 %vm501_vm0, %v1364_v36 }
 0x791   : > { %v2884_v15 = vpop.f32.mrf.mxu1 }
 0x793   : > { %v2886_v37 = vpop.f32.mrf.mxu1 }
 0x795   : > { %v2888_v38 = vpop.f32.mrf.mxu1 }
 0x796   : > { %v2286_v39 = vpack.i.bf16 %v2888_v38, %v2884_v15 }
 0x797   : > { %v2892_v25 = vpop.f32.mrf.mxu1 }
 0x798   : > { %v2281_v29 = vpack.i.bf16 %v2892_v25, %v2886_v37 }
 0x799   : > { %v2896_v40 = vpop.f32.mrf.mxu1 }
 0x79b   : > { %v2898_v31 = vpop.f32.mrf.mxu1 }
 0x79d   : > { %v2900_v19 = vpop.f32.mrf.mxu1 }
 0x79e   : > { %v2296_v24 = vpack.i.bf16 %v2900_v19, %v2896_v40 }
 0x79f   : > { %v2904_v33 = vpop.f32.mrf.mxu1 }
 0x7a0   : > { %v2291_v27 = vpack.i.bf16 %v2904_v33, %v2898_v31 }
 0x7b1   : > { %v2195_v35 = vpop.f32.mrf.mxu1 }
 0x7b2   : > { %v1468_v44 = vsel %vm591_vm1, %v2195_v35, -inf }
 0x7b3   : > { %v1431_v41 = vpop.f32.mrf.mxu1 }
 0x7b4   : > { %v1462_v20 = vsel %vm591_vm1, %v1431_v41, -inf }
 0x7b5   : > { %1463 = vmax.xlane.f32.xlu0 %v1462_v20  ;;  %v2196_v34 = vpop.f32.mrf.mxu1 }
 0x7b6   : > { %v1471_v45 = vsel %vm591_vm1, %v2196_v34, -inf }
 0x7b7   : > { %v1434_v42 = vpop.f32.mrf.mxu1 }
 0x7b8   : > { %v1465_v18 = vsel %vm591_vm1, %v1434_v42, -inf }
 0x7b9   : > { %1469 = vmax.xlane.f32.xlu0 %v1468_v44  ;;  %1466 = vmax.xlane.f32.xlu1 %v1465_v18  ;;  %v2199_v43 = vpop.f32.mrf.mxu1 }
 0x7ba   : > { %v1480_v62 = vsel %vm591_vm1, %v2199_v43, -inf }
 0x7bb   : > { %v1447_v21 = vpop.f32.mrf.mxu1 }
 0x7bc   : > { %v1474_v47 = vsel %vm591_vm1, %v1447_v21, -inf }
 0x7bd   : > { %1472 = vmax.xlane.f32.xlu0 %v1471_v45  ;;  %v2912_v46 = vpop.f32.mrf.mxu1 }
 0x7be   : > { %v1483_v0 = vsel %vm591_vm1, %v2912_v46, -inf }
 0x7bf   : > { %v2915_v60 = vpop.f32.mrf.mxu1 }
 0x7c0   : > { %v1477_v61 = vsel %vm591_vm1, %v2915_v60, -inf }
 0x7c1   : > { %1475 = vmax.xlane.f32.xlu0 %v1474_v47  ;;  %1478 = vmax.xlane.f32.xlu1 %v1477_v61 }
 0x7c5   : > { %1481 = vmax.xlane.f32.xlu0 %v1480_v62  ;;  %1484 = vmax.xlane.f32.xlu1 %v1483_v0 }
 0x83e   : > { %v1464_v63 = vpop.xlane.xlu0 %1463 }
 0x83f   : > { %v1486_v1 = vsub.f32 %v1431_v41, %v1464_v63  ;;  %v2461_v63 = vld [vmem:[%s2652_s24 + $0x10] sm:$0xff]  }
 0x841   : > { %v1494_v6 = vmul.f32 1.442695, %v1486_v1  ;;  %v2462_v1 = vld [vmem:[%s2652_s24 + $0x8] sm:$0xff]  }
 0x842   : > { %v1470_v5 = vpop.xlane.xlu0 %1469  ;;  %v1467_v3 = vpop.xlane.xlu1 %1466 }
 0x843   : > { %v1488_v2 = vsub.f32 %v2195_v35, %v1470_v5  ;;  %v1487_v4 = vsub.f32 %v1434_v42, %v1467_v3 }
 0x845   : > { %v1498_v7 = vmul.f32 1.442695, %v1488_v2  ;;  %v1496_v10 = vmul.f32 1.442695, %v1487_v4  ;;  %v2463_v2 = vld [vmem:[%s2652_s24 + $0x18] sm:$0xff]  }
 0x846   : > { %v1473_v8 = vpop.xlane.xlu0 %1472 }
 0x847   : > { %2429 = vpow2.f32 %v1498_v7  ;;  %v1489_v9 = vsub.f32 %v2196_v34, %v1473_v8 }
 0x848   : > { %2431 = vpow2.f32 %v1494_v6 }
 0x849   : > { %v1500_v12 = vmul.f32 1.442695, %v1489_v9 }
 0x84a   : > { %v1476_v11 = vpop.xlane.xlu0 %1475  ;;  %v1479_v5 = vpop.xlane.xlu1 %1478 }
 0x84b   : > { %2433 = vpow2.f32 %v1500_v12  ;;  %v1490_v13 = vsub.f32 %v1447_v21, %v1476_v11  ;;  %v1491_v7 = vsub.f32 %v2915_v60, %v1479_v5 }
 0x84c   : > { %2435 = vpow2.f32 %v1496_v10 }
 0x84d   : > { %v1502_v20 = vmul.f32 1.442695, %v1490_v13  ;;  %v1504_v8 = vmul.f32 1.442695, %v1491_v7 }
 0x84e   : > { %v1482_v17 = vpop.xlane.xlu0 %1481  ;;  %v1485_v3 = vpop.xlane.xlu1 %1484 }
 0x84f   : > { %v1492_v36 = vsub.f32 %v2199_v43, %v1482_v17  ;;  %v1493_v6 = vsub.f32 %v2912_v46, %v1485_v3 }
 0x851   : > { %v1506_v41 = vmul.f32 1.442695, %v1492_v36  ;;  %v1508_v4 = vmul.f32 1.442695, %v1493_v6 }
 0x853   : > { %2437 = vpow2.f32 %v1506_v41 }
 0x854   : > { %v2922_v44 = vpop.eup %2429  ;;  %2439 = vpow2.f32 %v1502_v20 }
 0x855   : > { %v1516_v35 = vsel %vm591_vm1, %v2922_v44, 0.0  ;;  %v2432_v42 = vpop.eup %2431  ;;  %2441 = vpow2.f32 %v1508_v4 }
 0x856   : > { %1517 = vadd.xlane.f32.xlu0 %v1516_v35  ;;  %v1510_v18 = vsel %vm591_vm1, %v2432_v42, 0.0  ;;  %2443 = vpow2.f32 %v1504_v8 }
 0x858   : > { %v2926_v34 = vpop.eup %2433 }
 0x859   : > { %v1519_v43 = vsel %vm591_vm1, %v2926_v34, 0.0  ;;  %v2436_v21 = vpop.eup %2435 }
 0x85a   : > { %1511 = vadd.xlane.f32.xlu0 %v1510_v18  ;;  %1520 = vadd.xlane.f32.xlu1 %v1519_v43  ;;  %v1513_v45 = vsel %vm591_vm1, %v2436_v21, 0.0 }
 0x85e   : > { %1514 = vadd.xlane.f32.xlu1 %v1513_v45 }
 0x860   : > { %v2932_v47 = vpop.eup %2437 }
 0x861   : > { %v1528_v61 = vsel %vm591_vm1, %v2932_v47, 0.0  ;;  %v2936_v62 = vpop.eup %2439 }
 0x862   : > { %1529 = vadd.xlane.f32.xlu0 %v1528_v61  ;;  %v1522_v0 = vsel %vm591_vm1, %v2936_v62, 0.0  ;;  %v2442_v49 = vpop.eup %2441 }
 0x863   : > { %v1531_v52 = vsel %vm591_vm1, %v2442_v49, 0.0 }
 0x866   : > { %1523 = vadd.xlane.f32.xlu0 %v1522_v0 }
 0x86f   : > { %1558 = vrot.lane.b32.xlu1 %v2461_v63, %s2491_s27 }
 0x873   : > { %1556 = vrot.lane.b32.xlu1 %v2462_v1, %s2491_s27 }
 0x87c   : > { %1560 = vrot.lane.b32.xlu0 %v2463_v2, %s2491_s27 }
 0x880   : > { %2262 = vrot.lane.b32.xlu0 %v2261_v53, %s2491_s27  ;;  %v2444_v53 = vpop.eup %2443 }
 0x881   : > { %v1525_v55 = vsel %vm591_vm1, %v2444_v53, 0.0 }
 0x884   : > { %2272 = vrot.lane.b32.xlu0 %v2271_v59, %s2491_s27 }
 0x888   : > { %2282 = vrot.lane.b32.xlu0 %v2281_v29, %s2490_s26 }
 0x88c   : > { %2292 = vrot.lane.b32.xlu0 %v2291_v27, %s2490_s26 }
 0x897   : > { %1532 = vadd.xlane.f32.xlu1 %v1531_v52 }
 0x89b   : > { %1526 = vadd.xlane.f32.xlu1 %v1525_v55 }
 0x8ac   : > { %1554 = vrot.lane.b32.xlu1 %v2464_v58, %s2491_s27 }
 0x8b0   : > { %2267 = vrot.lane.b32.xlu1 %v2266_v51, %s2491_s27 }
 0x8b4   : > { %2277 = vrot.lane.b32.xlu1 %v2276_v57, %s2491_s27 }
 0x8b8   : > { %2287 = vrot.lane.b32.xlu1 %v2286_v39, %s2490_s26 }
 0x8bc   : > { %2297 = vrot.lane.b32.xlu1 %v2296_v24, %s2490_s26 }
 0x8df   : > { %v1518_v59 = vpop.xlane.xlu0 %1517 }
 0x8e3   : > { %v1512_v37 = vpop.xlane.xlu0 %1511  ;;  %v1521_v25 = vpop.xlane.xlu1 %1520 }
 0x8e4   : > { %2445 = vrcp.f32 %v1512_v37 }
 0x8e7   : > { %v1515_v48 = vpop.xlane.xlu1 %1514 }
 0x8e8   : > { %2447 = vrcp.f32 %v1515_v48 }
 0x8e9   : > { %2449 = vrcp.f32 %v1521_v25 }
 0x8ea   : > { %2451 = vrcp.f32 %v1518_v59 }
 0x8eb   : > { %v1530_v50 = vpop.xlane.xlu0 %1529  ;;  %v1559_v56 = vpop.permute.xlu1 %1558 }
 0x8ef   : > { %v1524_v51 = vpop.xlane.xlu0 %1523  ;;  %v1557_v40 = vpop.permute.xlu1 %1556 }
 0x8f1   : > { %v2446_v54 = vpop.eup %2445 }
 0x8f2   : > { %v1542_v15 = vmul.f32 %v2446_v54, %v2432_v42 }
 0x8f3   : > { %v1561_v57 = vpop.permute.xlu0 %1560 }
 0x8f4   : > { %2201 = vmatprep.subr.bf16.mxu0 %v1561_v57 }
 0x8f5   : > { %v2448_v29 = vpop.eup %2447  ;;  %2202 = vmatpush3.bf16.msra.mxu0 %v1561_v57 }
 0x8f6   : > { %2203 = vmatprep.subr.bf16.mxu0 %v1559_v56  ;;  %v1543_v38 = vmul.f32 %v2448_v29, %v2436_v21  ;;  %v2450_v19 = vpop.eup %2449 }
 0x8f7   : > { %v2452_v33 = vpop.eup %2451  ;;  %v1545_v27 = vmul.f32 %v2450_v19, %v2926_v34  ;;  %v2263_v3 = vpop.permute.xlu0 %2262 }
 0x8f8   : > { %v1550_v39 = vpack.c.bf16 %v1543_v38, %v1542_v15  ;;  %v1544_v60 = vmul.f32 %v2452_v33, %v2922_v44  ;;  %v2264_v55 = vunpack.i.l.bf16 %v2263_v3 }
 0x8f9   : > { %2204 = vmatpush3.bf16.msra.mxu0 %v1559_v56 }
 0x8fa   : > { %2205 = vmatprep.subr.bf16.mxu0 %v1557_v40  ;;  %2209 = vmatprep.mubr.msk.bf16.mxu0 %vm591_vm1, %v1550_v39  ;;  %v1551_v9 = vpack.c.bf16 %v1545_v27, %v1544_v60  ;;  %v1739_v15 = vsel %vm501_vm0, %v2718_v14, %v2264_v55 }
 0x8fb   : > { %v2273_v6 = vpop.permute.xlu0 %2272 }
 0x8fd   : > { %2206 = vmatpush3.bf16.msra.mxu0 %v1557_v40 }
 0x8ff   : > { %v2283_v4 = vpop.permute.xlu0 %2282 }
 0x900   : > { %v2285_v25 = vunpack.i.h.bf16 %v2283_v4  ;;  %v2284_v48 = vunpack.i.l.bf16 %v2283_v4 }
 0x902   : > { %v1747_v14 = vsel %vm591_vm1, %v1739_v15, %v2284_v48 }
 0x903   : > { %v2293_v58 = vpop.permute.xlu0 %2292 }
 0x920   : > { %v1533_v31 = vpop.xlane.xlu1 %1532 }
 0x921   : > { %2453 = vrcp.f32 %v1533_v31 }
 0x922   : > { %2455 = vrcp.f32 %v1524_v51 }
 0x923   : > { %2457 = vrcp.f32 %v1530_v50 }
 0x924   : > { %v1527_v24 = vpop.xlane.xlu1 %1526 }
 0x925   : > { %2459 = vrcp.f32 %v1527_v24 }
 0x928   : > { %v1555_v46 = vpop.permute.xlu1 %1554 }
 0x929   : > { %2207 = vmatprep.subr.bf16.mxu0 %v1555_v46 }
 0x92a   : > { %2208 = vmatpush3.bf16.msra.mxu0 %v1555_v46 }
 0x92c   : > { %v2268_v5 = vpop.permute.xlu1 %2267 }
 0x92d   : > { %2210 = vmatmul.mubr.msk.bf16.vlgmr.msra.gmra.mxu0 %vm591_vm1, %v1551_v9  ;;  %v2269_v52 = vunpack.i.l.bf16 %v2268_v5 }
 0x92e   : > { %v2454_v10 = vpop.eup %2453 }
 0x92f   : > { %v2456_v12 = vpop.eup %2455  ;;  %v1549_v17 = vmul.f32 %v2454_v10, %v2442_v49  ;;  %v2270_v49 = vunpack.i.h.bf16 %v2268_v5  ;;  %v1741_v54 = vsel %vm501_vm0, %v2716_v16, %v2269_v52  ;;  %v2275_v10 = vunpack.i.h.bf16 %v2273_v6 }
 0x930   : > { %v2458_v11 = vpop.eup %2457  ;;  %v1546_v36 = vmul.f32 %v2456_v12, %v2936_v62  ;;  %v2278_v2 = vpop.permute.xlu1 %2277  ;;  %v2274_v12 = vunpack.i.l.bf16 %v2273_v6 }
 0x931   : > { %v1548_v41 = vmul.f32 %v2458_v11, %v2932_v47  ;;  %v1742_v51 = vsel %vm501_vm0, %v2720_v22, %v2270_v49  ;;  %v2280_v60 = vunpack.i.h.bf16 %v2278_v2  ;;  %v2279_v9 = vunpack.i.l.bf16 %v2278_v2 }
 0x932   : > { %v2460_v13 = vpop.eup %2459 }
 0x933   : > { %v1547_v20 = vmul.f32 %v2460_v13, %v2444_v53  ;;  %v1553_v42 = vpack.c.bf16 %v1549_v17, %v1548_v41  ;;  %v2265_v53 = vunpack.i.h.bf16 %v2263_v3  ;;  %v2295_v17 = vunpack.i.h.bf16 %v2293_v58 }
 0x934   : > { %v2288_v7 = vpop.permute.xlu1 %2287  ;;  %v1746_v41 = vsel %vm501_vm0, %v2728_v30, %v2280_v60 }
 0x935   : > { %v1552_v35 = vpack.c.bf16 %v1547_v20, %v1546_v36  ;;  %v2290_v59 = vunpack.i.h.bf16 %v2288_v7  ;;  %v2289_v37 = vunpack.i.l.bf16 %v2288_v7  ;;  %v1740_v29 = vsel %vm501_vm0, %v2722_v23, %v2265_v53 }
 0x936   : > { %v1748_v19 = vsel %vm591_vm1, %v1740_v29, %v2285_v25  ;;  %v2294_v36 = vunpack.i.l.bf16 %v2293_v58 }
 0x937   : > { %2213 = vmatprep.mubr.msk.bf16.mxu0 %vm591_vm1, %v1552_v35  ;;  %v1749_v38 = vsel %vm591_vm1, %v1741_v54, %v2289_v37  ;;  %v1750_v39 = vsel %vm591_vm1, %v1742_v51, %v2290_v59  ;;  %v1745_v35 = vsel %vm501_vm0, %v2724_v26, %v2279_v9 }
 0x938   : > { %2214 = vmatmul.mubr.msk.bf16.gmra.mxu0 %vm591_vm1, %v1553_v42  ;;  %v2298_v8 = vpop.permute.xlu1 %2297 }
 0x939   : > { %v2300_v11 = vunpack.i.h.bf16 %v2298_v8  ;;  %v2299_v13 = vunpack.i.l.bf16 %v2298_v8 }
 0x9ed   : > { %v2211_v44 = vpop.f32.mrf.mxu0 }
 0x9ef   : > { %v1612_v34 = vpop.f32.mrf.mxu0 }
 0x9f1   : > { %v2212_v18 = vpop.f32.mrf.mxu0 }
 0x9f2   : > { %v2301_v43 = vpack.i.bf16 %v2212_v18, %v2211_v44  ;;  %v1743_v18 = vsel %vm501_vm0, %v2726_v28, %v2274_v12 }
 0x9f3   : > { %v1615_v21 = vpop.f32.mrf.mxu0 }
 0x9f4   : > { %v2306_v45 = vpack.i.bf16 %v1615_v21, %v1612_v34  ;;  %2302 = vrot.lane.b32.xlu1 %v2301_v43, %s2489_s25  ;;  %v1744_v34 = vsel %vm501_vm0, %v2730_v32, %v2275_v10  ;;  %v1753_v43 = vsel %vm591_vm1, %v1745_v35, %v2299_v13  ;;  %v1754_v21 = vsel %vm591_vm1, %v1746_v41, %v2300_v11 }
 0x9f6   : > { %2307 = vrot.lane.b32.xlu0 %v2306_v45, %s2489_s25 }
 0x9f8   : > { %v2215_v61 = vpop.f32.mrf.mxu0 }
 0x9fa   : > { %v1628_v62 = vpop.f32.mrf.mxu0 }
 0x9fc   : > { %v2216_v47 = vpop.f32.mrf.mxu0 }
 0x9fd   : > { %v2316_v0 = vpack.i.bf16 %v2216_v47, %v2215_v61  ;;  %v1751_v47 = vsel %vm591_vm1, %v1743_v18, %v2294_v36 }
 0x9fe   : > { %v1631_v63 = vpop.f32.mrf.mxu0 }
 0x9ff   : > { %v2311_v1 = vpack.i.bf16 %v1631_v63, %v1628_v62  ;;  %2317 = vrot.lane.b32.xlu1 %v2316_v0, %s2489_s25  ;;  %v1752_v0 = vsel %vm591_vm1, %v1744_v34, %v2295_v17 }
 0xa01   : > { %2312 = vrot.lane.b32.xlu0 %v2311_v1, %s2489_s25 }
 0xa66   : > { %v2303_v50 = vpop.permute.xlu1 %2302 }
 0xa67   : > { %v2305_v56 = vunpack.i.h.bf16 %v2303_v50  ;;  %v2304_v57 = vunpack.i.l.bf16 %v2303_v50 }
 0xa68   : > { %v2308_v40 = vpop.permute.xlu0 %2307 }
 0xa69   : > { %v1758_v16 = vsel %vm1755_vm2, %v1749_v38, %v2304_v57  ;;  %v1759_v22 = vsel %vm1755_vm2, %v1750_v39, %v2305_v56  ;;  %v2310_v23 = vunpack.i.h.bf16 %v2308_v40  ;;  %v2309_v31 = vunpack.i.l.bf16 %v2308_v40 }
 0xa6a   : > { %v2010_v24 = vpack.c.bf16 %v1759_v22, %v1758_v16 }
 0xa6b   : > { %v1757_v33 = vsel %vm1755_vm2, %v1748_v19, %v2310_v23  ;;  %v1756_v27 = vsel %vm1755_vm2, %v1747_v14, %v2309_v31 }
 0xa6c   : > { %2022 = vst [vmem:[%s3011_s30 + $0x8] sm:$0xff] %v2010_v24   ;;  %v2005_v46 = vpack.c.bf16 %v1757_v33, %v1756_v27 }
 0xa6e   : > { %2006 = vst [vmem:[%s3011_s30] sm:$0xff] %v2005_v46  }
 0xa71   : > { %v2318_v20 = vpop.permute.xlu1 %2317 }
 0xa72   : > { %v2320_v42 = vunpack.i.h.bf16 %v2318_v20  ;;  %v2319_v44 = vunpack.i.l.bf16 %v2318_v20 }
 0xa73   : > { %v2313_v45 = vpop.permute.xlu0 %2312 }
 0xa74   : > { %v1762_v30 = vsel %vm1755_vm2, %v1753_v43, %v2319_v44  ;;  %v1763_v61 = vsel %vm1755_vm2, %v1754_v21, %v2320_v42  ;;  %v2315_v26 = vunpack.i.h.bf16 %v2313_v45  ;;  %v2314_v62 = vunpack.i.l.bf16 %v2313_v45 }
 0xa75   : > { %v2020_v32 = vpack.c.bf16 %v1763_v61, %v1762_v30 }
 0xa76   : > { %v1761_v63 = vsel %vm1755_vm2, %v1752_v0, %v2315_v26  ;;  %v1760_v28 = vsel %vm1755_vm2, %v1751_v47, %v2314_v62 }
 0xa77   : > { %2024 = vst [vmem:[%s3011_s30 + $0x18] sm:$0xff] %v2020_v32   ;;  %v2015_v1 = vpack.c.bf16 %v1761_v63, %v1760_v28 }
 0xa79   : > { %2023 = vst [vmem:[%s3011_s30 + $0x10] sm:$0xff] %v2015_v1  }
 0xa7a PF: > { %p10_p9 = scmp.ge.s32.totalorder %s2529_s16, 4   ;;  %s3054_s12 = smov %s2483_s13 }
 0xa7b   : > { %s3055_s13 = smov %s2538_s19  ;;  %s3056_s14 = smov %s2529_s16 }
 0xa7c   :  { %12 = sbr.rel (!%p10_p9) target bundleno = 2 (0x2), region = 206 }

// kernel: decoder_layer.12
= control target key start
LH: loop header
LB: loop body
LE: loop exit
PB: predicated region body
PF: predicated region fallthrough
CT: control target
= control target key end

     0   :  { %s747_s21 = smov 0   ;;  %s831_s0 = inlined_call_operand.vmem [shape: f32[32,128], index: 0, kind: input, shape index: {}]   ;;  %s832_s1 = inlined_call_operand.vmem [shape: f32[16,128], index: 1, kind: input, shape index: {}]   ;;  %s833_s2 = inlined_call_operand.vmem [shape: bf16[128,128], index: 2, kind: input, shape index: {}]   ;;  %s834_s3 = inlined_call_operand.vmem [shape: f32[1,128], index: 3, kind: input, shape index: {}]   ;;  %s835_s4 = inlined_call_operand.vmem [shape: bf16[128,128], index: 4, kind: input, shape index: {}]   ;;  %s836_s5 = inlined_call_operand.vmem [shape: f32[1,128], index: 5, kind: input, shape index: {}]   ;;  %s837_s6 = inlined_call_operand.vmem [shape: bf16[32,256], index: 6, kind: output, shape index: {}]  }
   0x1 LB: > { %s568_s22 = sadd.s32 4294967295, %s708_s21   ;;  %p572_p0 = scmp.ge.s32.totalorder %s708_s21, 1  ;;  %s708_s21 = sphi %s747_s21, %s16_s21  }
   0x2   : > { %p213_p1 = scmp.lt.s32.totalorder %s708_s21, 3 }
   0x4   : > { %p214_p2 = pnand %p572_p0, %p213_p1 }
   0x5   : > { %s573_s7 = sshll.u32 (!%p214_p2), %s568_s22, 1 }
   0x6   : > { %217 = sbr.rel (%p214_p2) target bundleno = 247 (0xf7), region = 44  ;;  %p245_p3 = scmp.lt.s32.totalorder (!%p214_p2), %s573_s7, 3 }
   0xb   : > { %v686_v0 = vld [vmem:[%s833_s2 + $0x38] sm:$0xff]   ;;  %v710_v1 = vmov 0.0   ;;  %v688_v3 = vld [vmem:[%s833_s2 + $0x30] sm:$0xff]   ;;  %vm711_vm0 = vmmov 0   ;;  %v690_v5 = vld [vmem:[%s833_s2 + $0x28] sm:$0xff]   ;;  %s839_s7 = smov (!%p245_p3, %s573_s7), 3 }
   0xc   : > { %636 = vmatprep.subr.bf16.mxu0 %v710_v1  ;;  %656 = vmatprep.subr.bf16.mxu1 %v710_v1  ;;  %v687_v2 = vld [vmem:[%s835_s4 + $0x38] sm:$0xff]   ;;  %v689_v4 = vld [vmem:[%s835_s4 + $0x30] sm:$0xff]   ;;  %v691_v6 = vld [vmem:[%s835_s4 + $0x28] sm:$0xff]   ;;  %s574_s20 = sshll.u32 %s839_s7, 3 }
   0xd   : > { %637 = vmatpush3.bf16.msra.mxu0 %v686_v0  ;;  %652 = vmatprep.mubr.msk.bf16.mxu0 %vm711_vm0, %v710_v1  ;;  %v692_v7 = vld [vmem:[%s833_s2 + $0x20] sm:$0xff]   ;;  %v694_v9 = vld [vmem:[%s833_s2 + $0x18] sm:$0xff]   ;;  %v696_v11 = vld [vmem:[%s833_s2 + $0x10] sm:$0xff]   ;;  %s248_s26 = scalar_lea.vmem %s831_s0, %s574_s20 }
   0xe   : > { %657 = vmatpush3.bf16.msra.mxu1 %v687_v2  ;;  %638 = vmatprep.subr.bf16.mxu0 %v710_v1  ;;  %v693_v8 = vld [vmem:[%s835_s4 + $0x20] sm:$0xff]   ;;  %v695_v10 = vld [vmem:[%s835_s4 + $0x18] sm:$0xff]   ;;  %v697_v12 = vld [vmem:[%s835_s4 + $0x10] sm:$0xff]  }
   0xf   : > { %658 = vmatprep.subr.bf16.mxu1 %v710_v1  ;;  %672 = vmatprep.mubr.msk.bf16.mxu1 %vm711_vm0, %v710_v1  ;;  %v698_v13 = vld [vmem:[%s833_s2 + $0x8] sm:$0xff]   ;;  %v258_v14 = vld [vmem:[%s248_s26] sm:$0xff] }
  0x10   : > { %v259_v15 = vld [vmem:[%s248_s26 + $0x8] sm:$0xff]  ;;  %v260_v16 = vld [vmem:[%s832_s1] sm:$0xff]  ;;  %s255_s26 = scalar_lea.vmem %s837_s6, %s574_s20 }
  0x11   : > { %639 = vmatpush3.bf16.msra.mxu0 %v688_v3  ;;  %v261_v17 = vld [vmem:[%s832_s1 + $0x8] sm:$0xff]  ;;  %v262_v19 = vadd.f32 %v260_v16, %v258_v14  ;;  %v700_v21 = vld [vmem:[%s833_s2] sm:$0xff]   ;;  %v377_v24 = vpack.c.bf16 %v259_v15, %v258_v14 }
  0x12   : > { %659 = vmatpush3.bf16.msra.mxu1 %v689_v4  ;;  %640 = vmatprep.subr.bf16.mxu0 %v710_v1  ;;  %v699_v18 = vld [vmem:[%s835_s4 + $0x8] sm:$0xff]   ;;  %v263_v20 = vadd.f32 %v261_v17, %v259_v15  ;;  %v701_v22 = vld [vmem:[%s835_s4] sm:$0xff]  }
  0x13   : > { %660 = vmatprep.subr.bf16.mxu1 %v710_v1  ;;  %v578_v25 = vld [vmem:[%s834_s3] ss:$0 sm:$0xff] }
  0x14   : > { %v264_v23 = vpack.c.bf16 %v263_v20, %v262_v19  ;;  %v587_v26 = vld [vmem:[%s836_s5] ss:$0 sm:$0xff] }
  0x15   : > { %641 = vmatpush3.bf16.msra.mxu0 %v690_v5 }
  0x16   : > { %661 = vmatpush3.bf16.msra.mxu1 %v691_v6  ;;  %642 = vmatprep.subr.bf16.mxu0 %v710_v1 }
  0x17   : > { %662 = vmatprep.subr.bf16.mxu1 %v710_v1 }
  0x19   : > { %643 = vmatpush3.bf16.msra.mxu0 %v692_v7 }
  0x1a   : > { %663 = vmatpush3.bf16.msra.mxu1 %v693_v8  ;;  %644 = vmatprep.subr.bf16.mxu0 %v710_v1 }
  0x1b   : > { %664 = vmatprep.subr.bf16.mxu1 %v710_v1 }
  0x1d   : > { %645 = vmatpush3.bf16.msra.mxu0 %v694_v9 }
  0x1e   : > { %665 = vmatpush3.bf16.msra.mxu1 %v695_v10  ;;  %646 = vmatprep.subr.bf16.mxu0 %v710_v1 }
  0x1f   : > { %666 = vmatprep.subr.bf16.mxu1 %v710_v1 }
  0x21   : > { %647 = vmatpush3.bf16.msra.mxu0 %v696_v11 }
  0x22   : > { %667 = vmatpush3.bf16.msra.mxu1 %v697_v12  ;;  %648 = vmatprep.subr.bf16.mxu0 %v710_v1 }
  0x23   : > { %668 = vmatprep.subr.bf16.mxu1 %v710_v1 }
  0x25   : > { %649 = vmatpush3.bf16.msra.mxu0 %v698_v13 }
  0x26   : > { %669 = vmatpush3.bf16.msra.mxu1 %v699_v18  ;;  %650 = vmatprep.subr.bf16.mxu0 %v710_v1 }
  0x27   : > { %670 = vmatprep.subr.bf16.mxu1 %v710_v1 }
  0x29   : > { %651 = vmatpush3.bf16.msra.mxu0 %v700_v21 }
  0x2a   : > { %671 = vmatpush3.bf16.msra.mxu1 %v701_v22 }
  0x2c   : > { %653 = vmatmul.mubr.bf16.vlgmr.msra.gmra.mxu0 %v264_v23 }
  0x2d   : > { %673 = vmatmul.mubr.bf16.vlgmr.msra.gmra.mxu1 %v377_v24 }
  0xec   : > { %v370_v27 = vpop.f32.mrf.mxu0 }
  0xed   : > { %v371_v28 = vadd.f32 %v578_v25, %v370_v27  ;;  %v483_v29 = vpop.f32.mrf.mxu1 }
  0xee   : > { %v484_v30 = vadd.f32 %v587_v26, %v483_v29  ;;  %v654_v31 = vpop.f32.mrf.mxu0 }
  0xef   : > { %v674_v32 = vpop.f32.mrf.mxu1 }
  0xf0   : > { %v610_v33 = vpack.c.bf16 %v484_v30, %v371_v28  ;;  %v373_v34 = vpop.f32.mrf.mxu0 }
  0xf1   : > { %v374_v35 = vadd.f32 %v578_v25, %v373_v34  ;;  %v486_v36 = vpop.f32.mrf.mxu1 }
  0xf2   : > { %611 = vst [vmem:[%s255_s26] sm:$0xff] %v610_v33   ;;  %v487_v37 = vadd.f32 %v587_v26, %v486_v36  ;;  %v655_v38 = vpop.f32.mrf.mxu0 }
  0xf3   : > { %v675_v39 = vpop.f32.mrf.mxu1 }
  0xf4   : > { %v615_v40 = vpack.c.bf16 %v487_v37, %v374_v35 }
  0xf6   : > { %617 = vst [vmem:[%s255_s26 + $0x8] sm:$0xff] %v615_v40  }
  0xf7 PF: > { %s16_s21 = sadd.s32 1, %s708_s21  }
  0xf8   : > { %p13_p4 = scmp.ge.s32.totalorder %s16_s21, 4  }
  0xfa   :  { %15 = sbr.rel (!%p13_p4) target bundleno = 1 (0x1), region = 74 }

// kernel: decoder_layer.13
= control target key start
LH: loop header
LB: loop body
LE: loop exit
PB: predicated region body
PF: predicated region fallthrough
CT: control target
= control target key end

     0   :  { %s2186_s15 = smov 0   ;;  %s2188_s16 = smov 0   ;;  %s2750_s0 = inlined_call_operand.vmem [shape: f32[2,16], index: 0, kind: input, shape index: {}]   ;;  %s2751_s1 = inlined_call_operand.vmem [shape: bf16[128,128], index: 1, kind: input, shape index: {}]   ;;  %s2752_s2 = inlined_call_operand.vmem [shape: bf16[32,256], index: 2, kind: input, shape index: {}, may-alias: {2,3}]   ;;  %s2753_s3 = inlined_call_operand.vmem [shape: bf16[32,256], index: 3, kind: input, shape index: {}, may-alias: {2,3}]   ;;  %s2754_s4 = inlined_call_operand.vmem [shape: bf16[128,128], index: 4, kind: output, shape index: {}]  }
   0x1   :  { %s2190_s17 = smov 0  }
   0x2 LB: > { %s1686_s18 = sadd.s32 4294967295, %s2156_s17   ;;  %s2203_s19 = sadd.s32 1, %s2156_s17   ;;  %s2156_s17 = sphi %s2190_s17, %s2758_s17   ;;  %s2152_s16 = sphi %s2188_s16, %s2757_s16   ;;  %s2148_s15 = sphi %s2186_s15, %s2756_s15  }
   0x3   : > { %s65_s20 = ssub.s32 %s2156_s17, %s2203_s19  ;;  %s68_s21 = sadd.s32 1, %s2152_s16 }
   0x4   : > { %p66_p0 = scmp.eq.s32.totalorder %s65_s20, 0  ;;  %p75_p1 = scmp.ne.s32.totalorder %s2152_s16, %s2148_s15 }
   0x5   : > { %p76_p2 = scmp.eq.s32.totalorder %s2156_s17, 0  ;;  %p1689_p4 = scmp.ge.s32.totalorder %s2156_s17, 2 }
   0x6   : > { %s2212_s22 = scalar_select %p66_p0, %s2152_s16, %s68_s21  }
   0x7   : > { %p2214_p3 = por %p76_p2, %p75_p1  ;;  %156 = sbr.rel (%p1689_p4) target bundleno = 22 (0x16), region = 20 }
   0xc   : > { %168 = sbr.rel (!%p2214_p3) target bundleno = 17 (0x11), region = 28  ;;  %s170_s24 = sand.u32 (%p2214_p3), 1, %s2152_s16  }
   0xd   : > { %s1756_s25 = sshll.u32 (%p2214_p3), %s2156_s17, 4  ;;  %s1690_s26 = sshll.u32 (%p2214_p3), %s170_s24, 3 }
   0xe   : > { %s176_s29 = scalar_lea.vmem (%p2214_p3), %s2752_s2, %s1756_s25  ;;  %s172_s30 = scalar_lea.vmem (%p2214_p3), [#allocation2], %s1690_s26 }
   0xf   : > { %v193_v0 = vld [vmem:[%s176_s29] sm:$0xf] (%p2214_p3)  ;;  %v195_v1 = vld [vmem:[%s176_s29 + $0x8] sm:$0xf] (%p2214_p3) }
  0x10   : > { %194 = vst [vmem:[%s172_s30] sm:$0xf] (%p2214_p3), %v193_v0  ;;  %196 = vst [vmem:[%s172_s30 + $0x4] sm:$0xf] (%p2214_p3), %v195_v1 }
  0x11 PF: > { %224 = sbr.rel (!%p2214_p3) target bundleno = 22 (0x16), region = 69  ;;  %s226_s5 = sand.u32 (%p2214_p3), 1, %s2152_s16  }
  0x12   : > { %s1757_s6 = sshll.u32 (%p2214_p3), %s2156_s17, 4  ;;  %s1694_s7 = sshll.u32 (%p2214_p3), %s226_s5, 3 }
  0x13   : > { %s1623_s10 = scalar_lea.vmem (%p2214_p3), %s2753_s3, %s1757_s6  ;;  %s228_s11 = scalar_lea.vmem (%p2214_p3), [#allocation3], %s1694_s7 }
  0x14   : > { %v1697_v2 = vld [vmem:[%s1623_s10 + $0x4] sm:$0xf] (%p2214_p3)  ;;  %v1698_v3 = vld [vmem:[%s1623_s10 + $0xc] sm:$0xf] (%p2214_p3) }
  0x15   : > { %251 = vst [vmem:[%s228_s11] sm:$0xf] (%p2214_p3), %v1697_v2  ;;  %253 = vst [vmem:[%s228_s11 + $0x4] sm:$0xf] (%p2214_p3), %v1698_v3 }
  0x16 PF: > { %p1699_p5 = scmp.ge.s32.totalorder %s2156_s17, 1  ;;  %p280_p6 = scmp.lt.s32.totalorder %s2156_s17, 3 }
  0x18   : > { %p281_p7 = pnand %p1699_p5, %p280_p6 }
  0x19   : > { %s287_s12 = sand.u32 (!%p281_p7), 1, %s2148_s15   ;;  %s1702_s13 = sshll.u32 (!%p281_p7), %s1686_s18, 3 }
  0x1a   : > { %284 = sbr.rel (%p281_p7) target bundleno = 1491 (0x5d3), region = 110  ;;  %s2238_s14 = sshll.u32 (!%p281_p7), %s287_s12, 3 }
  0x1b   : > { %p329_p8 = scmp.lt.s32.totalorder (!%p281_p7), %s1702_s13, 15  ;;  %s289_s20 = scalar_lea.vmem (!%p281_p7), [#allocation2], %s2238_s14 }
  0x1c   : > { %s343_s27 = scalar_lea.vmem (!%p281_p7), %s2750_s0, %s1686_s18  ;;  %s296_s17 = scalar_lea.vmem (!%p281_p7), [#allocation3], %s2238_s14 }
  0x1d   : > { %s2158_s18 = smov (!%p281_p7), 96   ;;  %s2159_s28 = smov (!%p281_p7), 64  }
  0x1e   : > { %s2160_s29 = smov (!%p281_p7), 32  }
  0x1f   : > { %vm386_vm0 = vcmask 261120   ;;  %v2241_v4 = vld [vmem:[%s289_s20] sm:$0xff]   ;;  %s2760_s13 = smov (!%p329_p8, %s1702_s13), 15  ;;  %vm467_vm1 = vcmask 130048   ;;  %vm1533_vm2 = vcmask 523264   ;;  %vm1542_vm3 = vcmask 785408  }
  0x20   : > { %1909 = vmatprep.subr.msk.bf16.mxu0 %vm386_vm0, %v2241_v4  ;;  %v400_v5 = vsel %vm386_vm0, %v2241_v4, 0  ;;  %s1703_s15 = sshll.u32 %s2760_s13, 2  ;;  %v2276_v10 = vld [vmem:[%s343_s27] ss:$0 sm:$0xff] }
  0x21   : > { %1830 = vmatpush3.bf16.xpose.msra.mxu0 %v400_v5  ;;  %s332_s24 = scalar_lea.vmem %s2751_s1, %s1703_s15  ;;  %s2712_s6 = scalar_lea.vmem %s2754_s4, %s1703_s15 }
  0x22   : > { %v2255_v6 = vld [vmem:[%s332_s24] sm:$0xff]   ;;  %v2259_v7 = vld [vmem:[%s332_s24 + $0x8] sm:$0xff]   ;;  %v2261_v8 = vld [vmem:[%s332_s24 + $0x10] sm:$0xff]  }
  0x23   : > { %1831 = vmatprep.mubr.msk.bf16.mxu0 %vm386_vm0, %v2255_v6  ;;  %v2267_v9 = vld [vmem:[%s332_s24 + $0x18] sm:$0xff]  }
  0x28   : > { %1832 = vmatmul.mubr.msk.bf16.vlgmr.msra.gmra.mxu0 %vm386_vm0, %v2259_v7 }
  0x29   : > { %1835 = vmatprep.mubr.msk.bf16.mxu0 %vm386_vm0, %v2261_v8 }
  0x30   : > { %1836 = vmatmul.mubr.msk.bf16.gmra.mxu0 %vm386_vm0, %v2267_v9 }
  0xe8   : > { %v1833_v11 = vpop.f32.mrf.mxu0 }
  0xe9   : > { %v445_v12 = vadd.f32 %v1833_v11, %v2276_v10 }
  0xea   : > { %v436_v13 = vpop.f32.mrf.mxu0 }
  0xeb   : > { %v437_v14 = vadd.f32 %v2276_v10, %v436_v13  ;;  %v474_v15 = vsel %vm467_vm1, %v445_v12, -inf }
  0xec   : > { %475 = vmax.xlane.f32.xlu1 %v474_v15  ;;  %v1834_v16 = vpop.f32.mrf.mxu0 }
  0xed   : > { %v448_v17 = vadd.f32 %v1834_v16, %v2276_v10  ;;  %v468_v18 = vsel %vm467_vm1, %v437_v14, -inf }
  0xee   : > { %v439_v19 = vpop.f32.mrf.mxu0  ;;  %469 = vmax.xlane.f32.xlu0 %v468_v18 }
  0xef   : > { %v440_v20 = vadd.f32 %v2276_v10, %v439_v19  ;;  %v477_v21 = vsel %vm467_vm1, %v448_v17, -inf }
  0xf0   : > { %478 = vmax.xlane.f32.xlu1 %v477_v21  ;;  %v1837_v22 = vpop.f32.mrf.mxu0 }
  0xf1   : > { %v471_v23 = vsel %vm467_vm1, %v440_v20, -inf  ;;  %v461_v27 = vadd.f32 %v1837_v22, %v2276_v10 }
  0xf2   : > { %v452_v24 = vpop.f32.mrf.mxu0  ;;  %472 = vmax.xlane.f32.xlu0 %v471_v23 }
  0xf3   : > { %v453_v25 = vadd.f32 %v2276_v10, %v452_v24  ;;  %v486_v33 = vsel %vm467_vm1, %v461_v27, -inf }
  0xf4   : > { %v1838_v26 = vpop.f32.mrf.mxu0 }
  0xf5   : > { %v480_v28 = vsel %vm467_vm1, %v453_v25, -inf  ;;  %v464_v31 = vadd.f32 %v1838_v26, %v2276_v10 }
  0xf6   : > { %v455_v29 = vpop.f32.mrf.mxu0  ;;  %481 = vmax.xlane.f32.xlu0 %v480_v28 }
  0xf7   : > { %v456_v30 = vadd.f32 %v2276_v10, %v455_v29  ;;  %v489_v34 = vsel %vm467_vm1, %v464_v31, -inf }
  0xf9   : > { %v483_v32 = vsel %vm467_vm1, %v456_v30, -inf }
  0xfa   : > { %484 = vmax.xlane.f32.xlu1 %v483_v32  ;;  %487 = vmax.xlane.f32.xlu0 %v486_v33 }
  0xfe   : > { %490 = vmax.xlane.f32.xlu1 %v489_v34 }
 0x175   : > { %v476_v35 = vpop.xlane.xlu1 %475 }
 0x176   : > { %v494_v36 = vsub.f32 %v445_v12, %v476_v35 }
 0x177   : > { %v470_v37 = vpop.xlane.xlu0 %469 }
 0x178   : > { %v504_v38 = vmul.f32 1.442695, %v494_v36  ;;  %v492_v39 = vsub.f32 %v437_v14, %v470_v37 }
 0x179   : > { %v479_v40 = vpop.xlane.xlu1 %478 }
 0x17a   : > { %2006 = vpow2.f32 %v504_v38  ;;  %v500_v41 = vmul.f32 1.442695, %v492_v39  ;;  %v495_v42 = vsub.f32 %v448_v17, %v479_v40  ;;  %v2324_v17 = vld [vmem:[%s296_s17] sm:$0xff]  }
 0x17b   : > { %v473_v43 = vpop.xlane.xlu0 %472  ;;  %1839 = vmatprep.subr.bf16.mxu1 %v2324_v17 }
 0x17c   : > { %2008 = vpow2.f32 %v500_v41  ;;  %v506_v44 = vmul.f32 1.442695, %v495_v42  ;;  %v493_v45 = vsub.f32 %v440_v20, %v473_v43  ;;  %1840 = vmatpush3.bf16.msra.mxu1 %v2324_v17 }
 0x17e   : > { %2010 = vpow2.f32 %v506_v44  ;;  %v502_v46 = vmul.f32 1.442695, %v493_v45 }
 0x17f   : > { %v482_v47 = vpop.xlane.xlu0 %481 }
 0x180   : > { %2012 = vpow2.f32 %v502_v46  ;;  %v496_v48 = vsub.f32 %v453_v25, %v482_v47 }
 0x182   : > { %v508_v55 = vmul.f32 1.442695, %v496_v48 }
 0x183   : > { %v485_v49 = vpop.xlane.xlu1 %484  ;;  %v488_v50 = vpop.xlane.xlu0 %487 }
 0x184   : > { %v498_v51 = vsub.f32 %v461_v27, %v488_v50  ;;  %v497_v52 = vsub.f32 %v456_v30, %v485_v49 }
 0x186   : > { %v512_v53 = vmul.f32 1.442695, %v498_v51  ;;  %v510_v60 = vmul.f32 1.442695, %v497_v52 }
 0x187   : > { %v2294_v54 = vpop.eup %2006  ;;  %v491_v56 = vpop.xlane.xlu1 %490 }
 0x188   : > { %v499_v57 = vsub.f32 %v464_v31, %v491_v56  ;;  %v522_v58 = vsel %vm467_vm1, %v2294_v54, 0.0  ;;  %2014 = vpow2.f32 %v512_v53 }
 0x189   : > { %v2298_v59 = vpop.eup %2008  ;;  %523 = vadd.xlane.f32.xlu0 %v522_v58  ;;  %2016 = vpow2.f32 %v508_v55 }
 0x18a   : > { %v514_v61 = vmul.f32 1.442695, %v499_v57  ;;  %v516_v0 = vsel %vm467_vm1, %v2298_v59, 0.0 }
 0x18b   : > { %v2300_v62 = vpop.eup %2010 }
 0x18c   : > { %2018 = vpow2.f32 %v514_v61  ;;  %v525_v63 = vsel %vm467_vm1, %v2300_v62, 0.0 }
 0x18d   : > { %v2013_v1 = vpop.eup %2012  ;;  %526 = vadd.xlane.f32.xlu1 %v525_v63  ;;  %517 = vadd.xlane.f32.xlu0 %v516_v0  ;;  %2020 = vpow2.f32 %v510_v60 }
 0x18e   : > { %v519_v2 = vsel %vm467_vm1, %v2013_v1, 0.0 }
 0x191   : > { %520 = vadd.xlane.f32.xlu1 %v519_v2 }
 0x195   : > { %v2307_v3 = vpop.eup %2014 }
 0x196   : > { %v534_v5 = vsel %vm467_vm1, %v2307_v3, 0.0  ;;  %v2311_v11 = vpop.eup %2016 }
 0x197   : > { %535 = vadd.xlane.f32.xlu0 %v534_v5  ;;  %v528_v15 = vsel %vm467_vm1, %v2311_v11, 0.0 }
 0x199   : > { %v2313_v12 = vpop.eup %2018 }
 0x19a   : > { %v537_v13 = vsel %vm467_vm1, %v2313_v12, 0.0  ;;  %v2317_v14 = vpop.eup %2020 }
 0x19b   : > { %538 = vadd.xlane.f32.xlu1 %v537_v13  ;;  %529 = vadd.xlane.f32.xlu0 %v528_v15  ;;  %v531_v16 = vsel %vm467_vm1, %v2317_v14, 0.0 }
 0x19f   : > { %532 = vadd.xlane.f32.xlu1 %v531_v16 }
 0x1b0   : > { %643 = vrot.lane.b32.xlu1 %v2255_v6, %s2158_s18 }
 0x1b1   : > { %651 = vrot.lane.b32.xlu0 %v2241_v4, %s2158_s18 }
 0x1b4   : > { %645 = vrot.lane.b32.xlu1 %v2259_v7, %s2158_s18 }
 0x1b5   : > { %649 = vrot.lane.b32.xlu0 %v2267_v9, %s2158_s18 }
 0x1b8   : > { %647 = vrot.lane.b32.xlu1 %v2261_v8, %s2158_s18 }
 0x1b9   : > { %905 = vrot.lane.b32.xlu0 %v2255_v6, %s2159_s28 }
 0x1bc   : > { %913 = vrot.lane.b32.xlu1 %v2241_v4, %s2159_s28 }
 0x1bd   : > { %909 = vrot.lane.b32.xlu0 %v2261_v8, %s2159_s28 }
 0x1c0   : > { %907 = vrot.lane.b32.xlu1 %v2259_v7, %s2159_s28 }
 0x1c1   : > { %1175 = vrot.lane.b32.xlu0 %v2241_v4, %s2160_s29 }
 0x1c4   : > { %911 = vrot.lane.b32.xlu1 %v2267_v9, %s2159_s28 }
 0x1c5   : > { %1169 = vrot.lane.b32.xlu0 %v2259_v7, %s2160_s29 }
 0x1c8   : > { %1167 = vrot.lane.b32.xlu1 %v2255_v6, %s2160_s29 }
 0x1c9   : > { %1173 = vrot.lane.b32.xlu0 %v2267_v9, %s2160_s29 }
 0x1cc   : > { %1171 = vrot.lane.b32.xlu1 %v2261_v8, %s2160_s29 }
 0x212   : > { %v524_v18 = vpop.xlane.xlu0 %523 }
 0x216   : > { %v527_v19 = vpop.xlane.xlu1 %526  ;;  %v518_v20 = vpop.xlane.xlu0 %517 }
 0x217   : > { %2022 = vrcp.f32 %v527_v19 }
 0x218   : > { %2024 = vrcp.f32 %v518_v20 }
 0x219   : > { %2026 = vrcp.f32 %v524_v18 }
 0x21a   : > { %v521_v4 = vpop.xlane.xlu1 %520 }
 0x21b   : > { %2028 = vrcp.f32 %v521_v4 }
 0x220   : > { %v536_v21 = vpop.xlane.xlu0 %535 }
 0x224   : > { %v539_v22 = vpop.xlane.xlu1 %538  ;;  %v2023_v7 = vpop.eup %2022 }
 0x225   : > { %v530_v23 = vpop.xlane.xlu0 %529  ;;  %v2025_v24 = vpop.eup %2024  ;;  %2030 = vrcp.f32 %v539_v22  ;;  %v551_v8 = vmul.f32 %v2023_v7, %v2300_v62 }
 0x226   : > { %v2027_v6 = vpop.eup %2026  ;;  %2032 = vrcp.f32 %v530_v23  ;;  %v548_v26 = vmul.f32 %v2025_v24, %v2298_v59 }
 0x227   : > { %2034 = vrcp.f32 %v536_v21  ;;  %v550_v29 = vmul.f32 %v2027_v6, %v2294_v54 }
 0x228   : > { %v2029_v9 = vpop.eup %2028  ;;  %v533_v25 = vpop.xlane.xlu1 %532 }
 0x229   : > { %2036 = vrcp.f32 %v533_v25  ;;  %v549_v27 = vmul.f32 %v2029_v9, %v2013_v1  ;;  %v652_v28 = vpop.permute.xlu0 %651  ;;  %v557_v31 = vpack.c.bf16 %v551_v8, %v550_v29 }
 0x22a   : > { %1910 = vmatprep.subr.msk.bf16.mxu1 %vm386_vm0, %v652_v28  ;;  %v666_v32 = vsel %vm386_vm0, %v652_v28, 0 }
 0x22b   : > { %v556_v30 = vpack.c.bf16 %v549_v27, %v548_v26 }
 0x22c   : > { %v644_v33 = vpop.permute.xlu1 %643 }
 0x22d   : > { %1841 = vmatprep.mubr.msk.bf16.mxu1 %vm467_vm1, %v556_v30  ;;  %v650_v36 = vpop.permute.xlu0 %649 }
 0x22e   : > { %1842 = vmatmul.mubr.msk.bf16.vlgmr.msra.gmra.mxu1 %vm467_vm1, %v557_v31 }
 0x22f   : > { %1850 = vmatpush3.bf16.xpose.msra.mxu1 %v666_v32 }
 0x230   : > { %v646_v34 = vpop.permute.xlu1 %645 }
 0x231   : > { %v906_v44 = vpop.permute.xlu0 %905 }
 0x232   : > { %v2031_v35 = vpop.eup %2030 }
 0x233   : > { %v2033_v37 = vpop.eup %2032  ;;  %v555_v41 = vmul.f32 %v2031_v35, %v2313_v12 }
 0x234   : > { %v648_v38 = vpop.permute.xlu1 %647  ;;  %v2035_v39 = vpop.eup %2034  ;;  %v552_v42 = vmul.f32 %v2033_v37, %v2311_v11 }
 0x235   : > { %v554_v45 = vmul.f32 %v2035_v39, %v2307_v3  ;;  %v910_v49 = vpop.permute.xlu0 %909 }
 0x236   : > { %v2037_v40 = vpop.eup %2036 }
 0x237   : > { %v553_v43 = vmul.f32 %v2037_v40, %v2317_v14  ;;  %v559_v48 = vpack.c.bf16 %v555_v41, %v554_v45 }
 0x238   : > { %v914_v46 = vpop.permute.xlu1 %913 }
 0x239   : > { %v558_v47 = vpack.c.bf16 %v553_v43, %v552_v42  ;;  %1911 = vmatprep.subr.msk.bf16.mxu1 %vm386_vm0, %v914_v46  ;;  %v928_v50 = vsel %vm386_vm0, %v914_v46, 0  ;;  %v1176_v51 = vpop.permute.xlu0 %1175 }
 0x23a   : > { %v1190_v53 = vsel %vm386_vm0, %v1176_v51, 0 }
 0x23b   : > { %1845 = vmatprep.mubr.msk.bf16.mxu1 %vm467_vm1, %v558_v47 }
 0x23c   : > { %1846 = vmatmul.mubr.msk.bf16.gmra.mxu1 %vm467_vm1, %v559_v48  ;;  %v908_v52 = vpop.permute.xlu1 %907 }
 0x23d   : > { %1851 = vmatprep.mubr.msk.bf16.mxu1 %vm386_vm0, %v644_v33  ;;  %v1170_v56 = vpop.permute.xlu0 %1169 }
 0x240   : > { %v912_v54 = vpop.permute.xlu1 %911 }
 0x241   : > { %v1174_v58 = vpop.permute.xlu0 %1173 }
 0x244   : > { %1852 = vmatmul.mubr.msk.bf16.vlgmr.msra.gmra.mxu1 %vm386_vm0, %v646_v34  ;;  %v1168_v55 = vpop.permute.xlu1 %1167 }
 0x245   : > { %1855 = vmatprep.mubr.msk.bf16.mxu1 %vm386_vm0, %v648_v38  ;;  %1870 = vmatpush3.bf16.xpose.msra.mxu1 %v928_v50 }
 0x246   : > { %1912 = vmatprep.subr.msk.bf16.mxu1 %vm386_vm0, %v1176_v51 }
 0x248   : > { %v1172_v57 = vpop.permute.xlu1 %1171 }
 0x24c   : > { %1856 = vmatmul.mubr.msk.bf16.gmra.mxu1 %vm386_vm0, %v650_v36 }
 0x24d   : > { %1871 = vmatprep.mubr.msk.bf16.mxu1 %vm386_vm0, %v906_v44 }
 0x254   : > { %1872 = vmatmul.mubr.msk.bf16.vlgmr.msra.gmra.mxu1 %vm386_vm0, %v908_v52 }
 0x255   : > { %1875 = vmatprep.mubr.msk.bf16.mxu1 %vm386_vm0, %v910_v49  ;;  %1890 = vmatpush3.bf16.xpose.msra.mxu1 %v1190_v53 }
 0x25c   : > { %1876 = vmatmul.mubr.msk.bf16.gmra.mxu1 %vm386_vm0, %v912_v54 }
 0x25d   : > { %1891 = vmatprep.mubr.msk.bf16.mxu1 %vm386_vm0, %v1168_v55 }
 0x264   : > { %1892 = vmatmul.mubr.msk.bf16.vlgmr.msra.gmra.mxu1 %vm386_vm0, %v1170_v56 }
 0x265   : > { %1895 = vmatprep.mubr.msk.bf16.mxu1 %vm386_vm0, %v1172_v57 }
 0x26c   : > { %1896 = vmatmul.mubr.msk.bf16.gmra.mxu1 %vm386_vm0, %v1174_v58 }
 0x2ee   : > { %v2387_v59 = vpop.f32.mrf.mxu1 }
 0x2f0   : > { %v2389_v60 = vpop.f32.mrf.mxu1 }
 0x2f2   : > { %v2391_v61 = vpop.f32.mrf.mxu1 }
 0x2f4   : > { %v2393_v62 = vpop.f32.mrf.mxu1 }
 0x2fc   : > { %v2395_v63 = vpop.f32.mrf.mxu1 }
 0x2fe   : > { %v2397_v0 = vpop.f32.mrf.mxu1 }
 0x300   : > { %v2399_v1 = vpop.f32.mrf.mxu1 }
 0x302   : > { %v2401_v2 = vpop.f32.mrf.mxu1 }
 0x304   : > { %v1853_v3 = vpop.f32.mrf.mxu1 }
 0x305   : > { %v2404_v5 = vadd.f32 %v1853_v3, %v2276_v10 }
 0x306   : > { %v702_v11 = vpop.f32.mrf.mxu1 }
 0x307   : > { %v2407_v12 = vadd.f32 %v2276_v10, %v702_v11  ;;  %v739_v13 = vsel %vm467_vm1, %v2404_v5, -inf }
 0x308   : > { %740 = vmax.xlane.f32.xlu0 %v739_v13  ;;  %v1854_v14 = vpop.f32.mrf.mxu1 }
 0x309   : > { %v733_v15 = vsel %vm467_vm1, %v2407_v12, -inf  ;;  %v2417_v20 = vadd.f32 %v1854_v14, %v2276_v10 }
 0x30a   : > { %v705_v16 = vpop.f32.mrf.mxu1  ;;  %734 = vmax.xlane.f32.xlu1 %v733_v15 }
 0x30b   : > { %v2414_v18 = vadd.f32 %v2276_v10, %v705_v16  ;;  %v742_v6 = vsel %vm467_vm1, %v2417_v20, -inf }
 0x30c   : > { %v1857_v19 = vpop.f32.mrf.mxu1 }
 0x30d   : > { %v2420_v4 = vadd.f32 %v1857_v19, %v2276_v10  ;;  %v736_v21 = vsel %vm467_vm1, %v2414_v18, -inf }
 0x30e   : > { %737 = vmax.xlane.f32.xlu0 %v736_v21  ;;  %v718_v22 = vpop.f32.mrf.mxu1 }
 0x30f   : > { %v2425_v7 = vadd.f32 %v2276_v10, %v718_v22  ;;  %v751_v23 = vsel %vm467_vm1, %v2420_v4, -inf }
 0x310   : > { %752 = vmax.xlane.f32.xlu1 %v751_v23  ;;  %v1858_v24 = vpop.f32.mrf.mxu1 }
 0x311   : > { %v745_v8 = vsel %vm467_vm1, %v2425_v7, -inf  ;;  %v2437_v27 = vadd.f32 %v1858_v24, %v2276_v10 }
 0x312   : > { %743 = vmax.xlane.f32.xlu0 %v742_v6  ;;  %v721_v9 = vpop.f32.mrf.mxu1 }
 0x313   : > { %v2432_v25 = vadd.f32 %v2276_v10, %v721_v9  ;;  %v754_v34 = vsel %vm467_vm1, %v2437_v27, -inf }
 0x314   : > { %746 = vmax.xlane.f32.xlu1 %v745_v8  ;;  %v1873_v26 = vpop.f32.mrf.mxu1 }
 0x315   : > { %v2440_v28 = vadd.f32 %v1873_v26, %v2276_v10  ;;  %v748_v29 = vsel %vm467_vm1, %v2432_v25, -inf }
 0x316   : > { %749 = vmax.xlane.f32.xlu0 %v748_v29  ;;  %v964_v30 = vpop.f32.mrf.mxu1 }
 0x317   : > { %v2445_v31 = vadd.f32 %v2276_v10, %v964_v30  ;;  %v1001_v32 = vsel %vm467_vm1, %v2440_v28, -inf }
 0x318   : > { %1002 = vmax.xlane.f32.xlu1 %v1001_v32  ;;  %v1874_v33 = vpop.f32.mrf.mxu1 }
 0x319   : > { %v995_v37 = vsel %vm467_vm1, %v2445_v31, -inf  ;;  %v2457_v39 = vadd.f32 %v1874_v33, %v2276_v10 }
 0x31a   : > { %755 = vmax.xlane.f32.xlu0 %v754_v34  ;;  %v967_v35 = vpop.f32.mrf.mxu1 }
 0x31b   : > { %v2452_v36 = vadd.f32 %v2276_v10, %v967_v35  ;;  %v1004_v46 = vsel %vm467_vm1, %v2457_v39, -inf }
 0x31c   : > { %996 = vmax.xlane.f32.xlu1 %v995_v37  ;;  %v1877_v38 = vpop.f32.mrf.mxu1 }
 0x31d   : > { %v2460_v40 = vadd.f32 %v1877_v38, %v2276_v10  ;;  %v998_v41 = vsel %vm467_vm1, %v2452_v36, -inf }
 0x31e   : > { %999 = vmax.xlane.f32.xlu0 %v998_v41  ;;  %v980_v42 = vpop.f32.mrf.mxu1 }
 0x31f   : > { %v2465_v43 = vadd.f32 %v2276_v10, %v980_v42  ;;  %v1013_v44 = vsel %vm467_vm1, %v2460_v40, -inf }
 0x320   : > { %1014 = vmax.xlane.f32.xlu1 %v1013_v44  ;;  %v1878_v45 = vpop.f32.mrf.mxu1 }
 0x321   : > { %v1007_v49 = vsel %vm467_vm1, %v2465_v43, -inf  ;;  %v2477_v51 = vadd.f32 %v1878_v45, %v2276_v10 }
 0x322   : > { %1005 = vmax.xlane.f32.xlu0 %v1004_v46  ;;  %v983_v47 = vpop.f32.mrf.mxu1 }
 0x323   : > { %v2472_v48 = vadd.f32 %v2276_v10, %v983_v47  ;;  %v1016_v58 = vsel %vm467_vm1, %v2477_v51, -inf }
 0x324   : > { %1008 = vmax.xlane.f32.xlu1 %v1007_v49  ;;  %v1893_v50 = vpop.f32.mrf.mxu1 }
 0x325   : > { %v2480_v52 = vadd.f32 %v1893_v50, %v2276_v10  ;;  %v1010_v53 = vsel %vm467_vm1, %v2472_v48, -inf }
 0x326   : > { %1011 = vmax.xlane.f32.xlu0 %v1010_v53  ;;  %v1226_v54 = vpop.f32.mrf.mxu1 }
 0x327   : > { %v2485_v55 = vadd.f32 %v2276_v10, %v1226_v54  ;;  %v1263_v56 = vsel %vm467_vm1, %v2480_v52, -inf }
 0x328   : > { %1264 = vmax.xlane.f32.xlu1 %v1263_v56  ;;  %v1894_v57 = vpop.f32.mrf.mxu1 }
 0x329   : > { %v1257_v3 = vsel %vm467_vm1, %v2485_v55, -inf  ;;  %v2497_v15 = vadd.f32 %v1894_v57, %v2276_v10 }
 0x32a   : > { %1017 = vmax.xlane.f32.xlu0 %v1016_v58  ;;  %v1229_v11 = vpop.f32.mrf.mxu1 }
 0x32b   : > { %v2494_v13 = vadd.f32 %v2276_v10, %v1229_v11  ;;  %v1266_v6 = vsel %vm467_vm1, %v2497_v15, -inf }
 0x32c   : > { %1258 = vmax.xlane.f32.xlu1 %v1257_v3  ;;  %v1897_v14 = vpop.f32.mrf.mxu1 }
 0x32d   : > { %v2500_v16 = vadd.f32 %v1897_v14, %v2276_v10  ;;  %v1260_v19 = vsel %vm467_vm1, %v2494_v13, -inf }
 0x32e   : > { %1261 = vmax.xlane.f32.xlu0 %v1260_v19  ;;  %v1242_v21 = vpop.f32.mrf.mxu1 }
 0x32f   : > { %v2505_v22 = vadd.f32 %v2276_v10, %v1242_v21  ;;  %v1275_v23 = vsel %vm467_vm1, %v2500_v16, -inf }
 0x330   : > { %1276 = vmax.xlane.f32.xlu1 %v1275_v23  ;;  %v1898_v24 = vpop.f32.mrf.mxu1 }
 0x331   : > { %v1269_v9 = vsel %vm467_vm1, %v2505_v22, -inf  ;;  %v2514_v26 = vadd.f32 %v1898_v24, %v2276_v10 }
 0x332   : > { %1267 = vmax.xlane.f32.xlu0 %v1266_v6  ;;  %v1245_v8 = vpop.f32.mrf.mxu1 }
 0x333   : > { %v2517_v29 = vadd.f32 %v2276_v10, %v1245_v8  ;;  %v1278_v32 = vsel %vm467_vm1, %v2514_v26, -inf }
 0x334   : > { %1270 = vmax.xlane.f32.xlu1 %v1269_v9 }
 0x335   : > { %v1272_v30 = vsel %vm467_vm1, %v2517_v29, -inf }
 0x336   : > { %1273 = vmax.xlane.f32.xlu0 %v1272_v30 }
 0x33a   : > { %1279 = vmax.xlane.f32.xlu0 %v1278_v32 }
 0x345   : > { %825 = vrot.lane.b32.xlu1 %v2324_v17, %s2158_s18 }
 0x391   : > { %v741_v33 = vpop.xlane.xlu0 %740 }
 0x392   : > { %v759_v34 = vsub.f32 %v2404_v5, %v741_v33 }
 0x393   : > { %v735_v35 = vpop.xlane.xlu1 %734 }
 0x394   : > { %v769_v37 = vmul.f32 1.442695, %v759_v34  ;;  %v757_v10 = vsub.f32 %v2407_v12, %v735_v35 }
 0x396   : > { %2038 = vpow2.f32 %v769_v37  ;;  %v765_v38 = vmul.f32 1.442695, %v757_v10 }
 0x397   : > { %v738_v41 = vpop.xlane.xlu0 %737 }
 0x398   : > { %2040 = vpow2.f32 %v765_v38  ;;  %v758_v42 = vsub.f32 %v2414_v18, %v738_v41 }
 0x399   : > { %v753_v44 = vpop.xlane.xlu1 %752 }
 0x39a   : > { %v763_v45 = vsub.f32 %v2420_v4, %v753_v44  ;;  %v767_v50 = vmul.f32 1.442695, %v758_v42 }
 0x39b   : > { %v744_v46 = vpop.xlane.xlu0 %743 }
 0x39c   : > { %v777_v47 = vmul.f32 1.442695, %v763_v45  ;;  %v760_v49 = vsub.f32 %v2417_v20, %v744_v46 }
 0x39d   : > { %v747_v53 = vpop.xlane.xlu1 %746 }
 0x39e   : > { %2042 = vpow2.f32 %v777_v47  ;;  %v771_v5 = vmul.f32 1.442695, %v760_v49  ;;  %v761_v54 = vsub.f32 %v2425_v7, %v747_v53 }
 0x39f   : > { %v750_v12 = vpop.xlane.xlu0 %749 }
 0x3a0   : > { %2044 = vpow2.f32 %v771_v5  ;;  %v773_v56 = vmul.f32 1.442695, %v761_v54  ;;  %v762_v57 = vsub.f32 %v2432_v25, %v750_v12 }
 0x3a1   : > { %2046 = vpow2.f32 %v767_v50  ;;  %v1003_v18 = vpop.xlane.xlu1 %1002 }
 0x3a2   : > { %2048 = vpow2.f32 %v773_v56  ;;  %v1021_v4 = vsub.f32 %v2440_v28, %v1003_v18  ;;  %v775_v19 = vmul.f32 1.442695, %v762_v57 }
 0x3a3   : > { %v2533_v58 = vpop.eup %2038  ;;  %v756_v3 = vpop.xlane.xlu0 %755 }
 0x3a4   : > { %v1031_v20 = vmul.f32 1.442695, %v1021_v4  ;;  %v764_v11 = vsub.f32 %v2437_v27, %v756_v3  ;;  %v787_v14 = vsel %vm467_vm1, %v2533_v58, 0.0 }
 0x3a5   : > { %v2538_v7 = vpop.eup %2040  ;;  %v997_v21 = vpop.xlane.xlu1 %996  ;;  %788 = vadd.xlane.f32.xlu1 %v787_v14 }
 0x3a6   : > { %2050 = vpow2.f32 %v1031_v20  ;;  %v779_v25 = vmul.f32 1.442695, %v764_v11  ;;  %v1019_v23 = vsub.f32 %v2445_v31, %v997_v21  ;;  %v781_v6 = vsel %vm467_vm1, %v2538_v7, 0.0 }
 0x3a7   : > { %v1000_v24 = vpop.xlane.xlu0 %999 }
 0x3a8   : > { %2052 = vpow2.f32 %v779_v25  ;;  %v1027_v28 = vmul.f32 1.442695, %v1019_v23  ;;  %v1020_v27 = vsub.f32 %v2452_v36, %v1000_v24 }
 0x3a9   : > { %2054 = vpow2.f32 %v775_v19  ;;  %v1015_v9 = vpop.xlane.xlu1 %1014  ;;  %782 = vadd.xlane.f32.xlu1 %v781_v6 }
 0x3aa   : > { %2056 = vpow2.f32 %v1027_v28  ;;  %v1025_v8 = vsub.f32 %v2460_v40, %v1015_v9  ;;  %v1029_v37 = vmul.f32 1.442695, %v1020_v27 }
 0x3ab   : > { %v2545_v30 = vpop.eup %2042  ;;  %v1006_v32 = vpop.xlane.xlu0 %1005 }
 0x3ac   : > { %v1039_v33 = vmul.f32 1.442695, %v1025_v8  ;;  %v1022_v31 = vsub.f32 %v2457_v39, %v1006_v32  ;;  %v799_v34 = vsel %vm467_vm1, %v2545_v30, 0.0 }
 0x3ad   : > { %v2550_v35 = vpop.eup %2044  ;;  %v1009_v10 = vpop.xlane.xlu1 %1008  ;;  %800 = vadd.xlane.f32.xlu1 %v799_v34 }
 0x3ae   : > { %v2552_v36 = vpop.eup %2046  ;;  %2058 = vpow2.f32 %v1039_v33  ;;  %v1033_v38 = vmul.f32 1.442695, %v1022_v31  ;;  %v1023_v40 = vsub.f32 %v2465_v43, %v1009_v10  ;;  %v790_v41 = vsel %vm467_vm1, %v2550_v35, 0.0 }
 0x3af   : > { %v2557_v42 = vpop.eup %2048  ;;  %791 = vadd.xlane.f32.xlu0 %v790_v41  ;;  %v1012_v39 = vpop.xlane.xlu0 %1011  ;;  %v784_v43 = vsel %vm467_vm1, %v2552_v36, 0.0 }
 0x3b0   : > { %2060 = vpow2.f32 %v1033_v38  ;;  %v1035_v44 = vmul.f32 1.442695, %v1023_v40  ;;  %v793_v45 = vsel %vm467_vm1, %v2557_v42, 0.0  ;;  %v1024_v47 = vsub.f32 %v2472_v48, %v1012_v39 }
 0x3b1   : > { %2062 = vpow2.f32 %v1029_v37  ;;  %v1265_v46 = vpop.xlane.xlu1 %1264  ;;  %794 = vadd.xlane.f32.xlu1 %v793_v45 }
 0x3b2   : > { %2064 = vpow2.f32 %v1035_v44  ;;  %v1037_v57 = vmul.f32 1.442695, %v1024_v47  ;;  %v1283_v48 = vsub.f32 %v2480_v52, %v1265_v46 }
 0x3b3   : > { %v2564_v49 = vpop.eup %2050  ;;  %785 = vadd.xlane.f32.xlu0 %v784_v43  ;;  %v1018_v50 = vpop.xlane.xlu0 %1017 }
 0x3b4   : > { %v1026_v53 = vsub.f32 %v2477_v51, %v1018_v50  ;;  %v1049_v5 = vsel %vm467_vm1, %v2564_v49, 0.0  ;;  %v1293_v19 = vmul.f32 1.442695, %v1283_v48 }
 0x3b5   : > { %v2569_v54 = vpop.eup %2052  ;;  %v1259_v12 = vpop.xlane.xlu1 %1258  ;;  %1050 = vadd.xlane.f32.xlu1 %v1049_v5 }
 0x3b6   : > { %v2571_v56 = vpop.eup %2054  ;;  %v1041_v18 = vmul.f32 1.442695, %v1026_v53  ;;  %v802_v4 = vsel %vm467_vm1, %v2569_v54, 0.0  ;;  %v1281_v11 = vsub.f32 %v2485_v55, %v1259_v12 }
 0x3b7   : > { %v2576_v3 = vpop.eup %2056  ;;  %803 = vadd.xlane.f32.xlu0 %v802_v4  ;;  %v1262_v51 = vpop.xlane.xlu0 %1261  ;;  %v796_v52 = vsel %vm467_vm1, %v2571_v56, 0.0 }
 0x3b8   : > { %2066 = vpow2.f32 %v1041_v18  ;;  %v1043_v20 = vsel %vm467_vm1, %v2576_v3, 0.0  ;;  %v1289_v28 = vmul.f32 1.442695, %v1281_v11  ;;  %v1282_v10 = vsub.f32 %v2494_v13, %v1262_v51 }
 0x3b9   : > { %v1277_v14 = vpop.xlane.xlu1 %1276  ;;  %1044 = vadd.xlane.f32.xlu1 %v1043_v20  ;;  %2068 = vpow2.f32 %v1037_v57 }
 0x3ba   : > { %2070 = vpow2.f32 %v1293_v19  ;;  %v1291_v40 = vmul.f32 1.442695, %v1282_v10  ;;  %v1287_v41 = vsub.f32 %v2500_v16, %v1277_v14 }
 0x3bb   : > { %v2583_v21 = vpop.eup %2058  ;;  %797 = vadd.xlane.f32.xlu0 %v796_v52  ;;  %v1268_v25 = vpop.xlane.xlu0 %1267  ;;  %2072 = vpow2.f32 %v1289_v28 }
 0x3bc   : > { %v1061_v23 = vsel %vm467_vm1, %v2583_v21, 0.0  ;;  %v1284_v27 = vsub.f32 %v2497_v15, %v1268_v25  ;;  %v1301_v45 = vmul.f32 1.442695, %v1287_v41 }
 0x3bd   : > { %v2587_v24 = vpop.eup %2060  ;;  %v1271_v6 = vpop.xlane.xlu1 %1270  ;;  %1062 = vadd.xlane.f32.xlu1 %v1061_v23 }
 0x3be   : > { %v2589_v55 = vpop.eup %2062  ;;  %v1285_v9 = vsub.f32 %v2505_v22, %v1271_v6  ;;  %v1052_v8 = vsel %vm467_vm1, %v2587_v24, 0.0  ;;  %v1295_v38 = vmul.f32 1.442695, %v1284_v27 }
 0x3bf   : > { %v2595_v32 = vpop.eup %2064  ;;  %1053 = vadd.xlane.f32.xlu0 %v1052_v8  ;;  %v1274_v34 = vpop.xlane.xlu0 %1273  ;;  %v1046_v15 = vsel %vm467_vm1, %v2589_v55, 0.0 }
 0x3c0   : > { %v1297_v33 = vmul.f32 1.442695, %v1285_v9  ;;  %v1055_v31 = vsel %vm467_vm1, %v2595_v32, 0.0  ;;  %v1286_v16 = vsub.f32 %v2517_v29, %v1274_v34 }
 0x3c1   : > { %1056 = vadd.xlane.f32.xlu1 %v1055_v31  ;;  %v826_v37 = vpop.permute.xlu1 %825 }
 0x3c2   : > { %2074 = vpow2.f32 %v1297_v33  ;;  %1859 = vmatprep.subr.bf16.mxu0 %v826_v37  ;;  %v1299_v57 = vmul.f32 1.442695, %v1286_v16 }
 0x3c3   : > { %1047 = vadd.xlane.f32.xlu0 %v1046_v15  ;;  %1860 = vmatpush3.bf16.msra.mxu0 %v826_v37  ;;  %2076 = vpow2.f32 %v1295_v38  ;;  %v1280_v13 = vpop.xlane.xlu0 %1279 }
 0x3c4   : > { %2078 = vpow2.f32 %v1291_v40  ;;  %v1288_v46 = vsub.f32 %v2514_v26, %v1280_v13 }
 0x3c5   : > { %v2602_v22 = vpop.eup %2066  ;;  %2080 = vpow2.f32 %v1301_v45 }
 0x3c6   : > { %v1064_v39 = vsel %vm467_vm1, %v2602_v22, 0.0  ;;  %v2607_v44 = vpop.eup %2068  ;;  %v1303_v53 = vmul.f32 1.442695, %v1288_v46 }
 0x3c7   : > { %1065 = vadd.xlane.f32.xlu0 %v1064_v39  ;;  %v1058_v47 = vsel %vm467_vm1, %v2607_v44, 0.0  ;;  %v2612_v43 = vpop.eup %2070 }
 0x3c8   : > { %v2614_v50 = vpop.eup %2072  ;;  %v1311_v5 = vsel %vm467_vm1, %v2612_v43, 0.0  ;;  %2082 = vpow2.f32 %v1303_v53 }
 0x3c9   : > { %v1305_v48 = vsel %vm467_vm1, %v2614_v50, 0.0  ;;  %2084 = vpow2.f32 %v1299_v57 }
 0x3cb   : > { %1059 = vadd.xlane.f32.xlu0 %v1058_v47 }
 0x3cf   : > { %v2619_v12 = vpop.eup %2074  ;;  %1312 = vadd.xlane.f32.xlu0 %v1311_v5 }
 0x3d0   : > { %v1317_v26 = vsel %vm467_vm1, %v2619_v12, 0.0  ;;  %v2625_v18 = vpop.eup %2076 }
 0x3d1   : > { %1318 = vadd.xlane.f32.xlu1 %v1317_v26  ;;  %v1314_v29 = vsel %vm467_vm1, %v2625_v18, 0.0  ;;  %v2629_v4 = vpop.eup %2078 }
 0x3d2   : > { %v1308_v51 = vsel %vm467_vm1, %v2629_v4, 0.0  ;;  %v2633_v20 = vpop.eup %2080 }
 0x3d3   : > { %1306 = vadd.xlane.f32.xlu0 %v1305_v48  ;;  %v1323_v11 = vsel %vm467_vm1, %v2633_v20, 0.0 }
 0x3d5   : > { %v2637_v14 = vpop.eup %2082 }
 0x3d6   : > { %v1326_v19 = vsel %vm467_vm1, %v2637_v14, 0.0  ;;  %v2643_v52 = vpop.eup %2084 }
 0x3d7   : > { %1315 = vadd.xlane.f32.xlu0 %v1314_v29  ;;  %v1320_v25 = vsel %vm467_vm1, %v2643_v52, 0.0 }
 0x3db   : > { %1309 = vadd.xlane.f32.xlu0 %v1308_v51 }
 0x3df   : > { %1324 = vadd.xlane.f32.xlu0 %v1323_v11 }
 0x3e2   : > { %1349 = vrot.lane.b32.xlu1 %v2324_v17, %s2160_s29 }
 0x3e3   : > { %1327 = vadd.xlane.f32.xlu0 %v1326_v19 }
 0x3e7   : > { %1321 = vadd.xlane.f32.xlu0 %v1320_v25 }
 0x3fd   : > { %1087 = vrot.lane.b32.xlu0 %v2324_v17, %s2159_s28 }
 0x42e   : > { %v789_v23 = vpop.xlane.xlu1 %788 }
 0x432   : > { %v783_v28 = vpop.xlane.xlu1 %782 }
 0x436   : > { %v801_v6 = vpop.xlane.xlu1 %800 }
 0x438   : > { %v792_v27 = vpop.xlane.xlu0 %791 }
 0x439   : > { %2086 = vrcp.f32 %v792_v27 }
 0x43a   : > { %2088 = vrcp.f32 %v783_v28  ;;  %v795_v9 = vpop.xlane.xlu1 %794 }
 0x43b   : > { %2090 = vrcp.f32 %v789_v23 }
 0x43c   : > { %v786_v8 = vpop.xlane.xlu0 %785 }
 0x43d   : > { %2092 = vrcp.f32 %v786_v8 }
 0x43e   : > { %v1051_v31 = vpop.xlane.xlu1 %1050 }
 0x440   : > { %v804_v33 = vpop.xlane.xlu0 %803 }
 0x441   : > { %2094 = vrcp.f32 %v804_v33 }
 0x442   : > { %2096 = vrcp.f32 %v795_v9  ;;  %v1045_v17 = vpop.xlane.xlu1 %1044 }
 0x443   : > { %2098 = vrcp.f32 %v801_v6 }
 0x444   : > { %v798_v34 = vpop.xlane.xlu0 %797 }
 0x445   : > { %2100 = vrcp.f32 %v798_v34 }
 0x446   : > { %v2087_v37 = vpop.eup %2086  ;;  %2102 = vrcp.f32 %v1045_v17 }
 0x447   : > { %v2089_v10 = vpop.eup %2088  ;;  %v816_v41 = vmul.f32 %v2087_v37, %v2550_v35 }
 0x448   : > { %v1054_v38 = vpop.xlane.xlu0 %1053  ;;  %v2091_v15 = vpop.eup %2090  ;;  %v813_v39 = vmul.f32 %v2089_v10, %v2538_v7 }
 0x449   : > { %v815_v45 = vmul.f32 %v2091_v15, %v2533_v58 }
 0x44a   : > { %v2093_v40 = vpop.eup %2092 }
 0x44b   : > { %v814_v13 = vmul.f32 %v2093_v40, %v2552_v36  ;;  %v822_v16 = vpack.c.bf16 %v816_v41, %v815_v45 }
 0x44c   : > { %v1048_v46 = vpop.xlane.xlu0 %1047 }
 0x44d   : > { %2104 = vrcp.f32 %v1048_v46  ;;  %v821_v47 = vpack.c.bf16 %v814_v13, %v813_v39 }
 0x44e   : > { %v2095_v53 = vpop.eup %2094  ;;  %2106 = vrcp.f32 %v1054_v38 }
 0x44f   : > { %1861 = vmatprep.mubr.msk.bf16.mxu0 %vm467_vm1, %v821_v47  ;;  %v2097_v5 = vpop.eup %2096  ;;  %v820_v48 = vmul.f32 %v2095_v53, %v2569_v54 }
 0x450   : > { %1862 = vmatmul.mubr.msk.bf16.vlgmr.msra.gmra.mxu0 %vm467_vm1, %v822_v16  ;;  %v1066_v26 = vpop.xlane.xlu0 %1065  ;;  %v2099_v57 = vpop.eup %2098  ;;  %v817_v7 = vmul.f32 %v2097_v5, %v2557_v42 }
 0x451   : > { %v819_v29 = vmul.f32 %v2099_v57, %v2545_v30  ;;  %v1063_v42 = vpop.xlane.xlu1 %1062 }
 0x452   : > { %v2101_v35 = vpop.eup %2100 }
 0x453   : > { %v818_v36 = vmul.f32 %v2101_v35, %v2571_v56  ;;  %v824_v11 = vpack.c.bf16 %v820_v48, %v819_v29  ;;  %v2103_v19 = vpop.eup %2102 }
 0x454   : > { %v1060_v58 = vpop.xlane.xlu0 %1059  ;;  %v1075_v28 = vmul.f32 %v2103_v19, %v2576_v3 }
 0x455   : > { %v823_v51 = vpack.c.bf16 %v818_v36, %v817_v7  ;;  %v1057_v30 = vpop.xlane.xlu1 %1056  ;;  %2108 = vrcp.f32 %v1060_v58 }
 0x456   : > { %2110 = vrcp.f32 %v1051_v31 }
 0x457   : > { %1865 = vmatprep.mubr.msk.bf16.mxu0 %vm467_vm1, %v823_v51  ;;  %2112 = vrcp.f32 %v1057_v30 }
 0x458   : > { %1866 = vmatmul.mubr.msk.bf16.gmra.mxu0 %vm467_vm1, %v824_v11  ;;  %v1313_v25 = vpop.xlane.xlu0 %1312  ;;  %2114 = vrcp.f32 %v1066_v26 }
 0x45a   : > { %v2105_v23 = vpop.eup %2104 }
 0x45b   : > { %v1076_v54 = vmul.f32 %v2105_v23, %v2589_v55  ;;  %v2107_v3 = vpop.eup %2106  ;;  %v1319_v55 = vpop.xlane.xlu1 %1318 }
 0x45c   : > { %v1307_v6 = vpop.xlane.xlu0 %1306  ;;  %v1078_v15 = vmul.f32 %v2107_v3, %v2587_v24 }
 0x45d   : > { %v1083_v27 = vpack.c.bf16 %v1076_v54, %v1075_v28 }
 0x45f   : > { %1881 = vmatprep.mubr.msk.bf16.mxu0 %vm467_vm1, %v1083_v27  ;;  %v1350_v40 = vpop.permute.xlu1 %1349 }
 0x460   : > { %v1316_v56 = vpop.xlane.xlu0 %1315 }
 0x462   : > { %v2109_v37 = vpop.eup %2108 }
 0x463   : > { %v2111_v10 = vpop.eup %2110  ;;  %v1080_v31 = vmul.f32 %v2109_v37, %v2607_v44 }
 0x464   : > { %v1310_v9 = vpop.xlane.xlu0 %1309  ;;  %v2113_v17 = vpop.eup %2112  ;;  %v1077_v41 = vmul.f32 %v2111_v10, %v2564_v49 }
 0x465   : > { %2116 = vrcp.f32 %v1310_v9  ;;  %v1079_v39 = vmul.f32 %v2113_v17, %v2595_v32  ;;  %v2115_v45 = vpop.eup %2114 }
 0x466   : > { %2118 = vrcp.f32 %v1063_v42  ;;  %v1084_v13 = vpack.c.bf16 %v1078_v15, %v1077_v41  ;;  %v1082_v49 = vmul.f32 %v2115_v45, %v2602_v22 }
 0x467   : > { %2120 = vrcp.f32 %v1307_v6  ;;  %v1085_v46 = vpack.c.bf16 %v1080_v31, %v1079_v39 }
 0x468   : > { %v1325_v8 = vpop.xlane.xlu0 %1324  ;;  %2122 = vrcp.f32 %v1316_v56 }
 0x46c   : > { %v1328_v33 = vpop.xlane.xlu0 %1327 }
 0x470   : > { %v1322_v34 = vpop.xlane.xlu0 %1321 }
 0x471   : > { %2124 = vrcp.f32 %v1322_v34 }
 0x472   : > { %2126 = vrcp.f32 %v1313_v25  ;;  %v2117_v47 = vpop.eup %2116 }
 0x473   : > { %2128 = vrcp.f32 %v1319_v55  ;;  %v2119_v24 = vpop.eup %2118  ;;  %v1338_v16 = vmul.f32 %v2117_v47, %v2629_v4 }
 0x474   : > { %v1088_v38 = vpop.permute.xlu0 %1087  ;;  %v2121_v44 = vpop.eup %2120  ;;  %2130 = vrcp.f32 %v1328_v33  ;;  %v1081_v32 = vmul.f32 %v2119_v24, %v2583_v21 }
 0x475   : > { %1879 = vmatprep.subr.bf16.mxu0 %v1088_v38  ;;  %2132 = vrcp.f32 %v1325_v8  ;;  %v1337_v53 = vmul.f32 %v2121_v44, %v2614_v50  ;;  %v2123_v26 = vpop.eup %2122 }
 0x476   : > { %1880 = vmatpush3.bf16.msra.mxu0 %v1088_v38  ;;  %v1086_v5 = vpack.c.bf16 %v1082_v49, %v1081_v32  ;;  %v1340_v36 = vmul.f32 %v2123_v26, %v2625_v18 }
 0x477   : > { %1899 = vmatprep.subr.bf16.mxu0 %v1350_v40  ;;  %v1345_v57 = vpack.c.bf16 %v1338_v16, %v1337_v53 }
 0x479   : > { %1882 = vmatmul.mubr.msk.bf16.vlgmr.msra.gmra.mxu0 %vm467_vm1, %v1084_v13 }
 0x47a   : > { %1885 = vmatprep.mubr.msk.bf16.mxu0 %vm467_vm1, %v1085_v46  ;;  %1900 = vmatpush3.bf16.msra.mxu0 %v1350_v40 }
 0x47e   : > { %v2125_v35 = vpop.eup %2124 }
 0x47f   : > { %v2127_v48 = vpop.eup %2126  ;;  %v1342_v22 = vmul.f32 %v2125_v35, %v2643_v52 }
 0x480   : > { %v2129_v7 = vpop.eup %2128  ;;  %v1339_v4 = vmul.f32 %v2127_v48, %v2612_v43 }
 0x481   : > { %1886 = vmatmul.mubr.msk.bf16.gmra.mxu0 %vm467_vm1, %v1086_v5  ;;  %v1341_v21 = vmul.f32 %v2129_v7, %v2619_v12  ;;  %v2131_v50 = vpop.eup %2130 }
 0x482   : > { %1901 = vmatprep.mubr.msk.bf16.mxu0 %vm467_vm1, %v1345_v57  ;;  %v1346_v58 = vpack.c.bf16 %v1340_v36, %v1339_v4  ;;  %v2133_v51 = vpop.eup %2132  ;;  %v1344_v11 = vmul.f32 %v2131_v50, %v2637_v14 }
 0x483   : > { %v1347_v29 = vpack.c.bf16 %v1342_v22, %v1341_v21  ;;  %v1343_v19 = vmul.f32 %v2133_v51, %v2633_v20 }
 0x485   : > { %v1348_v25 = vpack.c.bf16 %v1344_v11, %v1343_v19 }
 0x489   : > { %1902 = vmatmul.mubr.msk.bf16.vlgmr.msra.gmra.mxu0 %vm467_vm1, %v1346_v58 }
 0x48a   : > { %1905 = vmatprep.mubr.msk.bf16.mxu0 %vm467_vm1, %v1347_v29 }
 0x491   : > { %1906 = vmatmul.mubr.msk.bf16.gmra.mxu0 %vm467_vm1, %v1348_v25 }
 0x510   : > { %v1863_v18 = vpop.f32.mrf.mxu0 }
 0x512   : > { %v874_v52 = vpop.f32.mrf.mxu0 }
 0x514   : > { %v1864_v43 = vpop.f32.mrf.mxu0 }
 0x515   : > { %v1940_v23 = vpack.i.bf16 %v1864_v43, %v1863_v18 }
 0x516   : > { %v877_v12 = vpop.f32.mrf.mxu0 }
 0x517   : > { %1941 = vrot.lane.b32.xlu0 %v1940_v23, %s2160_s29  ;;  %v1945_v54 = vpack.i.bf16 %v877_v12, %v874_v52 }
 0x518   : > { %v1867_v28 = vpop.f32.mrf.mxu0 }
 0x51a   : > { %v890_v6 = vpop.f32.mrf.mxu0 }
 0x51b   : > { %1946 = vrot.lane.b32.xlu0 %v1945_v54, %s2160_s29 }
 0x51c   : > { %v1868_v42 = vpop.f32.mrf.mxu0 }
 0x51d   : > { %v1950_v27 = vpack.i.bf16 %v1868_v42, %v1867_v28 }
 0x51e   : > { %v893_v14 = vpop.f32.mrf.mxu0 }
 0x51f   : > { %1951 = vrot.lane.b32.xlu0 %v1950_v27, %s2160_s29  ;;  %v1955_v20 = vpack.i.bf16 %v893_v14, %v890_v6 }
 0x523   : > { %1956 = vrot.lane.b32.xlu0 %v1955_v20, %s2160_s29 }
 0x539   : > { %v1883_v56 = vpop.f32.mrf.mxu0 }
 0x53b   : > { %v1136_v30 = vpop.f32.mrf.mxu0 }
 0x53d   : > { %v1884_v9 = vpop.f32.mrf.mxu0 }
 0x53e   : > { %v1960_v8 = vpack.i.bf16 %v1884_v9, %v1883_v56 }
 0x53f   : > { %v1139_v33 = vpop.f32.mrf.mxu0 }
 0x540   : > { %v1965_v3 = vpack.i.bf16 %v1139_v33, %v1136_v30  ;;  %1961 = vrot.lane.b32.xlu1 %v1960_v8, %s2159_s28 }
 0x541   : > { %v1887_v55 = vpop.f32.mrf.mxu0 }
 0x542   : > { %1966 = vrot.lane.b32.xlu0 %v1965_v3, %s2159_s28 }
 0x543   : > { %v1152_v34 = vpop.f32.mrf.mxu0 }
 0x545   : > { %v1888_v37 = vpop.f32.mrf.mxu0 }
 0x546   : > { %v1970_v10 = vpack.i.bf16 %v1888_v37, %v1887_v55 }
 0x547   : > { %v1155_v17 = vpop.f32.mrf.mxu0 }
 0x548   : > { %v1975_v15 = vpack.i.bf16 %v1155_v17, %v1152_v34  ;;  %1971 = vrot.lane.b32.xlu1 %v1970_v10, %s2159_s28 }
 0x549   : > { %v1903_v38 = vpop.f32.mrf.mxu0 }
 0x54a   : > { %1976 = vrot.lane.b32.xlu0 %v1975_v15, %s2159_s28 }
 0x54b   : > { %v1398_v31 = vpop.f32.mrf.mxu0 }
 0x54d   : > { %v1904_v40 = vpop.f32.mrf.mxu0 }
 0x54e   : > { %v1980_v41 = vpack.i.bf16 %v1904_v40, %v1903_v38 }
 0x54f   : > { %v1401_v39 = vpop.f32.mrf.mxu0 }
 0x550   : > { %v1985_v13 = vpack.i.bf16 %v1401_v39, %v1398_v31  ;;  %1981 = vrot.lane.b32.xlu1 %v1980_v41, %s2158_s18 }
 0x551   : > { %v1907_v45 = vpop.f32.mrf.mxu0 }
 0x552   : > { %1986 = vrot.lane.b32.xlu0 %v1985_v13, %s2158_s18 }
 0x553   : > { %v1414_v46 = vpop.f32.mrf.mxu0 }
 0x555   : > { %v1908_v47 = vpop.f32.mrf.mxu0 }
 0x556   : > { %v1995_v24 = vpack.i.bf16 %v1908_v47, %v1907_v45 }
 0x557   : > { %v1417_v44 = vpop.f32.mrf.mxu0 }
 0x558   : > { %v1990_v49 = vpack.i.bf16 %v1417_v44, %v1414_v46  ;;  %1996 = vrot.lane.b32.xlu1 %v1995_v24, %s2158_s18 }
 0x55a   : > { %1991 = vrot.lane.b32.xlu0 %v1990_v49, %s2158_s18 }
 0x589   : > { %v1942_v16 = vpop.permute.xlu0 %1941 }
 0x58a   : > { %v1944_v48 = vunpack.i.h.bf16 %v1942_v16  ;;  %v1943_v7 = vunpack.i.l.bf16 %v1942_v16 }
 0x58c   : > { %v1528_v11 = vsel %vm386_vm0, %v2391_v61, %v1944_v48  ;;  %v1527_v19 = vsel %vm386_vm0, %v2387_v59, %v1943_v7 }
 0x58d   : > { %v1947_v32 = vpop.permute.xlu0 %1946 }
 0x58e   : > { %v1949_v36 = vunpack.i.h.bf16 %v1947_v32  ;;  %v1948_v22 = vunpack.i.l.bf16 %v1947_v32 }
 0x590   : > { %v1526_v52 = vsel %vm386_vm0, %v2393_v62, %v1949_v36  ;;  %v1525_v43 = vsel %vm386_vm0, %v2389_v60, %v1948_v22 }
 0x591   : > { %v1952_v53 = vpop.permute.xlu0 %1951 }
 0x592   : > { %v1954_v60 = vunpack.i.h.bf16 %v1952_v53  ;;  %v1953_v14 = vunpack.i.l.bf16 %v1952_v53 }
 0x594   : > { %v1532_v10 = vsel %vm386_vm0, %v2399_v1, %v1954_v60  ;;  %v1531_v17 = vsel %vm386_vm0, %v2395_v63, %v1953_v14 }
 0x595   : > { %v1957_v5 = vpop.permute.xlu0 %1956 }
 0x596   : > { %v1959_v20 = vunpack.i.h.bf16 %v1957_v5  ;;  %v1958_v9 = vunpack.i.l.bf16 %v1957_v5 }
 0x598   : > { %v1530_v31 = vsel %vm386_vm0, %v2401_v2, %v1959_v20  ;;  %v1529_v40 = vsel %vm386_vm0, %v2397_v0, %v1958_v9 }
 0x5b2   : > { %v1962_v26 = vpop.permute.xlu1 %1961 }
 0x5b3   : > { %v1964_v4 = vunpack.i.h.bf16 %v1962_v26  ;;  %v1963_v21 = vunpack.i.l.bf16 %v1962_v26 }
 0x5b4   : > { %v1967_v57 = vpop.permute.xlu0 %1966 }
 0x5b5   : > { %v1969_v50 = vunpack.i.h.bf16 %v1967_v57  ;;  %v1968_v29 = vunpack.i.l.bf16 %v1967_v57  ;;  %v1536_v23 = vsel %vm1533_vm2, %v1527_v19, %v1963_v21  ;;  %v1537_v12 = vsel %vm1533_vm2, %v1528_v11, %v1964_v4 }
 0x5b7   : > { %v1534_v6 = vsel %vm1533_vm2, %v1525_v43, %v1968_v29  ;;  %v1535_v42 = vsel %vm1533_vm2, %v1526_v52, %v1969_v50 }
 0x5ba   : > { %v1972_v35 = vpop.permute.xlu1 %1971 }
 0x5bb   : > { %v1974_v8 = vunpack.i.h.bf16 %v1972_v35  ;;  %v1973_v33 = vunpack.i.l.bf16 %v1972_v35 }
 0x5bc   : > { %v1977_v58 = vpop.permute.xlu0 %1976 }
 0x5bd   : > { %v1979_v55 = vunpack.i.h.bf16 %v1977_v58  ;;  %v1978_v34 = vunpack.i.l.bf16 %v1977_v58  ;;  %v1540_v41 = vsel %vm1533_vm2, %v1531_v17, %v1973_v33  ;;  %v1541_v39 = vsel %vm1533_vm2, %v1532_v10, %v1974_v8 }
 0x5bf   : > { %v1538_v47 = vsel %vm1533_vm2, %v1529_v40, %v1978_v34  ;;  %v1539_v24 = vsel %vm1533_vm2, %v1530_v31, %v1979_v55 }
 0x5c2   : > { %v1982_v51 = vpop.permute.xlu1 %1981 }
 0x5c3   : > { %v1984_v25 = vunpack.i.h.bf16 %v1982_v51  ;;  %v1983_v18 = vunpack.i.l.bf16 %v1982_v51 }
 0x5c4   : > { %v1987_v28 = vpop.permute.xlu0 %1986 }
 0x5c5   : > { %v1545_v59 = vsel %vm1542_vm3, %v1536_v23, %v1983_v18  ;;  %v1546_v61 = vsel %vm1542_vm3, %v1537_v12, %v1984_v25  ;;  %v1989_v62 = vunpack.i.h.bf16 %v1987_v28  ;;  %v1988_v54 = vunpack.i.l.bf16 %v1987_v28 }
 0x5c6   : > { %v1774_v27 = vpack.c.bf16 %v1546_v61, %v1545_v59 }
 0x5c7   : > { %v1543_v56 = vsel %vm1542_vm3, %v1534_v6, %v1988_v54  ;;  %v1544_v30 = vsel %vm1542_vm3, %v1535_v42, %v1989_v62 }
 0x5c8   : > { %1786 = vst [vmem:[%s2712_s6 + $0x8] sm:$0xff] %v1774_v27   ;;  %v1769_v3 = vpack.c.bf16 %v1544_v30, %v1543_v56 }
 0x5ca   : > { %1770 = vst [vmem:[%s2712_s6] sm:$0xff] %v1769_v3   ;;  %v1997_v37 = vpop.permute.xlu1 %1996 }
 0x5cb   : > { %v1999_v15 = vunpack.i.h.bf16 %v1997_v37  ;;  %v1998_v38 = vunpack.i.l.bf16 %v1997_v37 }
 0x5cc   : > { %v1992_v13 = vpop.permute.xlu0 %1991 }
 0x5cd   : > { %v1549_v1 = vsel %vm1542_vm3, %v1540_v41, %v1998_v38  ;;  %v1550_v45 = vsel %vm1542_vm3, %v1541_v39, %v1999_v15  ;;  %v1994_v63 = vunpack.i.h.bf16 %v1992_v13  ;;  %v1993_v46 = vunpack.i.l.bf16 %v1992_v13 }
 0x5ce   : > { %v1784_v2 = vpack.c.bf16 %v1550_v45, %v1549_v1 }
 0x5cf   : > { %v1547_v44 = vsel %vm1542_vm3, %v1538_v47, %v1993_v46  ;;  %v1548_v0 = vsel %vm1542_vm3, %v1539_v24, %v1994_v63 }
 0x5d0   : > { %1788 = vst [vmem:[%s2712_s6 + $0x18] sm:$0xff] %v1784_v2   ;;  %v1779_v49 = vpack.c.bf16 %v1548_v0, %v1547_v44 }
 0x5d2   : > { %1787 = vst [vmem:[%s2712_s6 + $0x10] sm:$0xff] %v1779_v49  }
 0x5d3 PF: > { %p11_p9 = scmp.ge.s32.totalorder %s2203_s19, 4   ;;  %s2756_s15 = smov %s2152_s16 }
 0x5d4   : > { %s2757_s16 = smov %s2212_s22  ;;  %s2758_s17 = smov %s2203_s19 }
 0x5d5   :  { %13 = sbr.rel (!%p11_p9) target bundleno = 2 (0x2), region = 165 }

// kernel: decoder_layer.15
= control target key start
LH: loop header
LB: loop body
LE: loop exit
PB: predicated region body
PF: predicated region fallthrough
CT: control target
= control target key end

     0   :  { %s1356_s30 = smov 0   ;;  %s1806_s0 = inlined_call_operand.vmem [shape: f32[128,128], index: 0, kind: input, shape index: {}]   ;;  %s1807_s1 = inlined_call_operand.vmem [shape: f32[1,128], index: 1, kind: input, shape index: {}]   ;;  %s1808_s2 = inlined_call_operand.vmem [shape: f32[1,128], index: 2, kind: input, shape index: {}]   ;;  %s1809_s3 = inlined_call_operand.vmem [shape: bf16[128,256], index: 3, kind: input, shape index: {}]   ;;  %s1810_s4 = inlined_call_operand.vmem [shape: f32[1,256], index: 4, kind: input, shape index: {}]   ;;  %s1811_s5 = inlined_call_operand.vmem [shape: f32[1,256], index: 5, kind: input, shape index: {}]   ;;  %s1812_s6 = inlined_call_operand.vmem [shape: f32[1,256], index: 6, kind: input, shape index: {}]   ;;  %s1813_s7 = inlined_call_operand.vmem [shape: bf16[256,128], index: 7, kind: input, shape index: {}]   ;;  %s1814_s8 = inlined_call_operand.vmem [shape: f32[1,128], index: 8, kind: input, shape index: {}]   ;;  %s1815_s9 = inlined_call_operand.vmem [shape: f32[128,128], index: 9, kind: output, shape index: {}]  }
   0x1 LB: > { %s1130_s10 = sadd.s32 4294967295, %s1303_s30   ;;  %p1134_p0 = scmp.ge.s32.totalorder %s1303_s30, 1  ;;  %s1303_s30 = sphi %s1356_s30, %s19_s30  }
   0x2   : > { %p288_p1 = scmp.lt.s32.totalorder %s1303_s30, 3 }
   0x4   : > { %p289_p2 = pnand %p1134_p0, %p288_p1 }
   0x5   : > { %s1135_s11 = sshll.u32 (!%p289_p2), %s1130_s10, 3 }
   0x6   : > { %292 = sbr.rel (%p289_p2) target bundleno = 1073 (0x431), region = 56  ;;  %p325_p3 = scmp.lt.s32.totalorder (!%p289_p2), %s1135_s11, 15 }
   0xb   : > { %s1817_s11 = smov (!%p325_p3, %s1135_s11), 15  ;;  %v1225_v8 = vld [vmem:[%s1809_s3 + $0x74] ss:$8 sps:$4 sm:$0xff]   ;;  %v1227_v9 = vld [vmem:[%s1809_s3 + $0x70] ss:$8 sps:$4 sm:$0xff]   ;;  %v1305_v55 = vmov 0  }
   0xc   : > { %s1136_s12 = sshll.u32 %s1817_s11, 3  ;;  %576 = vmatprep.subr.bf16.mxu0 %v1225_v8  ;;  %v1228_v41 = vld [vmem:[%s1809_s3 + $0x64] ss:$8 sps:$4 sm:$0xff]   ;;  %v1230_v42 = vld [vmem:[%s1809_s3 + $0x60] ss:$8 sps:$4 sm:$0xff]   ;;  %608 = vmatprep.mubr.bf16.mxu0 %v1305_v55 }
   0xd   : > { %s328_s15 = scalar_lea.vmem %s1806_s0, %s1136_s12  ;;  %577 = vmatpush1.bf16.msra.mxu0 %v1227_v9  ;;  %v1231_v44 = vld [vmem:[%s1809_s3 + $0x54] ss:$8 sps:$4 sm:$0xff]   ;;  %v1233_v45 = vld [vmem:[%s1809_s3 + $0x50] ss:$8 sps:$4 sm:$0xff]   ;;  %v1234_v46 = vld [vmem:[%s1809_s3 + $0x44] ss:$8 sps:$4 sm:$0xff]   ;;  %s1785_s22 = scalar_lea.vmem %s1815_s9, %s1136_s12 }
   0xe   : > { %v1372_v0 = vld [vmem:[%s328_s15] sm:$0xff]  ;;  %v1374_v1 = vld [vmem:[%s328_s15 + $0x10] sm:$0xff]  ;;  %v1378_v2 = vld [vmem:[%s328_s15 + $0x8] sm:$0xff]  ;;  %578 = vmatprep.subr.bf16.mxu0 %v1228_v41 }
   0xf   : > { %347 = vadd.xlane.f32.xlu0 %v1372_v0  ;;  %351 = vadd.xlane.f32.xlu1 %v1374_v1  ;;  %v1380_v3 = vld [vmem:[%s328_s15 + $0x18] sm:$0xff]  ;;  %v1382_v4 = vld [vmem:[%s328_s15 + $0x20] sm:$0xff]  ;;  %v1384_v5 = vld [vmem:[%s328_s15 + $0x28] sm:$0xff] }
  0x10   : > { %v1388_v6 = vld [vmem:[%s328_s15 + $0x30] sm:$0xff]  ;;  %v1390_v7 = vld [vmem:[%s328_s15 + $0x38] sm:$0xff]  ;;  %v1236_v47 = vld [vmem:[%s1809_s3 + $0x40] ss:$8 sps:$4 sm:$0xff]  }
  0x11   : > { %579 = vmatpush1.bf16.msra.mxu0 %v1230_v42  ;;  %v1237_v48 = vld [vmem:[%s1809_s3 + $0x34] ss:$8 sps:$4 sm:$0xff]   ;;  %v1239_v49 = vld [vmem:[%s1809_s3 + $0x30] ss:$8 sps:$4 sm:$0xff]   ;;  %v1240_v50 = vld [vmem:[%s1809_s3 + $0x24] ss:$8 sps:$4 sm:$0xff]  }
  0x12   : > { %580 = vmatprep.subr.bf16.mxu0 %v1231_v44  ;;  %v1242_v51 = vld [vmem:[%s1809_s3 + $0x20] ss:$8 sps:$4 sm:$0xff]   ;;  %v1243_v52 = vld [vmem:[%s1809_s3 + $0x14] ss:$8 sps:$4 sm:$0xff]   ;;  %v1245_v53 = vld [vmem:[%s1809_s3 + $0x10] ss:$8 sps:$4 sm:$0xff]  }
  0x13   : > { %349 = vadd.xlane.f32.xlu0 %v1378_v2  ;;  %353 = vadd.xlane.f32.xlu1 %v1380_v3  ;;  %v1246_v54 = vld [vmem:[%s1809_s3 + $0x4] ss:$8 sps:$4 sm:$0xff]   ;;  %v1248_v56 = vld [vmem:[%s1809_s3] ss:$8 sps:$4 sm:$0xff]  }
  0x15   : > { %581 = vmatpush1.bf16.msra.mxu0 %v1233_v45 }
  0x16   : > { %582 = vmatprep.subr.bf16.mxu0 %v1234_v46 }
  0x17   : > { %355 = vadd.xlane.f32.xlu0 %v1382_v4  ;;  %357 = vadd.xlane.f32.xlu1 %v1384_v5 }
  0x19   : > { %583 = vmatpush1.bf16.msra.mxu0 %v1236_v47 }
  0x1a   : > { %584 = vmatprep.subr.bf16.mxu0 %v1237_v48 }
  0x1b   : > { %359 = vadd.xlane.f32.xlu0 %v1388_v6  ;;  %361 = vadd.xlane.f32.xlu1 %v1390_v7 }
  0x1d   : > { %585 = vmatpush1.bf16.msra.mxu0 %v1239_v49 }
  0x1e   : > { %586 = vmatprep.subr.bf16.mxu0 %v1240_v50 }
  0x21   : > { %587 = vmatpush1.bf16.msra.mxu0 %v1242_v51 }
  0x22   : > { %588 = vmatprep.subr.bf16.mxu0 %v1243_v52 }
  0x25   : > { %589 = vmatpush1.bf16.msra.mxu0 %v1245_v53 }
  0x26   : > { %590 = vmatprep.subr.bf16.mxu0 %v1246_v54 }
  0x29   : > { %591 = vmatpush1.bf16.msra.mxu0 %v1248_v56 }
  0x98   : > { %v348_v10 = vpop.xlane.xlu0 %347  ;;  %v352_v11 = vpop.xlane.xlu1 %351 }
  0x99   : > { %v364_v12 = vmul.f32 0.0078125, %v348_v10  ;;  %v366_v13 = vmul.f32 0.0078125, %v352_v11 }
  0x9b   : > { %v1403_v14 = vsub.f32 %v1372_v0, %v364_v12  ;;  %v1406_v15 = vsub.f32 %v1374_v1, %v366_v13 }
  0x9c   : > { %v350_v16 = vpop.xlane.xlu0 %349  ;;  %v354_v17 = vpop.xlane.xlu1 %353 }
  0x9d   : > { %v365_v18 = vmul.f32 0.0078125, %v350_v16  ;;  %v380_v19 = vmul.f32 %v1403_v14, %v1403_v14  ;;  %v367_v20 = vmul.f32 0.0078125, %v354_v17  ;;  %v382_v23 = vmul.f32 %v1406_v15, %v1406_v15 }
  0x9f   : > { %v1411_v21 = vsub.f32 %v1378_v2, %v365_v18  ;;  %388 = vadd.xlane.f32.xlu0 %v380_v19  ;;  %v1414_v22 = vsub.f32 %v1380_v3, %v367_v20 }
  0xa0   : > { %v356_v24 = vpop.xlane.xlu0 %355  ;;  %v358_v25 = vpop.xlane.xlu1 %357 }
  0xa1   : > { %v368_v26 = vmul.f32 0.0078125, %v356_v24  ;;  %v381_v27 = vmul.f32 %v1411_v21, %v1411_v21  ;;  %v369_v28 = vmul.f32 0.0078125, %v358_v25  ;;  %v383_v31 = vmul.f32 %v1414_v22, %v1414_v22 }
  0xa3   : > { %v1421_v29 = vsub.f32 %v1382_v4, %v368_v26  ;;  %392 = vadd.xlane.f32.xlu0 %v382_v23  ;;  %390 = vadd.xlane.f32.xlu1 %v381_v27  ;;  %v1424_v30 = vsub.f32 %v1384_v5, %v369_v28 }
  0xa4   : > { %v360_v32 = vpop.xlane.xlu0 %359  ;;  %v362_v33 = vpop.xlane.xlu1 %361 }
  0xa5   : > { %v370_v34 = vmul.f32 0.0078125, %v360_v32  ;;  %v384_v35 = vmul.f32 %v1421_v29, %v1421_v29  ;;  %v371_v36 = vmul.f32 0.0078125, %v362_v33  ;;  %v385_v39 = vmul.f32 %v1424_v30, %v1424_v30 }
  0xa7   : > { %v1431_v37 = vsub.f32 %v1388_v6, %v370_v34  ;;  %394 = vadd.xlane.f32.xlu1 %v383_v31  ;;  %396 = vadd.xlane.f32.xlu0 %v384_v35  ;;  %v1434_v38 = vsub.f32 %v1390_v7, %v371_v36  ;;  %v1139_v31 = vld [vmem:[%s1807_s1] ss:$0 sm:$0xff] }
  0xa9   : > { %v386_v40 = vmul.f32 %v1431_v37, %v1431_v37  ;;  %v387_v43 = vmul.f32 %v1434_v38, %v1434_v38 }
  0xab   : > { %398 = vadd.xlane.f32.xlu1 %v385_v39  ;;  %400 = vadd.xlane.f32.xlu0 %v386_v40  ;;  %v1140_v40 = vld [vmem:[%s1808_s2] ss:$0 sm:$0xff] }
  0xaf   : > { %402 = vadd.xlane.f32.xlu1 %v387_v43 }
 0x128   : > { %v389_v57 = vpop.xlane.xlu0 %388 }
 0x129   : > { %v404_v58 = vmul.f32 0.0078125, %v389_v57 }
 0x12b   : > { %v412_v59 = vadd.f32 1e-05, %v404_v58 }
 0x12c   : > { %v391_v60 = vpop.xlane.xlu1 %390  ;;  %v393_v61 = vpop.xlane.xlu0 %392 }
 0x12d   : > { %1265 = vrsqrt.f32 %v412_v59  ;;  %v405_v62 = vmul.f32 0.0078125, %v391_v60  ;;  %v406_v63 = vmul.f32 0.0078125, %v393_v61 }
 0x12f   : > { %v413_v8 = vadd.f32 1e-05, %v405_v62  ;;  %v414_v9 = vadd.f32 1e-05, %v406_v63 }
 0x130   : > { %v395_v10 = vpop.xlane.xlu1 %394  ;;  %v397_v11 = vpop.xlane.xlu0 %396 }
 0x131   : > { %1267 = vrsqrt.f32 %v413_v8  ;;  %v407_v12 = vmul.f32 0.0078125, %v395_v10  ;;  %v408_v16 = vmul.f32 0.0078125, %v397_v11  ;;  %v486_v10 = vlaneseq }
 0x132   : > { %1269 = vrsqrt.f32 %v414_v9 }
 0x133   : > { %v415_v13 = vadd.f32 1e-05, %v407_v12  ;;  %v416_v19 = vadd.f32 1e-05, %v408_v16  ;;  %v487_v11 = vshrl.u32 %v486_v10, 7 }
 0x134   : > { %v399_v17 = vpop.xlane.xlu1 %398  ;;  %v401_v23 = vpop.xlane.xlu0 %400 }
 0x135   : > { %1271 = vrsqrt.f32 %v415_v13  ;;  %v409_v18 = vmul.f32 0.0078125, %v399_v17  ;;  %v410_v27 = vmul.f32 0.0078125, %v401_v23  ;;  %v1502_v12 = vsub.s32 0, %v487_v11 }
 0x136   : > { %v1507_v13 = vsub.s32 1, %v487_v11 }
 0x137   : > { %v417_v20 = vadd.f32 1e-05, %v409_v18  ;;  %v418_v34 = vadd.f32 1e-05, %v410_v27 }
 0x138   : > { %v403_v24 = vpop.xlane.xlu1 %402 }
 0x139   : > { %1273 = vrsqrt.f32 %v417_v20  ;;  %v411_v25 = vmul.f32 0.0078125, %v403_v24 }
 0x13a   : > { %v1266_v26 = vpop.eup %1265  ;;  %1275 = vrsqrt.f32 %v416_v19 }
 0x13b   : > { %v428_v28 = vmul.f32 %v1266_v26, %v1403_v14  ;;  %v419_v32 = vadd.f32 1e-05, %v411_v25 }
 0x13d   : > { %v442_v36 = vmul.f32 %v1139_v31, %v428_v28  ;;  %1277 = vrsqrt.f32 %v419_v32 }
 0x13e   : > { %v1268_v33 = vpop.eup %1267  ;;  %1279 = vrsqrt.f32 %v418_v34 }
 0x13f   : > { %v429_v35 = vmul.f32 %v1268_v33, %v1411_v21  ;;  %v1270_v39 = vpop.eup %1269  ;;  %v456_v14 = vadd.f32 %v1140_v40, %v442_v36 }
 0x140   : > { %v430_v44 = vmul.f32 %v1270_v39, %v1406_v15 }
 0x141   : > { %v443_v41 = vmul.f32 %v1139_v31, %v429_v35 }
 0x142   : > { %v1272_v42 = vpop.eup %1271  ;;  %v444_v21 = vmul.f32 %v1139_v31, %v430_v44 }
 0x143   : > { %v457_v43 = vadd.f32 %v1140_v40, %v443_v41  ;;  %v431_v45 = vmul.f32 %v1272_v42, %v1414_v22 }
 0x144   : > { %v458_v52 = vadd.f32 %v1140_v40, %v444_v21 }
 0x145   : > { %v464_v46 = vpack.c.bf16 %v457_v43, %v456_v14  ;;  %v445_v47 = vmul.f32 %v1139_v31, %v431_v45 }
 0x146   : > { %v1274_v48 = vpop.eup %1273 }
 0x147   : > { %609 = vmatmul.mubr.bf16.vlgmr.msra.gmra.mxu0 %v464_v46  ;;  %v1276_v49 = vpop.eup %1275  ;;  %v459_v50 = vadd.f32 %v1140_v40, %v445_v47  ;;  %v433_v51 = vmul.f32 %v1274_v48, %v1424_v30 }
 0x148   : > { %618 = vmatprep.mubr.bf16.mxu0 %v1305_v55  ;;  %v432_v53 = vmul.f32 %v1276_v49, %v1421_v29 }
 0x149   : > { %v465_v54 = vpack.c.bf16 %v459_v50, %v458_v52  ;;  %v447_v56 = vmul.f32 %v1139_v31, %v433_v51 }
 0x14a   : > { %v1278_v57 = vpop.eup %1277  ;;  %v446_v22 = vmul.f32 %v1139_v31, %v432_v53 }
 0x14b   : > { %v1280_v15 = vpop.eup %1279  ;;  %v461_v58 = vadd.f32 %v1140_v40, %v447_v56  ;;  %v435_v59 = vmul.f32 %v1278_v57, %v1434_v38  ;;  %v484_v38 = vld [vmem:[%s1810_s4] sm:$0x3] }
 0x14c   : > { %v460_v60 = vadd.f32 %v1140_v40, %v446_v22  ;;  %v434_v61 = vmul.f32 %v1280_v15, %v1431_v37  ;;  %v489_v37 = vrot.slane %v484_v38, %v1502_v12  ;;  %v493_v16 = vrot.slane %v484_v38, %v1507_v13 }
 0x14d   : > { %v449_v63 = vmul.f32 %v1139_v31, %v435_v59 }
 0x14e   : > { %v466_v62 = vpack.c.bf16 %v461_v58, %v460_v60  ;;  %v448_v30 = vmul.f32 %v1139_v31, %v434_v61 }
 0x14f   : > { %619 = vmatmul.mubr.bf16.gmra.mxu0 %v465_v54  ;;  %v463_v29 = vadd.f32 %v1140_v40, %v449_v63 }
 0x150   : > { %628 = vmatprep.mubr.bf16.mxu0 %v1305_v55  ;;  %v462_v8 = vadd.f32 %v1140_v40, %v448_v30 }
 0x152   : > { %v467_v9 = vpack.c.bf16 %v463_v29, %v462_v8 }
 0x157   : > { %629 = vmatmul.mubr.bf16.gmra.mxu0 %v466_v62 }
 0x158   : > { %638 = vmatprep.mubr.bf16.mxu0 %v1305_v55 }
 0x15f   : > { %639 = vmatmul.mubr.bf16.gmra.mxu0 %v467_v9 }
 0x207   : > { %v610_v17 = vpop.f32.mrf.mxu0 }
 0x208   : > { %v1511_v55 = vadd.f32 %v610_v17, %v489_v37 }
 0x209   : > { %v612_v18 = vpop.f32.mrf.mxu0 }
 0x20a   : > { %v1513_v19 = vadd.f32 %v612_v18, %v493_v16  ;;  %v649_v23 = vmax.f32 %v1511_v55, 0.0 }
 0x20b   : > { %v614_v20 = vpop.f32.mrf.mxu0 }
 0x20c   : > { %v650_v24 = vmax.f32 %v1513_v19, 0.0  ;;  %v1517_v25 = vadd.f32 %v614_v20, %v489_v37 }
 0x20d   : > { %v616_v26 = vpop.f32.mrf.mxu0 }
 0x20e   : > { %v1519_v27 = vadd.f32 %v616_v26, %v493_v16  ;;  %v667_v28 = vadd.f32 %v650_v24, %v649_v23  ;;  %v651_v32 = vmax.f32 %v1517_v25, 0.0 }
 0x20f   : > { %v620_v31 = vpop.f32.mrf.mxu0 }
 0x210   : > { %v652_v33 = vmax.f32 %v1519_v27, 0.0  ;;  %v1527_v34 = vadd.f32 %v620_v31, %v489_v37  ;;  %668 = vadd.xlane.f32.xlu0 %v667_v28 }
 0x211   : > { %v622_v35 = vpop.f32.mrf.mxu0 }
 0x212   : > { %v1529_v36 = vadd.f32 %v622_v35, %v493_v16  ;;  %v670_v39 = vadd.f32 %v652_v33, %v651_v32  ;;  %v653_v41 = vmax.f32 %v1527_v34, 0.0 }
 0x213   : > { %v624_v40 = vpop.f32.mrf.mxu0 }
 0x214   : > { %v654_v42 = vmax.f32 %v1529_v36, 0.0  ;;  %v1533_v14 = vadd.f32 %v624_v40, %v489_v37  ;;  %671 = vadd.xlane.f32.xlu1 %v670_v39 }
 0x215   : > { %v626_v43 = vpop.f32.mrf.mxu0 }
 0x216   : > { %v1535_v44 = vadd.f32 %v626_v43, %v493_v16  ;;  %v673_v45 = vadd.f32 %v654_v42, %v653_v41  ;;  %v655_v47 = vmax.f32 %v1533_v14, 0.0 }
 0x217   : > { %v630_v46 = vpop.f32.mrf.mxu0 }
 0x218   : > { %v656_v48 = vmax.f32 %v1535_v44, 0.0  ;;  %v1539_v21 = vadd.f32 %v630_v46, %v489_v37  ;;  %674 = vadd.xlane.f32.xlu0 %v673_v45 }
 0x219   : > { %v632_v49 = vpop.f32.mrf.mxu0 }
 0x21a   : > { %v1541_v50 = vadd.f32 %v632_v49, %v493_v16  ;;  %v676_v51 = vadd.f32 %v656_v48, %v655_v47  ;;  %v657_v53 = vmax.f32 %v1539_v21, 0.0  ;;  %v1251_v21 = vld [vmem:[%s1813_s7 + $0x70] sm:$0xff]  }
 0x21b   : > { %v634_v52 = vpop.f32.mrf.mxu0 }
 0x21c   : > { %v658_v54 = vmax.f32 %v1541_v50, 0.0  ;;  %v1545_v56 = vadd.f32 %v634_v52, %v489_v37  ;;  %677 = vadd.xlane.f32.xlu1 %v676_v51  ;;  %v1252_v50 = vld [vmem:[%s1813_s7 + $0x30] sm:$0xff]  }
 0x21d   : > { %v636_v57 = vpop.f32.mrf.mxu0 }
 0x21e   : > { %v1547_v15 = vadd.f32 %v636_v57, %v493_v16  ;;  %v679_v22 = vadd.f32 %v658_v54, %v657_v53  ;;  %v659_v59 = vmax.f32 %v1545_v56, 0.0  ;;  %v1253_v56 = vld [vmem:[%s1813_s7 + $0x68] sm:$0xff]  }
 0x21f   : > { %v640_v58 = vpop.f32.mrf.mxu0 }
 0x220   : > { %v660_v60 = vmax.f32 %v1547_v15, 0.0  ;;  %v1555_v61 = vadd.f32 %v640_v58, %v489_v37  ;;  %680 = vadd.xlane.f32.xlu0 %v679_v22  ;;  %v1254_v15 = vld [vmem:[%s1813_s7 + $0x28] sm:$0xff]  }
 0x221   : > { %v642_v62 = vpop.f32.mrf.mxu0 }
 0x222   : > { %v1557_v63 = vadd.f32 %v642_v62, %v493_v16  ;;  %v682_v30 = vadd.f32 %v660_v60, %v659_v59  ;;  %v661_v8 = vmax.f32 %v1555_v61, 0.0  ;;  %v1250_v62 = vld [vmem:[%s1813_s7 + $0x38] sm:$0xff]   ;;  %v1255_v61 = vld [vmem:[%s1813_s7 + $0x60] sm:$0xff]  }
 0x223   : > { %v644_v29 = vpop.f32.mrf.mxu0 }
 0x224   : > { %v662_v9 = vmax.f32 %v1557_v63, 0.0  ;;  %v1565_v10 = vadd.f32 %v644_v29, %v489_v37  ;;  %683 = vadd.xlane.f32.xlu1 %v682_v30  ;;  %v1256_v63 = vld [vmem:[%s1813_s7 + $0x20] sm:$0xff]  }
 0x225   : > { %v646_v11 = vpop.f32.mrf.mxu0 }
 0x226   : > { %v1567_v38 = vadd.f32 %v646_v11, %v493_v16  ;;  %v685_v17 = vadd.f32 %v662_v9, %v661_v8  ;;  %v663_v18 = vmax.f32 %v1565_v10, 0.0  ;;  %v1249_v16 = vld [vmem:[%s1813_s7 + $0x78] sm:$0xff]  }
 0x227   : > { %1176 = vmatprep.subr.bf16.mxu1 %v1249_v16  ;;  %v1257_v10 = vld [vmem:[%s1813_s7 + $0x58] sm:$0xff]  }
 0x228   : > { %v664_v20 = vmax.f32 %v1567_v38, 0.0  ;;  %686 = vadd.xlane.f32.xlu0 %v685_v17  ;;  %1177 = vmatpush3.bf16.msra.mxu1 %v1250_v62  ;;  %v1258_v38 = vld [vmem:[%s1813_s7 + $0x18] sm:$0xff]  }
 0x229   : > { %1178 = vmatprep.subr.bf16.mxu1 %v1251_v21 }
 0x22a   : > { %v688_v37 = vadd.f32 %v664_v20, %v663_v18 }
 0x22c   : > { %689 = vadd.xlane.f32.xlu1 %v688_v37  ;;  %1179 = vmatpush3.bf16.msra.mxu1 %v1252_v50 }
 0x22d   : > { %1180 = vmatprep.subr.bf16.mxu1 %v1253_v56 }
 0x230   : > { %1181 = vmatpush3.bf16.msra.mxu1 %v1254_v15 }
 0x231   : > { %1182 = vmatprep.subr.bf16.mxu1 %v1255_v61 }
 0x234   : > { %1183 = vmatpush3.bf16.msra.mxu1 %v1256_v63 }
 0x235   : > { %1184 = vmatprep.subr.bf16.mxu1 %v1257_v10 }
 0x238   : > { %1185 = vmatpush3.bf16.msra.mxu1 %v1258_v38 }
 0x299   : > { %v669_v25 = vpop.xlane.xlu0 %668 }
 0x29a   : > { %v692_v26 = vmul.f32 0.00390625, %v669_v25 }
 0x29c   : > { %v1584_v27 = vsub.f32 %v649_v23, %v692_v26  ;;  %v1588_v28 = vsub.f32 %v650_v24, %v692_v26 }
 0x29d   : > { %v672_v31 = vpop.xlane.xlu1 %671 }
 0x29e   : > { %v693_v34 = vmul.f32 0.00390625, %v672_v31  ;;  %v716_v35 = vmul.f32 %v1584_v27, %v1584_v27  ;;  %v717_v36 = vmul.f32 %v1588_v28, %v1588_v28 }
 0x2a0   : > { %v1594_v39 = vsub.f32 %v651_v32, %v693_v34  ;;  %v1596_v40 = vsub.f32 %v652_v33, %v693_v34  ;;  %v732_v14 = vadd.f32 %v717_v36, %v716_v35 }
 0x2a1   : > { %v675_v55 = vpop.xlane.xlu0 %674 }
 0x2a2   : > { %v694_v23 = vmul.f32 0.00390625, %v675_v55  ;;  %733 = vadd.xlane.f32.xlu0 %v732_v14  ;;  %v718_v19 = vmul.f32 %v1594_v39, %v1594_v39  ;;  %v719_v24 = vmul.f32 %v1596_v40, %v1596_v40 }
 0x2a4   : > { %v1602_v43 = vsub.f32 %v653_v41, %v694_v23  ;;  %v1604_v44 = vsub.f32 %v654_v42, %v694_v23  ;;  %v735_v45 = vadd.f32 %v719_v24, %v718_v19 }
 0x2a5   : > { %v678_v46 = vpop.xlane.xlu1 %677 }
 0x2a6   : > { %v695_v32 = vmul.f32 0.00390625, %v678_v46  ;;  %736 = vadd.xlane.f32.xlu1 %v735_v45  ;;  %v720_v33 = vmul.f32 %v1602_v43, %v1602_v43  ;;  %v721_v49 = vmul.f32 %v1604_v44, %v1604_v44  ;;  %v1260_v46 = vld [vmem:[%s1813_s7 + $0x10] sm:$0xff]  }
 0x2a8   : > { %v1610_v51 = vsub.f32 %v655_v47, %v695_v32  ;;  %v1612_v52 = vsub.f32 %v656_v48, %v695_v32  ;;  %v738_v57 = vadd.f32 %v721_v49, %v720_v33  ;;  %v1261_v32 = vld [vmem:[%s1813_s7 + $0x48] sm:$0xff]   ;;  %v1263_v49 = vld [vmem:[%s1813_s7 + $0x40] sm:$0xff]  }
 0x2a9   : > { %v681_v22 = vpop.xlane.xlu0 %680  ;;  %v1262_v33 = vld [vmem:[%s1813_s7 + $0x8] sm:$0xff]  }
 0x2aa   : > { %v696_v41 = vmul.f32 0.00390625, %v681_v22  ;;  %739 = vadd.xlane.f32.xlu0 %v738_v57  ;;  %v722_v42 = vmul.f32 %v1610_v51, %v1610_v51  ;;  %v723_v58 = vmul.f32 %v1612_v52, %v1612_v52  ;;  %v1264_v57 = vld [vmem:[%s1813_s7] sm:$0xff]  }
 0x2ac   : > { %v1623_v47 = vsub.f32 %v657_v53, %v696_v41  ;;  %v1627_v48 = vsub.f32 %v658_v54, %v696_v41  ;;  %v741_v30 = vadd.f32 %v723_v58, %v722_v42 }
 0x2ad   : > { %v684_v29 = vpop.xlane.xlu1 %683 }
 0x2ae   : > { %v697_v11 = vmul.f32 0.00390625, %v684_v29  ;;  %742 = vadd.xlane.f32.xlu1 %v741_v30  ;;  %v724_v17 = vmul.f32 %v1623_v47, %v1623_v47  ;;  %v725_v37 = vmul.f32 %v1627_v48, %v1627_v48 }
 0x2b0   : > { %v1641_v53 = vsub.f32 %v659_v59, %v697_v11  ;;  %v1645_v54 = vsub.f32 %v660_v60, %v697_v11  ;;  %v744_v16 = vadd.f32 %v725_v37, %v724_v17 }
 0x2b1   : > { %v687_v25 = vpop.xlane.xlu0 %686 }
 0x2b2   : > { %v698_v26 = vmul.f32 0.00390625, %v687_v25  ;;  %745 = vadd.xlane.f32.xlu0 %v744_v16  ;;  %v726_v31 = vmul.f32 %v1641_v53, %v1641_v53  ;;  %v727_v34 = vmul.f32 %v1645_v54, %v1645_v54  ;;  %v665_v16 = vld [vmem:[%s1811_s5] sm:$0x3] }
 0x2b3   : > { %v1718_v56 = vrot.slane %v665_v16, %v1507_v13 }
 0x2b4   : > { %v1659_v59 = vsub.f32 %v661_v8, %v698_v26  ;;  %v1663_v60 = vsub.f32 %v662_v9, %v698_v26  ;;  %v747_v35 = vadd.f32 %v727_v34, %v726_v31  ;;  %v1715_v34 = vrot.slane %v665_v16, %v1502_v12 }
 0x2b5   : > { %v690_v36 = vpop.xlane.xlu1 %689 }
 0x2b6   : > { %v699_v14 = vmul.f32 0.00390625, %v690_v36  ;;  %748 = vadd.xlane.f32.xlu1 %v747_v35  ;;  %v728_v55 = vmul.f32 %v1659_v59, %v1659_v59  ;;  %v729_v23 = vmul.f32 %v1663_v60, %v1663_v60  ;;  %v666_v35 = vld [vmem:[%s1812_s6] sm:$0x3] }
 0x2b8   : > { %v1677_v8 = vsub.f32 %v663_v18, %v699_v14  ;;  %v1681_v9 = vsub.f32 %v664_v20, %v699_v14  ;;  %v750_v19 = vadd.f32 %v729_v23, %v728_v55  ;;  %v1259_v20 = vld [vmem:[%s1813_s7 + $0x50] sm:$0xff]  }
 0x2b9   : > { %1186 = vmatprep.subr.bf16.mxu1 %v1259_v20 }
 0x2ba   : > { %751 = vadd.xlane.f32.xlu0 %v750_v19  ;;  %v730_v24 = vmul.f32 %v1677_v8, %v1677_v8  ;;  %v731_v45 = vmul.f32 %v1681_v9, %v1681_v9  ;;  %1187 = vmatpush3.bf16.msra.mxu1 %v1260_v46  ;;  %v1727_v19 = vrot.slane %v666_v35, %v1502_v12 }
 0x2bb   : > { %1188 = vmatprep.subr.bf16.mxu1 %v1261_v32 }
 0x2bc   : > { %v753_v18 = vadd.f32 %v731_v45, %v730_v24  ;;  %v1730_v24 = vrot.slane %v666_v35, %v1507_v13 }
 0x2be   : > { %754 = vadd.xlane.f32.xlu1 %v753_v18  ;;  %1189 = vmatpush3.bf16.msra.mxu1 %v1262_v33 }
 0x2bf   : > { %1190 = vmatprep.subr.bf16.mxu1 %v1263_v49 }
 0x2c2   : > { %1191 = vmatpush3.bf16.msra.mxu1 %v1264_v57 }
 0x32b   : > { %v734_v22 = vpop.xlane.xlu0 %733 }
 0x32c   : > { %v756_v41 = vmul.f32 0.00390625, %v734_v22 }
 0x32e   : > { %v764_v42 = vadd.f32 1e-05, %v756_v41 }
 0x32f   : > { %v737_v58 = vpop.xlane.xlu1 %736 }
 0x330   : > { %1281 = vrsqrt.f32 %v764_v42  ;;  %v757_v62 = vmul.f32 0.00390625, %v737_v58 }
 0x332   : > { %v765_v30 = vadd.f32 1e-05, %v757_v62 }
 0x333   : > { %v740_v29 = vpop.xlane.xlu0 %739 }
 0x334   : > { %1283 = vrsqrt.f32 %v765_v30  ;;  %v758_v11 = vmul.f32 0.00390625, %v740_v29 }
 0x336   : > { %v766_v17 = vadd.f32 1e-05, %v758_v11 }
 0x337   : > { %v743_v37 = vpop.xlane.xlu1 %742 }
 0x338   : > { %1285 = vrsqrt.f32 %v766_v17  ;;  %v759_v21 = vmul.f32 0.00390625, %v743_v37 }
 0x33a   : > { %v767_v50 = vadd.f32 1e-05, %v759_v21 }
 0x33b   : > { %v746_v25 = vpop.xlane.xlu0 %745 }
 0x33c   : > { %1287 = vrsqrt.f32 %v767_v50  ;;  %v760_v26 = vmul.f32 0.00390625, %v746_v25 }
 0x33d   : > { %v1282_v31 = vpop.eup %1281 }
 0x33e   : > { %v768_v15 = vadd.f32 1e-05, %v760_v26  ;;  %v781_v36 = vmul.f32 %v1282_v31, %v1588_v28  ;;  %v780_v14 = vmul.f32 %v1282_v31, %v1584_v27 }
 0x33f   : > { %v749_v55 = vpop.xlane.xlu1 %748 }
 0x340   : > { %1289 = vrsqrt.f32 %v768_v15  ;;  %v761_v23 = vmul.f32 0.00390625, %v749_v55  ;;  %v808_v63 = vmul.f32 %v1718_v56, %v781_v36  ;;  %v807_v45 = vmul.f32 %v1715_v34, %v780_v14 }
 0x341   : > { %v1284_v61 = vpop.eup %1283 }
 0x342   : > { %v769_v10 = vadd.f32 1e-05, %v761_v23  ;;  %v783_v38 = vmul.f32 %v1284_v61, %v1596_v40  ;;  %v782_v28 = vmul.f32 %v1284_v61, %v1594_v39  ;;  %v835_v12 = vadd.f32 %v1730_v24, %v808_v63 }
 0x343   : > { %v752_v27 = vpop.xlane.xlu0 %751  ;;  %v834_v13 = vadd.f32 %v1727_v19, %v807_v45 }
 0x344   : > { %1291 = vrsqrt.f32 %v769_v10  ;;  %v762_v18 = vmul.f32 0.00390625, %v752_v27  ;;  %v810_v20 = vmul.f32 %v1718_v56, %v783_v38  ;;  %v809_v46 = vmul.f32 %v1715_v34, %v782_v28 }
 0x345   : > { %v1286_v32 = vpop.eup %1285 }
 0x346   : > { %v770_v33 = vadd.f32 1e-05, %v762_v18  ;;  %v837_v49 = vadd.f32 %v1730_v24, %v810_v20  ;;  %v836_v57 = vadd.f32 %v1727_v19, %v809_v46  ;;  %v785_v40 = vmul.f32 %v1286_v32, %v1604_v44 }
 0x347   : > { %v755_v39 = vpop.xlane.xlu1 %754  ;;  %v784_v22 = vmul.f32 %v1286_v32, %v1602_v43 }
 0x348   : > { %1293 = vrsqrt.f32 %v770_v33  ;;  %v763_v41 = vmul.f32 0.00390625, %v755_v39  ;;  %v851_v42 = vpack.c.bf16 %v837_v49, %v835_v12  ;;  %v850_v58 = vpack.c.bf16 %v836_v57, %v834_v13 }
 0x349   : > { %v1288_v62 = vpop.eup %1287  ;;  %v812_v30 = vmul.f32 %v1718_v56, %v785_v40  ;;  %v811_v29 = vmul.f32 %v1715_v34, %v784_v22 }
 0x34a   : > { %v771_v11 = vadd.f32 1e-05, %v763_v41  ;;  %1025 = vmatprep.mubr.bf16.mxu1 %v851_v42  ;;  %v787_v17 = vmul.f32 %v1288_v62, %v1612_v52  ;;  %v786_v37 = vmul.f32 %v1288_v62, %v1610_v51 }
 0x34b   : > { %1026 = vmatmul.mubr.bf16.vlgmr.msra.gmra.mxu1 %v850_v58  ;;  %v839_v50 = vadd.f32 %v1730_v24, %v812_v30  ;;  %v838_v16 = vadd.f32 %v1727_v19, %v811_v29 }
 0x34c   : > { %1295 = vrsqrt.f32 %v771_v11  ;;  %v814_v44 = vmul.f32 %v1718_v56, %v787_v17  ;;  %v813_v43 = vmul.f32 %v1715_v34, %v786_v37 }
 0x34d   : > { %v1290_v21 = vpop.eup %1289 }
 0x34e   : > { %v841_v25 = vadd.f32 %v1730_v24, %v814_v44  ;;  %v840_v26 = vadd.f32 %v1727_v19, %v813_v43  ;;  %v789_v31 = vmul.f32 %v1290_v21, %v1627_v48  ;;  %v788_v52 = vmul.f32 %v1290_v21, %v1623_v47 }
 0x350   : > { %v853_v51 = vpack.c.bf16 %v841_v25, %v839_v50  ;;  %v852_v15 = vpack.c.bf16 %v840_v26, %v838_v16  ;;  %v816_v36 = vmul.f32 %v1718_v56, %v789_v31  ;;  %v815_v14 = vmul.f32 %v1715_v34, %v788_v52 }
 0x351   : > { %v1292_v35 = vpop.eup %1291 }
 0x352   : > { %1033 = vmatprep.mubr.bf16.mxu1 %v853_v51  ;;  %v791_v55 = vmul.f32 %v1292_v35, %v1645_v54  ;;  %v790_v23 = vmul.f32 %v1292_v35, %v1641_v53  ;;  %v843_v47 = vadd.f32 %v1730_v24, %v816_v36  ;;  %v842_v45 = vadd.f32 %v1727_v19, %v815_v14 }
 0x353   : > { %1034 = vmatmul.mubr.bf16.gmra.mxu1 %v852_v15 }
 0x354   : > { %v818_v61 = vmul.f32 %v1718_v56, %v791_v55  ;;  %v817_v63 = vmul.f32 %v1715_v34, %v790_v23 }
 0x355   : > { %v1294_v48 = vpop.eup %1293 }
 0x356   : > { %v845_v10 = vadd.f32 %v1730_v24, %v818_v61  ;;  %v844_v38 = vadd.f32 %v1727_v19, %v817_v63  ;;  %v793_v28 = vmul.f32 %v1294_v48, %v1663_v60  ;;  %v792_v54 = vmul.f32 %v1294_v48, %v1659_v59 }
 0x358   : > { %v855_v27 = vpack.c.bf16 %v845_v10, %v843_v47  ;;  %v854_v53 = vpack.c.bf16 %v844_v38, %v842_v45  ;;  %v820_v46 = vmul.f32 %v1718_v56, %v793_v28  ;;  %v819_v12 = vmul.f32 %v1715_v34, %v792_v54 }
 0x359   : > { %v1296_v18 = vpop.eup %1295 }
 0x35a   : > { %1041 = vmatprep.mubr.bf16.mxu1 %v855_v27  ;;  %v795_v20 = vmul.f32 %v1296_v18, %v1681_v9  ;;  %v794_v32 = vmul.f32 %v1296_v18, %v1677_v8  ;;  %v847_v59 = vadd.f32 %v1730_v24, %v820_v46  ;;  %v846_v49 = vadd.f32 %v1727_v19, %v819_v12 }
 0x35b   : > { %1042 = vmatmul.mubr.bf16.gmra.mxu1 %v854_v53 }
 0x35c   : > { %v822_v13 = vmul.f32 %v1718_v56, %v795_v20  ;;  %v821_v60 = vmul.f32 %v1715_v34, %v794_v32  ;;  %v1157_v56 = vld [vmem:[%s1814_s8] ss:$0 sm:$0xff] }
 0x35e   : > { %v849_v33 = vadd.f32 %v1730_v24, %v822_v13  ;;  %v848_v9 = vadd.f32 %v1727_v19, %v821_v60 }
 0x360   : > { %v857_v57 = vpack.c.bf16 %v849_v33, %v847_v59  ;;  %v856_v40 = vpack.c.bf16 %v848_v9, %v846_v49 }
 0x362   : > { %1049 = vmatprep.mubr.bf16.mxu1 %v857_v57 }
 0x363   : > { %1050 = vmatmul.mubr.bf16.gmra.mxu1 %v856_v40 }
 0x40b   : > { %v1192_v8 = vpop.f32.mrf.mxu1 }
 0x40d   : > { %v1193_v39 = vpop.f32.mrf.mxu1 }
 0x40e   : > { %v1194_v22 = vadd.f32 %v1193_v39, %v1192_v8 }
 0x40f   : > { %v1195_v34 = vpop.f32.mrf.mxu1 }
 0x410   : > { %v1028_v41 = vadd.f32 %v1194_v22, %v1157_v56 }
 0x411   : > { %v1196_v19 = vpop.f32.mrf.mxu1 }
 0x412   : > { %v1058_v24 = vadd.f32 %v1028_v41, %v1372_v0  ;;  %v1197_v42 = vadd.f32 %v1196_v19, %v1195_v34 }
 0x413   : > { %v1198_v58 = vpop.f32.mrf.mxu1 }
 0x414   : > { %1066 = vst [vmem:[%s1785_s22] sm:$0xff] %v1058_v24  ;;  %v1031_v62 = vadd.f32 %v1197_v42, %v1157_v56 }
 0x415   : > { %v1199_v30 = vpop.f32.mrf.mxu1 }
 0x416   : > { %v1059_v29 = vadd.f32 %v1031_v62, %v1378_v2  ;;  %v1200_v11 = vadd.f32 %v1199_v30, %v1198_v58 }
 0x417   : > { %v1201_v17 = vpop.f32.mrf.mxu1 }
 0x418   : > { %1067 = vst [vmem:[%s1785_s22 + $0x8] sm:$0xff] %v1059_v29  ;;  %v1036_v37 = vadd.f32 %v1200_v11, %v1157_v56 }
 0x419   : > { %v1202_v44 = vpop.f32.mrf.mxu1 }
 0x41a   : > { %v1060_v43 = vadd.f32 %v1036_v37, %v1374_v1  ;;  %v1203_v21 = vadd.f32 %v1202_v44, %v1201_v17 }
 0x41b   : > { %v1204_v50 = vpop.f32.mrf.mxu1 }
 0x41c   : > { %1068 = vst [vmem:[%s1785_s22 + $0x10] sm:$0xff] %v1060_v43  ;;  %v1039_v0 = vadd.f32 %v1203_v21, %v1157_v56 }
 0x41d   : > { %v1205_v16 = vpop.f32.mrf.mxu1 }
 0x41e   : > { %v1061_v25 = vadd.f32 %v1039_v0, %v1380_v3  ;;  %v1206_v26 = vadd.f32 %v1205_v16, %v1204_v50 }
 0x41f   : > { %v1207_v31 = vpop.f32.mrf.mxu1 }
 0x420   : > { %1069 = vst [vmem:[%s1785_s22 + $0x18] sm:$0xff] %v1061_v25  ;;  %v1044_v2 = vadd.f32 %v1206_v26, %v1157_v56 }
 0x421   : > { %v1208_v52 = vpop.f32.mrf.mxu1 }
 0x422   : > { %v1062_v51 = vadd.f32 %v1044_v2, %v1382_v4  ;;  %v1209_v15 = vadd.f32 %v1208_v52, %v1207_v31 }
 0x423   : > { %v1210_v35 = vpop.f32.mrf.mxu1 }
 0x424   : > { %1070 = vst [vmem:[%s1785_s22 + $0x20] sm:$0xff] %v1062_v51  ;;  %v1047_v1 = vadd.f32 %v1209_v15, %v1157_v56 }
 0x425   : > { %v1211_v36 = vpop.f32.mrf.mxu1 }
 0x426   : > { %v1063_v14 = vadd.f32 %v1047_v1, %v1384_v5  ;;  %v1212_v55 = vadd.f32 %v1211_v36, %v1210_v35 }
 0x427   : > { %v1213_v23 = vpop.f32.mrf.mxu1 }
 0x428   : > { %1071 = vst [vmem:[%s1785_s22 + $0x28] sm:$0xff] %v1063_v14  ;;  %v1052_v3 = vadd.f32 %v1212_v55, %v1157_v56 }
 0x429   : > { %v1214_v61 = vpop.f32.mrf.mxu1 }
 0x42a   : > { %v1064_v63 = vadd.f32 %v1052_v3, %v1388_v6  ;;  %v1215_v48 = vadd.f32 %v1214_v61, %v1213_v23 }
 0x42c   : > { %1072 = vst [vmem:[%s1785_s22 + $0x30] sm:$0xff] %v1064_v63  ;;  %v1055_v47 = vadd.f32 %v1215_v48, %v1157_v56 }
 0x42e   : > { %v1065_v4 = vadd.f32 %v1055_v47, %v1390_v7 }
 0x430   : > { %1073 = vst [vmem:[%s1785_s22 + $0x38] sm:$0xff] %v1065_v4 }
 0x431 PF: > { %s19_s30 = sadd.s32 1, %s1303_s30  }
 0x432   : > { %p16_p4 = scmp.ge.s32.totalorder %s19_s30, 4  }
 0x434   :  { %18 = sbr.rel (!%p16_p4) target bundleno = 1 (0x1), region = 86 }

</bundles_post_ra>
